<compile_context>
chip_gen: v5e
topology: v5e:2x2
jax: 0.10.0
libtpu: 0.0.40
codegen_flags: <defaults>
</compile_context>

<pallas_src>
import functools

import jax
import jax.numpy as jnp
from jax import lax
from jax.experimental import pallas as pl
from jax.experimental.pallas import tpu as pltpu


_LANE = 128
_SUBLANE = 8


def _round_up(x, m):
    return ((x + m - 1) // m) * m


def _pick_chunk(t, max_chunk=64):
    """Largest divisor of t that is <= max_chunk (bounds per-chunk VMEM)."""
    if t <= max_chunk:
        return t
    for cand in range(max_chunk, 0, -1):
        if t % cand == 0:
            return cand
    return 1


# ----------------------------------------------------------------------------
# Fused kernel: all GRU layers + final Linear, time-chunked grid
# ----------------------------------------------------------------------------
def _make_kernel(num_layers, Tc, Bp, Hp):
    unroll = True if Tc <= 16 else 8

    def kernel(*refs):
        # refs: x, (w_ih, w_hh, b_comb, b_hn) * L, fc_w, fc_b, out,
        #       h_scr (L,Bp,Hp) f32, seq_scr (Tc*Bp,Hp) bf16, gi_scr (Tc*Bp,3Hp) f32
        x_ref = refs[0]
        fc_w_ref = refs[1 + 4 * num_layers]
        fc_b_ref = refs[2 + 4 * num_layers]
        out_ref = refs[3 + 4 * num_layers]
        h_scr = refs[4 + 4 * num_layers]
        seq_scr = refs[5 + 4 * num_layers]
        gi_scr = refs[6 + 4 * num_layers]

        c = pl.program_id(0)

        @pl.when(c == 0)
        def _init():
            h_scr[...] = jnp.zeros_like(h_scr)

        h = None
        for l in range(num_layers):
            wih_ref, whh_ref, bcomb_ref, bhn_ref = refs[1 + 4 * l: 5 + 4 * l]
            whh = whh_ref[...]                                   # (Hp, 3Hp) bf16
            bhn_b = jnp.broadcast_to(bhn_ref[...], (Bp, Hp))     # hoisted, f32
            is_last = l == num_layers - 1

            # ---- hoisted input projection for this chunk: one MXU matmul ----
            # (b_ih + b_hr + b_hz already folded into bcomb at prep time)
            inp = x_ref[...] if l == 0 else seq_scr[...]         # (Tc*Bp, d_in)
            gi_scr[...] = (
                jnp.dot(inp.astype(jnp.bfloat16), wih_ref[...],
                        preferred_element_type=jnp.float32)
                + bcomb_ref[...]
            )

            # ---- serial recurrence: only h @ W_hh stays on the chain ----
            def step(t, h):
                row = pl.multiple_of(t * Bp, Bp)
                gi = gi_scr[pl.ds(row, Bp), :]                   # (Bp, 3Hp) f32
                gh = jnp.dot(h.astype(jnp.bfloat16), whh,
                             preferred_element_type=jnp.float32)
                rz = jax.nn.sigmoid(gi[:, :2 * Hp] + gh[:, :2 * Hp])
                r = rz[:, :Hp]
                z = rz[:, Hp:]
                n = jnp.tanh(gi[:, 2 * Hp:] + r * (gh[:, 2 * Hp:] + bhn_b))
                h_new = n + z * (h - n)
                if not is_last:
                    # only intermediate layers feed a hidden sequence onward
                    seq_scr[pl.ds(row, Bp), :] = h_new.astype(seq_scr.dtype)
                return h_new

            h = lax.fori_loop(0, Tc, step, h_scr[l], unroll=unroll)
            h_scr[l] = h                                          # carry to next chunk

        # ---- fused final Linear on the last hidden state (last chunk only) ----
        @pl.when(c == pl.num_programs(0) - 1)
        def _finalize():
            out_ref[...] = (
                jnp.dot(h.astype(jnp.bfloat16), fc_w_ref[...],
                        preferred_element_type=jnp.float32)
                + fc_b_ref[...]
            )

    return kernel


# ----------------------------------------------------------------------------
# One-time parameter preparation (OUTSIDE the jitted forward)
# ----------------------------------------------------------------------------
def _pad_gate_cols(w, H, Hp):
    """(..., 3H) -> (..., 3Hp), gate g placed at columns [g*Hp, g*Hp+H)."""
    out = jnp.zeros(w.shape[:-1] + (3 * Hp,), w.dtype)
    for g in range(3):
        out = out.at[..., g * Hp:g * Hp + H].set(w[..., g * H:(g + 1) * H])
    return out


def _pad_rows(w, rows_p):
    return jnp.zeros((rows_p,) + w.shape[1:], w.dtype).at[: w.shape[0]].set(w)


def prepare_params(params):
    """Pad / re-layout / fold biases / cast to bf16. Call ONCE at load time."""
    layers = params["gru_layers"]
    H = layers[0][1].shape[0]              # w_hh is (H, 3H)
    Hp = _round_up(H, _LANE)
    O = params["fc_w"].shape[1]
    Op = _round_up(O, _LANE)

    prepared_layers = []
    for l, (w_ih, w_hh, b_ih, b_hh) in enumerate(layers):
        d_in = w_ih.shape[0]
        d_in_p = d_in if l == 0 else Hp    # layer 0: contraction dim left unpadded
        w_ih_p = _pad_rows(_pad_gate_cols(w_ih, H, Hp), d_in_p).astype(jnp.bfloat16)
        w_hh_p = _pad_rows(_pad_gate_cols(w_hh, H, Hp), Hp).astype(jnp.bfloat16)
        # fold b_hr, b_hz into the input-side bias (they are outside the r* term)
        b_comb = b_ih + jnp.concatenate(
            [b_hh[:, :2 * H], jnp.zeros((1, H), b_hh.dtype)], axis=1)
        b_comb_p = _pad_gate_cols(b_comb, H, Hp)                         # f32 (1,3Hp)
        b_hn_p = jnp.zeros((1, Hp), jnp.float32).at[:, :H].set(b_hh[:, 2 * H:])
        prepared_layers.append((w_ih_p, w_hh_p, b_comb_p, b_hn_p))

    fc_w_p = (jnp.zeros((Hp, Op), jnp.float32)
              .at[:H, :O].set(params["fc_w"]).astype(jnp.bfloat16))
    fc_b_p = jnp.zeros((1, Op), jnp.float32).at[:, :O].set(params["fc_b"])

    return {"layers": prepared_layers, "fc_w": fc_w_p, "fc_b": fc_b_p}


# ----------------------------------------------------------------------------
# Forward (jitted) — only x is padded per call
# ----------------------------------------------------------------------------
@functools.partial(jax.jit, static_argnames=("output_size",))
def gru_model_forward(x, prepared, *, output_size):
    """x: (B, T, input_size) float32, batch-first.  Returns (B, output_size)."""
    B, T, D = x.shape
    layers = prepared["layers"]
    L = len(layers)
    Hp = layers[0][1].shape[0]             # padded hidden (w_hh_p is (Hp, 3Hp))
    Op = prepared["fc_w"].shape[1]
    Bp = _round_up(max(B, _SUBLANE), _SUBLANE)

    Tc = _pick_chunk(T)
    num_chunks = T // Tc

    # time-major, batch sublane-padded, flattened so the kernel needs no reshapes;
    # the contraction dim D stays unpadded (MXU pads K internally).
    x_tm = jnp.transpose(x, (1, 0, 2))                              # (T, B, D)
    x_p = (jnp.zeros((T, Bp, D), jnp.float32)
           .at[:, :B, :].set(x_tm).reshape(T * Bp, D))

    flat_w = []
    for lw in layers:
        flat_w.extend(lw)
    all_weights = flat_w + [prepared["fc_w"], prepared["fc_b"]]

    weight_specs = [pl.BlockSpec(w.shape, lambda c: (0, 0)) for w in all_weights]

    grid_spec = pltpu.PrefetchScalarGridSpec(
        num_scalar_prefetch=0,
        grid=(num_chunks,),
        in_specs=[pl.BlockSpec((Tc * Bp, D), lambda c: (c, 0))] + weight_specs,
        out_specs=pl.BlockSpec((Bp, Op), lambda c: (0, 0)),
        scratch_shapes=[
            pltpu.VMEM((L, Bp, Hp), jnp.float32),        # carried per-layer hidden
            pltpu.VMEM((Tc * Bp, Hp), jnp.bfloat16),     # inter-layer hidden seq (chunk)
            pltpu.VMEM((Tc * Bp, 3 * Hp), jnp.float32),  # hoisted projection (chunk)
        ],
    )

    # explicit VMEM budget (v5e scoped default is only 16 MiB)
    scratch_bytes = L * Bp * Hp * 4 + Tc * Bp * Hp * 2 + Tc * Bp * 3 * Hp * 4
    chunk_bytes = 2 * Tc * Bp * D * 4
    weight_bytes = sum(int(w.size) * w.dtype.itemsize for w in all_weights)
    out_bytes = 2 * Bp * Op * 4
    vmem_limit = int(max(32 * 1024 * 1024,
                         2 * (scratch_bytes + chunk_bytes + weight_bytes + out_bytes)))

    kernel = _make_kernel(L, Tc, Bp, Hp)
    out_p = pl.pallas_call(
        kernel,
        out_shape=jax.ShapeDtypeStruct((Bp, Op), jnp.float32),
        grid_spec=grid_spec,
        compiler_params=pltpu.CompilerParams(
            dimension_semantics=("arbitrary",),
            vmem_limit_bytes=vmem_limit),
    )(x_p, *all_weights)

    return out_p[:B, :output_size]


# ----------------------------------------------------------------------------
# Deterministic parameter init (torch.nn.GRU / nn.Linear default scheme),
# stored pre-transposed, gate order [r, z, n]
# ----------------------------------------------------------------------------
def init_params(key, input_size, hidden_size, num_layers, output_size):
    H = hidden_size
    bound = 1.0 / jnp.sqrt(jnp.float32(H))
    layers = []
    for layer in range(num_layers):
        d_in = input_size if layer == 0 else hidden_size
        key, k1, k2, k3, k4 = jax.random.split(key, 5)
        w_ih = jax.random.uniform(k1, (d_in, 3 * H), jnp.float32, -bound, bound)
        w_hh = jax.random.uniform(k2, (H, 3 * H), jnp.float32, -bound, bound)
        b_ih = jax.random.uniform(k3, (1, 3 * H), jnp.float32, -bound, bound)
        b_hh = jax.random.uniform(k4, (1, 3 * H), jnp.float32, -bound, bound)
        layers.append((w_ih, w_hh, b_ih, b_hh))
    key, k5, k6 = jax.random.split(key, 3)
    fc_w = jax.random.uniform(k5, (H, output_size), jnp.float32, -bound, bound)
    fc_b = jax.random.uniform(k6, (1, output_size), jnp.float32, -bound, bound)
    return {"gru_layers": layers, "fc_w": fc_w, "fc_b": fc_b}


if __name__ == "__main__":
    # Small shapes consistent with the module's forward:
    # x: (batch=2, seq=8, input_size=16); hidden=32, num_layers=2, output=8
    B, T, INPUT, HIDDEN, LAYERS, OUTPUT = 2, 8, 16, 32, 2, 8

    key = jax.random.PRNGKey(0)
    key, kx = jax.random.split(key)
    x = jax.random.normal(kx, (B, T, INPUT), dtype=jnp.float32)

    params = init_params(key, INPUT, HIDDEN, LAYERS, OUTPUT)
    prepared = prepare_params(params)          # one-time: pad / fold / cast

    out = gru_model_forward(x, prepared, output_size=OUTPUT)
    jax.block_until_ready(out)
    assert out.shape == (B, OUTPUT), out.shape
    print("KERNEL_OK")
</pallas_src>

<mosaic_0001>
module attributes {stable_mosaic.version = 11 : i64} {
  func.func @kernel(%arg0: i32, %arg1: memref<64x16xf32, #tpu.memory_space<vmem>>, %arg2: memref<16x384xbf16, #tpu.memory_space<vmem>>, %arg3: memref<128x384xbf16, #tpu.memory_space<vmem>>, %arg4: memref<1x384xf32, #tpu.memory_space<vmem>>, %arg5: memref<1x128xf32, #tpu.memory_space<vmem>>, %arg6: memref<128x384xbf16, #tpu.memory_space<vmem>>, %arg7: memref<128x384xbf16, #tpu.memory_space<vmem>>, %arg8: memref<1x384xf32, #tpu.memory_space<vmem>>, %arg9: memref<1x128xf32, #tpu.memory_space<vmem>>, %arg10: memref<128x128xbf16, #tpu.memory_space<vmem>>, %arg11: memref<1x128xf32, #tpu.memory_space<vmem>>, %arg12: memref<8x128xf32, #tpu.memory_space<vmem>>, %arg13: memref<2x8x128xf32, #tpu.memory_space<vmem>>, %arg14: memref<64x128xbf16, #tpu.memory_space<vmem>>, %arg15: memref<64x384xf32, #tpu.memory_space<vmem>>) attributes {dimension_semantics = [#tpu.dimension_semantics<arbitrary>], iteration_bounds = array<i64: 1>, scalar_prefetch = 0 : i64, scratch_operands = 3 : i64, tpu.core_type = #tpu.core_type<tc>, window_params = [{transform_indices = @transform_0, window_bounds = array<i64: 64, 16>}, {pipeline_mode = #tpu.pipeline_mode<synchronous>, transform_indices = @transform_1, window_bounds = array<i64: 16, 384>}, {pipeline_mode = #tpu.pipeline_mode<synchronous>, transform_indices = @transform_2, window_bounds = array<i64: 128, 384>}, {pipeline_mode = #tpu.pipeline_mode<synchronous>, transform_indices = @transform_3, window_bounds = array<i64: 1, 384>}, {pipeline_mode = #tpu.pipeline_mode<synchronous>, transform_indices = @transform_4, window_bounds = array<i64: 1, 128>}, {pipeline_mode = #tpu.pipeline_mode<synchronous>, transform_indices = @transform_5, window_bounds = array<i64: 128, 384>}, {pipeline_mode = #tpu.pipeline_mode<synchronous>, transform_indices = @transform_6, window_bounds = array<i64: 128, 384>}, {pipeline_mode = #tpu.pipeline_mode<synchronous>, transform_indices = @transform_7, window_bounds = array<i64: 1, 384>}, {pipeline_mode = #tpu.pipeline_mode<synchronous>, transform_indices = @transform_8, window_bounds = array<i64: 1, 128>}, {pipeline_mode = #tpu.pipeline_mode<synchronous>, transform_indices = @transform_9, window_bounds = array<i64: 128, 128>}, {pipeline_mode = #tpu.pipeline_mode<synchronous>, transform_indices = @transform_10, window_bounds = array<i64: 1, 128>}, {pipeline_mode = #tpu.pipeline_mode<synchronous>, transform_indices = @transform_11, window_bounds = array<i64: 8, 128>}]} {
    %c0_i32 = arith.constant 0 : i32
    %0 = arith.cmpi eq, %arg0, %c0_i32 : i32
    %1 = arith.extui %0 : i1 to i32
    %c0_i32_0 = arith.constant 0 : i32
    %2 = arith.cmpi ne, %1, %c0_i32_0 : i32
    scf.if %2 {
      %cst_120 = arith.constant 0.000000e+00 : f32
      %463 = vector.broadcast %cst_120 : f32 to vector<2x8x128xf32>
      %c0_121 = arith.constant 0 : index
      %c0_122 = arith.constant 0 : index
      %c0_123 = arith.constant 0 : index
      %464 = vector.load %arg13[%c0_121, %c0_122, %c0_123] : memref<2x8x128xf32, #tpu.memory_space<vmem>>, vector<2x8x128xf32>
      tpu.vector_store %arg13[%c0_121, %c0_122, %c0_123], %463 {strides = array<i32>} : memref<2x8x128xf32, #tpu.memory_space<vmem>>, vector<2x8x128xf32>,
    } else {
    }
    %c0 = arith.constant 0 : index
    %c0_1 = arith.constant 0 : index
    %3 = vector.load %arg3[%c0, %c0_1] : memref<128x384xbf16, #tpu.memory_space<vmem>>, vector<128x384xbf16>
    %c0_2 = arith.constant 0 : index
    %c0_3 = arith.constant 0 : index
    %4 = vector.load %arg5[%c0_2, %c0_3] : memref<1x128xf32, #tpu.memory_space<vmem>>, vector<1x128xf32>
    %5 = vector.shape_cast %4 : vector<1x128xf32> to vector<1x128xf32>
    %6 = vector.broadcast %5 : vector<1x128xf32> to vector<8x128xf32>
    %c0_4 = arith.constant 0 : index
    %c0_5 = arith.constant 0 : index
    %7 = vector.load %arg1[%c0_4, %c0_5] : memref<64x16xf32, #tpu.memory_space<vmem>>, vector<64x16xf32>
    %8 = arith.truncf %7 : vector<64x16xf32> to vector<64x16xbf16>
    %c0_6 = arith.constant 0 : index
    %c0_7 = arith.constant 0 : index
    %9 = vector.load %arg2[%c0_6, %c0_7] : memref<16x384xbf16, #tpu.memory_space<vmem>>, vector<16x384xbf16>
    %cst = arith.constant dense<0.000000e+00> : vector<64x384xf32>
    %10 = tpu.matmul %8, %9, %cst {dimension_numbers = #tpu.dot_dimension_numbers<[1], [0], [0], [1], [0, 0, 1, 1], [], []>} : vector<64x16xbf16>, vector<16x384xbf16>, vector<64x384xf32> -> vector<64x384xf32>
    %c0_8 = arith.constant 0 : index
    %c0_9 = arith.constant 0 : index
    %11 = vector.load %arg4[%c0_8, %c0_9] : memref<1x384xf32, #tpu.memory_space<vmem>>, vector<1x384xf32>
    %12 = vector.broadcast %11 : vector<1x384xf32> to vector<64x384xf32>
    %13 = arith.addf %10, %12 : vector<64x384xf32>
    %c0_10 = arith.constant 0 : index
    %c0_11 = arith.constant 0 : index
    %14 = vector.load %arg15[%c0_10, %c0_11] : memref<64x384xf32, #tpu.memory_space<vmem>>, vector<64x384xf32>
    tpu.vector_store %arg15[%c0_10, %c0_11], %13 {strides = array<i32>} : memref<64x384xf32, #tpu.memory_space<vmem>>, vector<64x384xf32>,
    %c0_12 = arith.constant 0 : index
    %c0_13 = arith.constant 0 : index
    %c0_14 = arith.constant 0 : index
    %15 = vector.load %arg13[%c0_12, %c0_13, %c0_14] : memref<2x8x128xf32, #tpu.memory_space<vmem>>, vector<1x8x128xf32>
    %16 = vector.shape_cast %15 : vector<1x8x128xf32> to vector<8x128xf32>
    %c0_i32_15 = arith.constant 0 : i32
    %c8_i32 = arith.constant 8 : i32
    %17 = arith.muli %c0_i32_15, %c8_i32 : i32
    %18 = tpu.assume_multiple %17, 8 : i32
    %19 = arith.index_cast %18 : i32 to index
    %c0_16 = arith.constant 0 : index
    %20 = vector.load %arg15[%19, %c0_16] : memref<64x384xf32, #tpu.memory_space<vmem>>, vector<8x384xf32>
    %21 = arith.truncf %16 : vector<8x128xf32> to vector<8x128xbf16>
    %cst_17 = arith.constant dense<0.000000e+00> : vector<8x384xf32>
    %22 = tpu.matmul %21, %3, %cst_17 {dimension_numbers = #tpu.dot_dimension_numbers<[1], [0], [0], [1], [0, 0, 1, 1], [], []>} : vector<8x128xbf16>, vector<128x384xbf16>, vector<8x384xf32> -> vector<8x384xf32>
    %23 = vector.extract_strided_slice %20 {offsets = [0, 0], sizes = [8, 256], strides = [1, 1]} : vector<8x384xf32> to vector<8x256xf32>
    %24 = vector.extract_strided_slice %22 {offsets = [0, 0], sizes = [8, 256], strides = [1, 1]} : vector<8x384xf32> to vector<8x256xf32>
    %25 = arith.addf %23, %24 : vector<8x256xf32>
    %26 = arith.negf %25 : vector<8x256xf32>
    %27 = math.exp %26 : vector<8x256xf32>
    %cst_18 = arith.constant 1.000000e+00 : f32
    %28 = vector.broadcast %cst_18 : f32 to vector<8x256xf32>
    %29 = arith.addf %28, %27 : vector<8x256xf32>
    %30 = arith.divf %28, %29 : vector<8x256xf32>
    %31 = vector.extract_strided_slice %30 {offsets = [0, 0], sizes = [8, 128], strides = [1, 1]} : vector<8x256xf32> to vector<8x128xf32>
    %32 = vector.extract_strided_slice %30 {offsets = [0, 128], sizes = [8, 128], strides = [1, 1]} : vector<8x256xf32> to vector<8x128xf32>
    %33 = vector.extract_strided_slice %20 {offsets = [0, 256], sizes = [8, 128], strides = [1, 1]} : vector<8x384xf32> to vector<8x128xf32>
    %34 = vector.extract_strided_slice %22 {offsets = [0, 256], sizes = [8, 128], strides = [1, 1]} : vector<8x384xf32> to vector<8x128xf32>
    %35 = arith.addf %34, %6 : vector<8x128xf32>
    %36 = arith.mulf %31, %35 : vector<8x128xf32>
    %37 = arith.addf %33, %36 : vector<8x128xf32>
    %38 = math.tanh %37 : vector<8x128xf32>
    %39 = arith.subf %16, %38 : vector<8x128xf32>
    %40 = arith.mulf %32, %39 : vector<8x128xf32>
    %41 = arith.addf %38, %40 : vector<8x128xf32>
    %42 = arith.truncf %41 : vector<8x128xf32> to vector<8x128xbf16>
    %43 = arith.index_cast %18 : i32 to index
    %c0_19 = arith.constant 0 : index
    %44 = vector.load %arg14[%43, %c0_19] : memref<64x128xbf16, #tpu.memory_space<vmem>>, vector<8x128xbf16>
    tpu.vector_store %arg14[%43, %c0_19], %42 {strides = array<i32>} : memref<64x128xbf16, #tpu.memory_space<vmem>>, vector<8x128xbf16>,
    %c1_i32 = arith.constant 1 : i32
    %c8_i32_20 = arith.constant 8 : i32
    %45 = arith.muli %c1_i32, %c8_i32_20 : i32
    %46 = tpu.assume_multiple %45, 8 : i32
    %47 = arith.index_cast %46 : i32 to index
    %c0_21 = arith.constant 0 : index
    %48 = vector.load %arg15[%47, %c0_21] : memref<64x384xf32, #tpu.memory_space<vmem>>, vector<8x384xf32>
    %49 = arith.truncf %41 : vector<8x128xf32> to vector<8x128xbf16>
    %cst_22 = arith.constant dense<0.000000e+00> : vector<8x384xf32>
    %50 = tpu.matmul %49, %3, %cst_22 {dimension_numbers = #tpu.dot_dimension_numbers<[1], [0], [0], [1], [0, 0, 1, 1], [], []>} : vector<8x128xbf16>, vector<128x384xbf16>, vector<8x384xf32> -> vector<8x384xf32>
    %51 = vector.extract_strided_slice %48 {offsets = [0, 0], sizes = [8, 256], strides = [1, 1]} : vector<8x384xf32> to vector<8x256xf32>
    %52 = vector.extract_strided_slice %50 {offsets = [0, 0], sizes = [8, 256], strides = [1, 1]} : vector<8x384xf32> to vector<8x256xf32>
    %53 = arith.addf %51, %52 : vector<8x256xf32>
    %54 = arith.negf %53 : vector<8x256xf32>
    %55 = math.exp %54 : vector<8x256xf32>
    %cst_23 = arith.constant 1.000000e+00 : f32
    %56 = vector.broadcast %cst_23 : f32 to vector<8x256xf32>
    %57 = arith.addf %56, %55 : vector<8x256xf32>
    %58 = arith.divf %56, %57 : vector<8x256xf32>
    %59 = vector.extract_strided_slice %58 {offsets = [0, 0], sizes = [8, 128], strides = [1, 1]} : vector<8x256xf32> to vector<8x128xf32>
    %60 = vector.extract_strided_slice %58 {offsets = [0, 128], sizes = [8, 128], strides = [1, 1]} : vector<8x256xf32> to vector<8x128xf32>
    %61 = vector.extract_strided_slice %48 {offsets = [0, 256], sizes = [8, 128], strides = [1, 1]} : vector<8x384xf32> to vector<8x128xf32>
    %62 = vector.extract_strided_slice %50 {offsets = [0, 256], sizes = [8, 128], strides = [1, 1]} : vector<8x384xf32> to vector<8x128xf32>
    %63 = arith.addf %62, %6 : vector<8x128xf32>
    %64 = arith.mulf %59, %63 : vector<8x128xf32>
    %65 = arith.addf %61, %64 : vector<8x128xf32>
    %66 = math.tanh %65 : vector<8x128xf32>
    %67 = arith.subf %41, %66 : vector<8x128xf32>
    %68 = arith.mulf %60, %67 : vector<8x128xf32>
    %69 = arith.addf %66, %68 : vector<8x128xf32>
    %70 = arith.truncf %69 : vector<8x128xf32> to vector<8x128xbf16>
    %71 = arith.index_cast %46 : i32 to index
    %c0_24 = arith.constant 0 : index
    %72 = vector.load %arg14[%71, %c0_24] : memref<64x128xbf16, #tpu.memory_space<vmem>>, vector<8x128xbf16>
    tpu.vector_store %arg14[%71, %c0_24], %70 {strides = array<i32>} : memref<64x128xbf16, #tpu.memory_space<vmem>>, vector<8x128xbf16>,
    %c2_i32 = arith.constant 2 : i32
    %c8_i32_25 = arith.constant 8 : i32
    %73 = arith.muli %c2_i32, %c8_i32_25 : i32
    %74 = tpu.assume_multiple %73, 8 : i32
    %75 = arith.index_cast %74 : i32 to index
    %c0_26 = arith.constant 0 : index
    %76 = vector.load %arg15[%75, %c0_26] : memref<64x384xf32, #tpu.memory_space<vmem>>, vector<8x384xf32>
    %77 = arith.truncf %69 : vector<8x128xf32> to vector<8x128xbf16>
    %cst_27 = arith.constant dense<0.000000e+00> : vector<8x384xf32>
    %78 = tpu.matmul %77, %3, %cst_27 {dimension_numbers = #tpu.dot_dimension_numbers<[1], [0], [0], [1], [0, 0, 1, 1], [], []>} : vector<8x128xbf16>, vector<128x384xbf16>, vector<8x384xf32> -> vector<8x384xf32>
    %79 = vector.extract_strided_slice %76 {offsets = [0, 0], sizes = [8, 256], strides = [1, 1]} : vector<8x384xf32> to vector<8x256xf32>
    %80 = vector.extract_strided_slice %78 {offsets = [0, 0], sizes = [8, 256], strides = [1, 1]} : vector<8x384xf32> to vector<8x256xf32>
    %81 = arith.addf %79, %80 : vector<8x256xf32>
    %82 = arith.negf %81 : vector<8x256xf32>
    %83 = math.exp %82 : vector<8x256xf32>
    %cst_28 = arith.constant 1.000000e+00 : f32
    %84 = vector.broadcast %cst_28 : f32 to vector<8x256xf32>
    %85 = arith.addf %84, %83 : vector<8x256xf32>
    %86 = arith.divf %84, %85 : vector<8x256xf32>
    %87 = vector.extract_strided_slice %86 {offsets = [0, 0], sizes = [8, 128], strides = [1, 1]} : vector<8x256xf32> to vector<8x128xf32>
    %88 = vector.extract_strided_slice %86 {offsets = [0, 128], sizes = [8, 128], strides = [1, 1]} : vector<8x256xf32> to vector<8x128xf32>
    %89 = vector.extract_strided_slice %76 {offsets = [0, 256], sizes = [8, 128], strides = [1, 1]} : vector<8x384xf32> to vector<8x128xf32>
    %90 = vector.extract_strided_slice %78 {offsets = [0, 256], sizes = [8, 128], strides = [1, 1]} : vector<8x384xf32> to vector<8x128xf32>
    %91 = arith.addf %90, %6 : vector<8x128xf32>
    %92 = arith.mulf %87, %91 : vector<8x128xf32>
    %93 = arith.addf %89, %92 : vector<8x128xf32>
    %94 = math.tanh %93 : vector<8x128xf32>
    %95 = arith.subf %69, %94 : vector<8x128xf32>
    %96 = arith.mulf %88, %95 : vector<8x128xf32>
    %97 = arith.addf %94, %96 : vector<8x128xf32>
    %98 = arith.truncf %97 : vector<8x128xf32> to vector<8x128xbf16>
    %99 = arith.index_cast %74 : i32 to index
    %c0_29 = arith.constant 0 : index
    %100 = vector.load %arg14[%99, %c0_29] : memref<64x128xbf16, #tpu.memory_space<vmem>>, vector<8x128xbf16>
    tpu.vector_store %arg14[%99, %c0_29], %98 {strides = array<i32>} : memref<64x128xbf16, #tpu.memory_space<vmem>>, vector<8x128xbf16>,
    %c3_i32 = arith.constant 3 : i32
    %c8_i32_30 = arith.constant 8 : i32
    %101 = arith.muli %c3_i32, %c8_i32_30 : i32
    %102 = tpu.assume_multiple %101, 8 : i32
    %103 = arith.index_cast %102 : i32 to index
    %c0_31 = arith.constant 0 : index
    %104 = vector.load %arg15[%103, %c0_31] : memref<64x384xf32, #tpu.memory_space<vmem>>, vector<8x384xf32>
    %105 = arith.truncf %97 : vector<8x128xf32> to vector<8x128xbf16>
    %cst_32 = arith.constant dense<0.000000e+00> : vector<8x384xf32>
    %106 = tpu.matmul %105, %3, %cst_32 {dimension_numbers = #tpu.dot_dimension_numbers<[1], [0], [0], [1], [0, 0, 1, 1], [], []>} : vector<8x128xbf16>, vector<128x384xbf16>, vector<8x384xf32> -> vector<8x384xf32>
    %107 = vector.extract_strided_slice %104 {offsets = [0, 0], sizes = [8, 256], strides = [1, 1]} : vector<8x384xf32> to vector<8x256xf32>
    %108 = vector.extract_strided_slice %106 {offsets = [0, 0], sizes = [8, 256], strides = [1, 1]} : vector<8x384xf32> to vector<8x256xf32>
    %109 = arith.addf %107, %108 : vector<8x256xf32>
    %110 = arith.negf %109 : vector<8x256xf32>
    %111 = math.exp %110 : vector<8x256xf32>
    %cst_33 = arith.constant 1.000000e+00 : f32
    %112 = vector.broadcast %cst_33 : f32 to vector<8x256xf32>
    %113 = arith.addf %112, %111 : vector<8x256xf32>
    %114 = arith.divf %112, %113 : vector<8x256xf32>
    %115 = vector.extract_strided_slice %114 {offsets = [0, 0], sizes = [8, 128], strides = [1, 1]} : vector<8x256xf32> to vector<8x128xf32>
    %116 = vector.extract_strided_slice %114 {offsets = [0, 128], sizes = [8, 128], strides = [1, 1]} : vector<8x256xf32> to vector<8x128xf32>
    %117 = vector.extract_strided_slice %104 {offsets = [0, 256], sizes = [8, 128], strides = [1, 1]} : vector<8x384xf32> to vector<8x128xf32>
    %118 = vector.extract_strided_slice %106 {offsets = [0, 256], sizes = [8, 128], strides = [1, 1]} : vector<8x384xf32> to vector<8x128xf32>
    %119 = arith.addf %118, %6 : vector<8x128xf32>
    %120 = arith.mulf %115, %119 : vector<8x128xf32>
    %121 = arith.addf %117, %120 : vector<8x128xf32>
    %122 = math.tanh %121 : vector<8x128xf32>
    %123 = arith.subf %97, %122 : vector<8x128xf32>
    %124 = arith.mulf %116, %123 : vector<8x128xf32>
    %125 = arith.addf %122, %124 : vector<8x128xf32>
    %126 = arith.truncf %125 : vector<8x128xf32> to vector<8x128xbf16>
    %127 = arith.index_cast %102 : i32 to index
    %c0_34 = arith.constant 0 : index
    %128 = vector.load %arg14[%127, %c0_34] : memref<64x128xbf16, #tpu.memory_space<vmem>>, vector<8x128xbf16>
    tpu.vector_store %arg14[%127, %c0_34], %126 {strides = array<i32>} : memref<64x128xbf16, #tpu.memory_space<vmem>>, vector<8x128xbf16>,
    %c4_i32 = arith.constant 4 : i32
    %c8_i32_35 = arith.constant 8 : i32
    %129 = arith.muli %c4_i32, %c8_i32_35 : i32
    %130 = tpu.assume_multiple %129, 8 : i32
    %131 = arith.index_cast %130 : i32 to index
    %c0_36 = arith.constant 0 : index
    %132 = vector.load %arg15[%131, %c0_36] : memref<64x384xf32, #tpu.memory_space<vmem>>, vector<8x384xf32>
    %133 = arith.truncf %125 : vector<8x128xf32> to vector<8x128xbf16>
    %cst_37 = arith.constant dense<0.000000e+00> : vector<8x384xf32>
    %134 = tpu.matmul %133, %3, %cst_37 {dimension_numbers = #tpu.dot_dimension_numbers<[1], [0], [0], [1], [0, 0, 1, 1], [], []>} : vector<8x128xbf16>, vector<128x384xbf16>, vector<8x384xf32> -> vector<8x384xf32>
    %135 = vector.extract_strided_slice %132 {offsets = [0, 0], sizes = [8, 256], strides = [1, 1]} : vector<8x384xf32> to vector<8x256xf32>
    %136 = vector.extract_strided_slice %134 {offsets = [0, 0], sizes = [8, 256], strides = [1, 1]} : vector<8x384xf32> to vector<8x256xf32>
    %137 = arith.addf %135, %136 : vector<8x256xf32>
    %138 = arith.negf %137 : vector<8x256xf32>
    %139 = math.exp %138 : vector<8x256xf32>
    %cst_38 = arith.constant 1.000000e+00 : f32
    %140 = vector.broadcast %cst_38 : f32 to vector<8x256xf32>
    %141 = arith.addf %140, %139 : vector<8x256xf32>
    %142 = arith.divf %140, %141 : vector<8x256xf32>
    %143 = vector.extract_strided_slice %142 {offsets = [0, 0], sizes = [8, 128], strides = [1, 1]} : vector<8x256xf32> to vector<8x128xf32>
    %144 = vector.extract_strided_slice %142 {offsets = [0, 128], sizes = [8, 128], strides = [1, 1]} : vector<8x256xf32> to vector<8x128xf32>
    %145 = vector.extract_strided_slice %132 {offsets = [0, 256], sizes = [8, 128], strides = [1, 1]} : vector<8x384xf32> to vector<8x128xf32>
    %146 = vector.extract_strided_slice %134 {offsets = [0, 256], sizes = [8, 128], strides = [1, 1]} : vector<8x384xf32> to vector<8x128xf32>
    %147 = arith.addf %146, %6 : vector<8x128xf32>
    %148 = arith.mulf %143, %147 : vector<8x128xf32>
    %149 = arith.addf %145, %148 : vector<8x128xf32>
    %150 = math.tanh %149 : vector<8x128xf32>
    %151 = arith.subf %125, %150 : vector<8x128xf32>
    %152 = arith.mulf %144, %151 : vector<8x128xf32>
    %153 = arith.addf %150, %152 : vector<8x128xf32>
    %154 = arith.truncf %153 : vector<8x128xf32> to vector<8x128xbf16>
    %155 = arith.index_cast %130 : i32 to index
    %c0_39 = arith.constant 0 : index
    %156 = vector.load %arg14[%155, %c0_39] : memref<64x128xbf16, #tpu.memory_space<vmem>>, vector<8x128xbf16>
    tpu.vector_store %arg14[%155, %c0_39], %154 {strides = array<i32>} : memref<64x128xbf16, #tpu.memory_space<vmem>>, vector<8x128xbf16>,
    %c5_i32 = arith.constant 5 : i32
    %c8_i32_40 = arith.constant 8 : i32
    %157 = arith.muli %c5_i32, %c8_i32_40 : i32
    %158 = tpu.assume_multiple %157, 8 : i32
    %159 = arith.index_cast %158 : i32 to index
    %c0_41 = arith.constant 0 : index
    %160 = vector.load %arg15[%159, %c0_41] : memref<64x384xf32, #tpu.memory_space<vmem>>, vector<8x384xf32>
    %161 = arith.truncf %153 : vector<8x128xf32> to vector<8x128xbf16>
    %cst_42 = arith.constant dense<0.000000e+00> : vector<8x384xf32>
    %162 = tpu.matmul %161, %3, %cst_42 {dimension_numbers = #tpu.dot_dimension_numbers<[1], [0], [0], [1], [0, 0, 1, 1], [], []>} : vector<8x128xbf16>, vector<128x384xbf16>, vector<8x384xf32> -> vector<8x384xf32>
    %163 = vector.extract_strided_slice %160 {offsets = [0, 0], sizes = [8, 256], strides = [1, 1]} : vector<8x384xf32> to vector<8x256xf32>
    %164 = vector.extract_strided_slice %162 {offsets = [0, 0], sizes = [8, 256], strides = [1, 1]} : vector<8x384xf32> to vector<8x256xf32>
    %165 = arith.addf %163, %164 : vector<8x256xf32>
    %166 = arith.negf %165 : vector<8x256xf32>
    %167 = math.exp %166 : vector<8x256xf32>
    %cst_43 = arith.constant 1.000000e+00 : f32
    %168 = vector.broadcast %cst_43 : f32 to vector<8x256xf32>
    %169 = arith.addf %168, %167 : vector<8x256xf32>
    %170 = arith.divf %168, %169 : vector<8x256xf32>
    %171 = vector.extract_strided_slice %170 {offsets = [0, 0], sizes = [8, 128], strides = [1, 1]} : vector<8x256xf32> to vector<8x128xf32>
    %172 = vector.extract_strided_slice %170 {offsets = [0, 128], sizes = [8, 128], strides = [1, 1]} : vector<8x256xf32> to vector<8x128xf32>
    %173 = vector.extract_strided_slice %160 {offsets = [0, 256], sizes = [8, 128], strides = [1, 1]} : vector<8x384xf32> to vector<8x128xf32>
    %174 = vector.extract_strided_slice %162 {offsets = [0, 256], sizes = [8, 128], strides = [1, 1]} : vector<8x384xf32> to vector<8x128xf32>
    %175 = arith.addf %174, %6 : vector<8x128xf32>
    %176 = arith.mulf %171, %175 : vector<8x128xf32>
    %177 = arith.addf %173, %176 : vector<8x128xf32>
    %178 = math.tanh %177 : vector<8x128xf32>
    %179 = arith.subf %153, %178 : vector<8x128xf32>
    %180 = arith.mulf %172, %179 : vector<8x128xf32>
    %181 = arith.addf %178, %180 : vector<8x128xf32>
    %182 = arith.truncf %181 : vector<8x128xf32> to vector<8x128xbf16>
    %183 = arith.index_cast %158 : i32 to index
    %c0_44 = arith.constant 0 : index
    %184 = vector.load %arg14[%183, %c0_44] : memref<64x128xbf16, #tpu.memory_space<vmem>>, vector<8x128xbf16>
    tpu.vector_store %arg14[%183, %c0_44], %182 {strides = array<i32>} : memref<64x128xbf16, #tpu.memory_space<vmem>>, vector<8x128xbf16>,
    %c6_i32 = arith.constant 6 : i32
    %c8_i32_45 = arith.constant 8 : i32
    %185 = arith.muli %c6_i32, %c8_i32_45 : i32
    %186 = tpu.assume_multiple %185, 8 : i32
    %187 = arith.index_cast %186 : i32 to index
    %c0_46 = arith.constant 0 : index
    %188 = vector.load %arg15[%187, %c0_46] : memref<64x384xf32, #tpu.memory_space<vmem>>, vector<8x384xf32>
    %189 = arith.truncf %181 : vector<8x128xf32> to vector<8x128xbf16>
    %cst_47 = arith.constant dense<0.000000e+00> : vector<8x384xf32>
    %190 = tpu.matmul %189, %3, %cst_47 {dimension_numbers = #tpu.dot_dimension_numbers<[1], [0], [0], [1], [0, 0, 1, 1], [], []>} : vector<8x128xbf16>, vector<128x384xbf16>, vector<8x384xf32> -> vector<8x384xf32>
    %191 = vector.extract_strided_slice %188 {offsets = [0, 0], sizes = [8, 256], strides = [1, 1]} : vector<8x384xf32> to vector<8x256xf32>
    %192 = vector.extract_strided_slice %190 {offsets = [0, 0], sizes = [8, 256], strides = [1, 1]} : vector<8x384xf32> to vector<8x256xf32>
    %193 = arith.addf %191, %192 : vector<8x256xf32>
    %194 = arith.negf %193 : vector<8x256xf32>
    %195 = math.exp %194 : vector<8x256xf32>
    %cst_48 = arith.constant 1.000000e+00 : f32
    %196 = vector.broadcast %cst_48 : f32 to vector<8x256xf32>
    %197 = arith.addf %196, %195 : vector<8x256xf32>
    %198 = arith.divf %196, %197 : vector<8x256xf32>
    %199 = vector.extract_strided_slice %198 {offsets = [0, 0], sizes = [8, 128], strides = [1, 1]} : vector<8x256xf32> to vector<8x128xf32>
    %200 = vector.extract_strided_slice %198 {offsets = [0, 128], sizes = [8, 128], strides = [1, 1]} : vector<8x256xf32> to vector<8x128xf32>
    %201 = vector.extract_strided_slice %188 {offsets = [0, 256], sizes = [8, 128], strides = [1, 1]} : vector<8x384xf32> to vector<8x128xf32>
    %202 = vector.extract_strided_slice %190 {offsets = [0, 256], sizes = [8, 128], strides = [1, 1]} : vector<8x384xf32> to vector<8x128xf32>
    %203 = arith.addf %202, %6 : vector<8x128xf32>
    %204 = arith.mulf %199, %203 : vector<8x128xf32>
    %205 = arith.addf %201, %204 : vector<8x128xf32>
    %206 = math.tanh %205 : vector<8x128xf32>
    %207 = arith.subf %181, %206 : vector<8x128xf32>
    %208 = arith.mulf %200, %207 : vector<8x128xf32>
    %209 = arith.addf %206, %208 : vector<8x128xf32>
    %210 = arith.truncf %209 : vector<8x128xf32> to vector<8x128xbf16>
    %211 = arith.index_cast %186 : i32 to index
    %c0_49 = arith.constant 0 : index
    %212 = vector.load %arg14[%211, %c0_49] : memref<64x128xbf16, #tpu.memory_space<vmem>>, vector<8x128xbf16>
    tpu.vector_store %arg14[%211, %c0_49], %210 {strides = array<i32>} : memref<64x128xbf16, #tpu.memory_space<vmem>>, vector<8x128xbf16>,
    %c7_i32 = arith.constant 7 : i32
    %c8_i32_50 = arith.constant 8 : i32
    %213 = arith.muli %c7_i32, %c8_i32_50 : i32
    %214 = tpu.assume_multiple %213, 8 : i32
    %215 = arith.index_cast %214 : i32 to index
    %c0_51 = arith.constant 0 : index
    %216 = vector.load %arg15[%215, %c0_51] : memref<64x384xf32, #tpu.memory_space<vmem>>, vector<8x384xf32>
    %217 = arith.truncf %209 : vector<8x128xf32> to vector<8x128xbf16>
    %cst_52 = arith.constant dense<0.000000e+00> : vector<8x384xf32>
    %218 = tpu.matmul %217, %3, %cst_52 {dimension_numbers = #tpu.dot_dimension_numbers<[1], [0], [0], [1], [0, 0, 1, 1], [], []>} : vector<8x128xbf16>, vector<128x384xbf16>, vector<8x384xf32> -> vector<8x384xf32>
    %219 = vector.extract_strided_slice %216 {offsets = [0, 0], sizes = [8, 256], strides = [1, 1]} : vector<8x384xf32> to vector<8x256xf32>
    %220 = vector.extract_strided_slice %218 {offsets = [0, 0], sizes = [8, 256], strides = [1, 1]} : vector<8x384xf32> to vector<8x256xf32>
    %221 = arith.addf %219, %220 : vector<8x256xf32>
    %222 = arith.negf %221 : vector<8x256xf32>
    %223 = math.exp %222 : vector<8x256xf32>
    %cst_53 = arith.constant 1.000000e+00 : f32
    %224 = vector.broadcast %cst_53 : f32 to vector<8x256xf32>
    %225 = arith.addf %224, %223 : vector<8x256xf32>
    %226 = arith.divf %224, %225 : vector<8x256xf32>
    %227 = vector.extract_strided_slice %226 {offsets = [0, 0], sizes = [8, 128], strides = [1, 1]} : vector<8x256xf32> to vector<8x128xf32>
    %228 = vector.extract_strided_slice %226 {offsets = [0, 128], sizes = [8, 128], strides = [1, 1]} : vector<8x256xf32> to vector<8x128xf32>
    %229 = vector.extract_strided_slice %216 {offsets = [0, 256], sizes = [8, 128], strides = [1, 1]} : vector<8x384xf32> to vector<8x128xf32>
    %230 = vector.extract_strided_slice %218 {offsets = [0, 256], sizes = [8, 128], strides = [1, 1]} : vector<8x384xf32> to vector<8x128xf32>
    %231 = arith.addf %230, %6 : vector<8x128xf32>
    %232 = arith.mulf %227, %231 : vector<8x128xf32>
    %233 = arith.addf %229, %232 : vector<8x128xf32>
    %234 = math.tanh %233 : vector<8x128xf32>
    %235 = arith.subf %209, %234 : vector<8x128xf32>
    %236 = arith.mulf %228, %235 : vector<8x128xf32>
    %237 = arith.addf %234, %236 : vector<8x128xf32>
    %238 = arith.truncf %237 : vector<8x128xf32> to vector<8x128xbf16>
    %239 = arith.index_cast %214 : i32 to index
    %c0_54 = arith.constant 0 : index
    %240 = vector.load %arg14[%239, %c0_54] : memref<64x128xbf16, #tpu.memory_space<vmem>>, vector<8x128xbf16>
    tpu.vector_store %arg14[%239, %c0_54], %238 {strides = array<i32>} : memref<64x128xbf16, #tpu.memory_space<vmem>>, vector<8x128xbf16>,
    %c8_i32_55 = arith.constant 8 : i32
    %c0_56 = arith.constant 0 : index
    %c0_57 = arith.constant 0 : index
    %c0_58 = arith.constant 0 : index
    %241 = vector.load %arg13[%c0_56, %c0_57, %c0_58] : memref<2x8x128xf32, #tpu.memory_space<vmem>>, vector<1x8x128xf32>
    %242 = vector.shape_cast %241 : vector<1x8x128xf32> to vector<8x128xf32>
    %243 = vector.shape_cast %237 : vector<8x128xf32> to vector<1x8x128xf32>
    tpu.vector_store %arg13[%c0_56, %c0_57, %c0_58], %243 {strides = array<i32>} : memref<2x8x128xf32, #tpu.memory_space<vmem>>, vector<1x8x128xf32>,
    %c0_59 = arith.constant 0 : index
    %c0_60 = arith.constant 0 : index
    %244 = vector.load %arg7[%c0_59, %c0_60] : memref<128x384xbf16, #tpu.memory_space<vmem>>, vector<128x384xbf16>
    %c0_61 = arith.constant 0 : index
    %c0_62 = arith.constant 0 : index
    %245 = vector.load %arg9[%c0_61, %c0_62] : memref<1x128xf32, #tpu.memory_space<vmem>>, vector<1x128xf32>
    %246 = vector.shape_cast %245 : vector<1x128xf32> to vector<1x128xf32>
    %247 = vector.broadcast %246 : vector<1x128xf32> to vector<8x128xf32>
    %c0_63 = arith.constant 0 : index
    %c0_64 = arith.constant 0 : index
    %248 = vector.load %arg14[%c0_63, %c0_64] : memref<64x128xbf16, #tpu.memory_space<vmem>>, vector<64x128xbf16>
    %c0_65 = arith.constant 0 : index
    %c0_66 = arith.constant 0 : index
    %249 = vector.load %arg6[%c0_65, %c0_66] : memref<128x384xbf16, #tpu.memory_space<vmem>>, vector<128x384xbf16>
    %cst_67 = arith.constant dense<0.000000e+00> : vector<64x384xf32>
    %250 = tpu.matmul %248, %249, %cst_67 {dimension_numbers = #tpu.dot_dimension_numbers<[1], [0], [0], [1], [0, 0, 1, 1], [], []>} : vector<64x128xbf16>, vector<128x384xbf16>, vector<64x384xf32> -> vector<64x384xf32>
    %c0_68 = arith.constant 0 : index
    %c0_69 = arith.constant 0 : index
    %251 = vector.load %arg8[%c0_68, %c0_69] : memref<1x384xf32, #tpu.memory_space<vmem>>, vector<1x384xf32>
    %252 = vector.broadcast %251 : vector<1x384xf32> to vector<64x384xf32>
    %253 = arith.addf %250, %252 : vector<64x384xf32>
    %c0_70 = arith.constant 0 : index
    %c0_71 = arith.constant 0 : index
    %254 = vector.load %arg15[%c0_70, %c0_71] : memref<64x384xf32, #tpu.memory_space<vmem>>, vector<64x384xf32>
    tpu.vector_store %arg15[%c0_70, %c0_71], %253 {strides = array<i32>} : memref<64x384xf32, #tpu.memory_space<vmem>>, vector<64x384xf32>,
    %c1 = arith.constant 1 : index
    %c0_72 = arith.constant 0 : index
    %c0_73 = arith.constant 0 : index
    %255 = vector.load %arg13[%c1, %c0_72, %c0_73] : memref<2x8x128xf32, #tpu.memory_space<vmem>>, vector<1x8x128xf32>
    %256 = vector.shape_cast %255 : vector<1x8x128xf32> to vector<8x128xf32>
    %c0_i32_74 = arith.constant 0 : i32
    %c8_i32_75 = arith.constant 8 : i32
    %257 = arith.muli %c0_i32_74, %c8_i32_75 : i32
    %258 = tpu.assume_multiple %257, 8 : i32
    %259 = arith.index_cast %258 : i32 to index
    %c0_76 = arith.constant 0 : index
    %260 = vector.load %arg15[%259, %c0_76] : memref<64x384xf32, #tpu.memory_space<vmem>>, vector<8x384xf32>
    %261 = arith.truncf %256 : vector<8x128xf32> to vector<8x128xbf16>
    %cst_77 = arith.constant dense<0.000000e+00> : vector<8x384xf32>
    %262 = tpu.matmul %261, %244, %cst_77 {dimension_numbers = #tpu.dot_dimension_numbers<[1], [0], [0], [1], [0, 0, 1, 1], [], []>} : vector<8x128xbf16>, vector<128x384xbf16>, vector<8x384xf32> -> vector<8x384xf32>
    %263 = vector.extract_strided_slice %260 {offsets = [0, 0], sizes = [8, 256], strides = [1, 1]} : vector<8x384xf32> to vector<8x256xf32>
    %264 = vector.extract_strided_slice %262 {offsets = [0, 0], sizes = [8, 256], strides = [1, 1]} : vector<8x384xf32> to vector<8x256xf32>
    %265 = arith.addf %263, %264 : vector<8x256xf32>
    %266 = arith.negf %265 : vector<8x256xf32>
    %267 = math.exp %266 : vector<8x256xf32>
    %cst_78 = arith.constant 1.000000e+00 : f32
    %268 = vector.broadcast %cst_78 : f32 to vector<8x256xf32>
    %269 = arith.addf %268, %267 : vector<8x256xf32>
    %270 = arith.divf %268, %269 : vector<8x256xf32>
    %271 = vector.extract_strided_slice %270 {offsets = [0, 0], sizes = [8, 128], strides = [1, 1]} : vector<8x256xf32> to vector<8x128xf32>
    %272 = vector.extract_strided_slice %270 {offsets = [0, 128], sizes = [8, 128], strides = [1, 1]} : vector<8x256xf32> to vector<8x128xf32>
    %273 = vector.extract_strided_slice %260 {offsets = [0, 256], sizes = [8, 128], strides = [1, 1]} : vector<8x384xf32> to vector<8x128xf32>
    %274 = vector.extract_strided_slice %262 {offsets = [0, 256], sizes = [8, 128], strides = [1, 1]} : vector<8x384xf32> to vector<8x128xf32>
    %275 = arith.addf %274, %247 : vector<8x128xf32>
    %276 = arith.mulf %271, %275 : vector<8x128xf32>
    %277 = arith.addf %273, %276 : vector<8x128xf32>
    %278 = math.tanh %277 : vector<8x128xf32>
    %279 = arith.subf %256, %278 : vector<8x128xf32>
    %280 = arith.mulf %272, %279 : vector<8x128xf32>
    %281 = arith.addf %278, %280 : vector<8x128xf32>
    %c1_i32_79 = arith.constant 1 : i32
    %c8_i32_80 = arith.constant 8 : i32
    %282 = arith.muli %c1_i32_79, %c8_i32_80 : i32
    %283 = tpu.assume_multiple %282, 8 : i32
    %284 = arith.index_cast %283 : i32 to index
    %c0_81 = arith.constant 0 : index
    %285 = vector.load %arg15[%284, %c0_81] : memref<64x384xf32, #tpu.memory_space<vmem>>, vector<8x384xf32>
    %286 = arith.truncf %281 : vector<8x128xf32> to vector<8x128xbf16>
    %cst_82 = arith.constant dense<0.000000e+00> : vector<8x384xf32>
    %287 = tpu.matmul %286, %244, %cst_82 {dimension_numbers = #tpu.dot_dimension_numbers<[1], [0], [0], [1], [0, 0, 1, 1], [], []>} : vector<8x128xbf16>, vector<128x384xbf16>, vector<8x384xf32> -> vector<8x384xf32>
    %288 = vector.extract_strided_slice %285 {offsets = [0, 0], sizes = [8, 256], strides = [1, 1]} : vector<8x384xf32> to vector<8x256xf32>
    %289 = vector.extract_strided_slice %287 {offsets = [0, 0], sizes = [8, 256], strides = [1, 1]} : vector<8x384xf32> to vector<8x256xf32>
    %290 = arith.addf %288, %289 : vector<8x256xf32>
    %291 = arith.negf %290 : vector<8x256xf32>
    %292 = math.exp %291 : vector<8x256xf32>
    %cst_83 = arith.constant 1.000000e+00 : f32
    %293 = vector.broadcast %cst_83 : f32 to vector<8x256xf32>
    %294 = arith.addf %293, %292 : vector<8x256xf32>
    %295 = arith.divf %293, %294 : vector<8x256xf32>
    %296 = vector.extract_strided_slice %295 {offsets = [0, 0], sizes = [8, 128], strides = [1, 1]} : vector<8x256xf32> to vector<8x128xf32>
    %297 = vector.extract_strided_slice %295 {offsets = [0, 128], sizes = [8, 128], strides = [1, 1]} : vector<8x256xf32> to vector<8x128xf32>
    %298 = vector.extract_strided_slice %285 {offsets = [0, 256], sizes = [8, 128], strides = [1, 1]} : vector<8x384xf32> to vector<8x128xf32>
    %299 = vector.extract_strided_slice %287 {offsets = [0, 256], sizes = [8, 128], strides = [1, 1]} : vector<8x384xf32> to vector<8x128xf32>
    %300 = arith.addf %299, %247 : vector<8x128xf32>
    %301 = arith.mulf %296, %300 : vector<8x128xf32>
    %302 = arith.addf %298, %301 : vector<8x128xf32>
    %303 = math.tanh %302 : vector<8x128xf32>
    %304 = arith.subf %281, %303 : vector<8x128xf32>
    %305 = arith.mulf %297, %304 : vector<8x128xf32>
    %306 = arith.addf %303, %305 : vector<8x128xf32>
    %c2_i32_84 = arith.constant 2 : i32
    %c8_i32_85 = arith.constant 8 : i32
    %307 = arith.muli %c2_i32_84, %c8_i32_85 : i32
    %308 = tpu.assume_multiple %307, 8 : i32
    %309 = arith.index_cast %308 : i32 to index
    %c0_86 = arith.constant 0 : index
    %310 = vector.load %arg15[%309, %c0_86] : memref<64x384xf32, #tpu.memory_space<vmem>>, vector<8x384xf32>
    %311 = arith.truncf %306 : vector<8x128xf32> to vector<8x128xbf16>
    %cst_87 = arith.constant dense<0.000000e+00> : vector<8x384xf32>
    %312 = tpu.matmul %311, %244, %cst_87 {dimension_numbers = #tpu.dot_dimension_numbers<[1], [0], [0], [1], [0, 0, 1, 1], [], []>} : vector<8x128xbf16>, vector<128x384xbf16>, vector<8x384xf32> -> vector<8x384xf32>
    %313 = vector.extract_strided_slice %310 {offsets = [0, 0], sizes = [8, 256], strides = [1, 1]} : vector<8x384xf32> to vector<8x256xf32>
    %314 = vector.extract_strided_slice %312 {offsets = [0, 0], sizes = [8, 256], strides = [1, 1]} : vector<8x384xf32> to vector<8x256xf32>
    %315 = arith.addf %313, %314 : vector<8x256xf32>
    %316 = arith.negf %315 : vector<8x256xf32>
    %317 = math.exp %316 : vector<8x256xf32>
    %cst_88 = arith.constant 1.000000e+00 : f32
    %318 = vector.broadcast %cst_88 : f32 to vector<8x256xf32>
    %319 = arith.addf %318, %317 : vector<8x256xf32>
    %320 = arith.divf %318, %319 : vector<8x256xf32>
    %321 = vector.extract_strided_slice %320 {offsets = [0, 0], sizes = [8, 128], strides = [1, 1]} : vector<8x256xf32> to vector<8x128xf32>
    %322 = vector.extract_strided_slice %320 {offsets = [0, 128], sizes = [8, 128], strides = [1, 1]} : vector<8x256xf32> to vector<8x128xf32>
    %323 = vector.extract_strided_slice %310 {offsets = [0, 256], sizes = [8, 128], strides = [1, 1]} : vector<8x384xf32> to vector<8x128xf32>
    %324 = vector.extract_strided_slice %312 {offsets = [0, 256], sizes = [8, 128], strides = [1, 1]} : vector<8x384xf32> to vector<8x128xf32>
    %325 = arith.addf %324, %247 : vector<8x128xf32>
    %326 = arith.mulf %321, %325 : vector<8x128xf32>
    %327 = arith.addf %323, %326 : vector<8x128xf32>
    %328 = math.tanh %327 : vector<8x128xf32>
    %329 = arith.subf %306, %328 : vector<8x128xf32>
    %330 = arith.mulf %322, %329 : vector<8x128xf32>
    %331 = arith.addf %328, %330 : vector<8x128xf32>
    %c3_i32_89 = arith.constant 3 : i32
    %c8_i32_90 = arith.constant 8 : i32
    %332 = arith.muli %c3_i32_89, %c8_i32_90 : i32
    %333 = tpu.assume_multiple %332, 8 : i32
    %334 = arith.index_cast %333 : i32 to index
    %c0_91 = arith.constant 0 : index
    %335 = vector.load %arg15[%334, %c0_91] : memref<64x384xf32, #tpu.memory_space<vmem>>, vector<8x384xf32>
    %336 = arith.truncf %331 : vector<8x128xf32> to vector<8x128xbf16>
    %cst_92 = arith.constant dense<0.000000e+00> : vector<8x384xf32>
    %337 = tpu.matmul %336, %244, %cst_92 {dimension_numbers = #tpu.dot_dimension_numbers<[1], [0], [0], [1], [0, 0, 1, 1], [], []>} : vector<8x128xbf16>, vector<128x384xbf16>, vector<8x384xf32> -> vector<8x384xf32>
    %338 = vector.extract_strided_slice %335 {offsets = [0, 0], sizes = [8, 256], strides = [1, 1]} : vector<8x384xf32> to vector<8x256xf32>
    %339 = vector.extract_strided_slice %337 {offsets = [0, 0], sizes = [8, 256], strides = [1, 1]} : vector<8x384xf32> to vector<8x256xf32>
    %340 = arith.addf %338, %339 : vector<8x256xf32>
    %341 = arith.negf %340 : vector<8x256xf32>
    %342 = math.exp %341 : vector<8x256xf32>
    %cst_93 = arith.constant 1.000000e+00 : f32
    %343 = vector.broadcast %cst_93 : f32 to vector<8x256xf32>
    %344 = arith.addf %343, %342 : vector<8x256xf32>
    %345 = arith.divf %343, %344 : vector<8x256xf32>
    %346 = vector.extract_strided_slice %345 {offsets = [0, 0], sizes = [8, 128], strides = [1, 1]} : vector<8x256xf32> to vector<8x128xf32>
    %347 = vector.extract_strided_slice %345 {offsets = [0, 128], sizes = [8, 128], strides = [1, 1]} : vector<8x256xf32> to vector<8x128xf32>
    %348 = vector.extract_strided_slice %335 {offsets = [0, 256], sizes = [8, 128], strides = [1, 1]} : vector<8x384xf32> to vector<8x128xf32>
    %349 = vector.extract_strided_slice %337 {offsets = [0, 256], sizes = [8, 128], strides = [1, 1]} : vector<8x384xf32> to vector<8x128xf32>
    %350 = arith.addf %349, %247 : vector<8x128xf32>
    %351 = arith.mulf %346, %350 : vector<8x128xf32>
    %352 = arith.addf %348, %351 : vector<8x128xf32>
    %353 = math.tanh %352 : vector<8x128xf32>
    %354 = arith.subf %331, %353 : vector<8x128xf32>
    %355 = arith.mulf %347, %354 : vector<8x128xf32>
    %356 = arith.addf %353, %355 : vector<8x128xf32>
    %c4_i32_94 = arith.constant 4 : i32
    %c8_i32_95 = arith.constant 8 : i32
    %357 = arith.muli %c4_i32_94, %c8_i32_95 : i32
    %358 = tpu.assume_multiple %357, 8 : i32
    %359 = arith.index_cast %358 : i32 to index
    %c0_96 = arith.constant 0 : index
    %360 = vector.load %arg15[%359, %c0_96] : memref<64x384xf32, #tpu.memory_space<vmem>>, vector<8x384xf32>
    %361 = arith.truncf %356 : vector<8x128xf32> to vector<8x128xbf16>
    %cst_97 = arith.constant dense<0.000000e+00> : vector<8x384xf32>
    %362 = tpu.matmul %361, %244, %cst_97 {dimension_numbers = #tpu.dot_dimension_numbers<[1], [0], [0], [1], [0, 0, 1, 1], [], []>} : vector<8x128xbf16>, vector<128x384xbf16>, vector<8x384xf32> -> vector<8x384xf32>
    %363 = vector.extract_strided_slice %360 {offsets = [0, 0], sizes = [8, 256], strides = [1, 1]} : vector<8x384xf32> to vector<8x256xf32>
    %364 = vector.extract_strided_slice %362 {offsets = [0, 0], sizes = [8, 256], strides = [1, 1]} : vector<8x384xf32> to vector<8x256xf32>
    %365 = arith.addf %363, %364 : vector<8x256xf32>
    %366 = arith.negf %365 : vector<8x256xf32>
    %367 = math.exp %366 : vector<8x256xf32>
    %cst_98 = arith.constant 1.000000e+00 : f32
    %368 = vector.broadcast %cst_98 : f32 to vector<8x256xf32>
    %369 = arith.addf %368, %367 : vector<8x256xf32>
    %370 = arith.divf %368, %369 : vector<8x256xf32>
    %371 = vector.extract_strided_slice %370 {offsets = [0, 0], sizes = [8, 128], strides = [1, 1]} : vector<8x256xf32> to vector<8x128xf32>
    %372 = vector.extract_strided_slice %370 {offsets = [0, 128], sizes = [8, 128], strides = [1, 1]} : vector<8x256xf32> to vector<8x128xf32>
    %373 = vector.extract_strided_slice %360 {offsets = [0, 256], sizes = [8, 128], strides = [1, 1]} : vector<8x384xf32> to vector<8x128xf32>
    %374 = vector.extract_strided_slice %362 {offsets = [0, 256], sizes = [8, 128], strides = [1, 1]} : vector<8x384xf32> to vector<8x128xf32>
    %375 = arith.addf %374, %247 : vector<8x128xf32>
    %376 = arith.mulf %371, %375 : vector<8x128xf32>
    %377 = arith.addf %373, %376 : vector<8x128xf32>
    %378 = math.tanh %377 : vector<8x128xf32>
    %379 = arith.subf %356, %378 : vector<8x128xf32>
    %380 = arith.mulf %372, %379 : vector<8x128xf32>
    %381 = arith.addf %378, %380 : vector<8x128xf32>
    %c5_i32_99 = arith.constant 5 : i32
    %c8_i32_100 = arith.constant 8 : i32
    %382 = arith.muli %c5_i32_99, %c8_i32_100 : i32
    %383 = tpu.assume_multiple %382, 8 : i32
    %384 = arith.index_cast %383 : i32 to index
    %c0_101 = arith.constant 0 : index
    %385 = vector.load %arg15[%384, %c0_101] : memref<64x384xf32, #tpu.memory_space<vmem>>, vector<8x384xf32>
    %386 = arith.truncf %381 : vector<8x128xf32> to vector<8x128xbf16>
    %cst_102 = arith.constant dense<0.000000e+00> : vector<8x384xf32>
    %387 = tpu.matmul %386, %244, %cst_102 {dimension_numbers = #tpu.dot_dimension_numbers<[1], [0], [0], [1], [0, 0, 1, 1], [], []>} : vector<8x128xbf16>, vector<128x384xbf16>, vector<8x384xf32> -> vector<8x384xf32>
    %388 = vector.extract_strided_slice %385 {offsets = [0, 0], sizes = [8, 256], strides = [1, 1]} : vector<8x384xf32> to vector<8x256xf32>
    %389 = vector.extract_strided_slice %387 {offsets = [0, 0], sizes = [8, 256], strides = [1, 1]} : vector<8x384xf32> to vector<8x256xf32>
    %390 = arith.addf %388, %389 : vector<8x256xf32>
    %391 = arith.negf %390 : vector<8x256xf32>
    %392 = math.exp %391 : vector<8x256xf32>
    %cst_103 = arith.constant 1.000000e+00 : f32
    %393 = vector.broadcast %cst_103 : f32 to vector<8x256xf32>
    %394 = arith.addf %393, %392 : vector<8x256xf32>
    %395 = arith.divf %393, %394 : vector<8x256xf32>
    %396 = vector.extract_strided_slice %395 {offsets = [0, 0], sizes = [8, 128], strides = [1, 1]} : vector<8x256xf32> to vector<8x128xf32>
    %397 = vector.extract_strided_slice %395 {offsets = [0, 128], sizes = [8, 128], strides = [1, 1]} : vector<8x256xf32> to vector<8x128xf32>
    %398 = vector.extract_strided_slice %385 {offsets = [0, 256], sizes = [8, 128], strides = [1, 1]} : vector<8x384xf32> to vector<8x128xf32>
    %399 = vector.extract_strided_slice %387 {offsets = [0, 256], sizes = [8, 128], strides = [1, 1]} : vector<8x384xf32> to vector<8x128xf32>
    %400 = arith.addf %399, %247 : vector<8x128xf32>
    %401 = arith.mulf %396, %400 : vector<8x128xf32>
    %402 = arith.addf %398, %401 : vector<8x128xf32>
    %403 = math.tanh %402 : vector<8x128xf32>
    %404 = arith.subf %381, %403 : vector<8x128xf32>
    %405 = arith.mulf %397, %404 : vector<8x128xf32>
    %406 = arith.addf %403, %405 : vector<8x128xf32>
    %c6_i32_104 = arith.constant 6 : i32
    %c8_i32_105 = arith.constant 8 : i32
    %407 = arith.muli %c6_i32_104, %c8_i32_105 : i32
    %408 = tpu.assume_multiple %407, 8 : i32
    %409 = arith.index_cast %408 : i32 to index
    %c0_106 = arith.constant 0 : index
    %410 = vector.load %arg15[%409, %c0_106] : memref<64x384xf32, #tpu.memory_space<vmem>>, vector<8x384xf32>
    %411 = arith.truncf %406 : vector<8x128xf32> to vector<8x128xbf16>
    %cst_107 = arith.constant dense<0.000000e+00> : vector<8x384xf32>
    %412 = tpu.matmul %411, %244, %cst_107 {dimension_numbers = #tpu.dot_dimension_numbers<[1], [0], [0], [1], [0, 0, 1, 1], [], []>} : vector<8x128xbf16>, vector<128x384xbf16>, vector<8x384xf32> -> vector<8x384xf32>
    %413 = vector.extract_strided_slice %410 {offsets = [0, 0], sizes = [8, 256], strides = [1, 1]} : vector<8x384xf32> to vector<8x256xf32>
    %414 = vector.extract_strided_slice %412 {offsets = [0, 0], sizes = [8, 256], strides = [1, 1]} : vector<8x384xf32> to vector<8x256xf32>
    %415 = arith.addf %413, %414 : vector<8x256xf32>
    %416 = arith.negf %415 : vector<8x256xf32>
    %417 = math.exp %416 : vector<8x256xf32>
    %cst_108 = arith.constant 1.000000e+00 : f32
    %418 = vector.broadcast %cst_108 : f32 to vector<8x256xf32>
    %419 = arith.addf %418, %417 : vector<8x256xf32>
    %420 = arith.divf %418, %419 : vector<8x256xf32>
    %421 = vector.extract_strided_slice %420 {offsets = [0, 0], sizes = [8, 128], strides = [1, 1]} : vector<8x256xf32> to vector<8x128xf32>
    %422 = vector.extract_strided_slice %420 {offsets = [0, 128], sizes = [8, 128], strides = [1, 1]} : vector<8x256xf32> to vector<8x128xf32>
    %423 = vector.extract_strided_slice %410 {offsets = [0, 256], sizes = [8, 128], strides = [1, 1]} : vector<8x384xf32> to vector<8x128xf32>
    %424 = vector.extract_strided_slice %412 {offsets = [0, 256], sizes = [8, 128], strides = [1, 1]} : vector<8x384xf32> to vector<8x128xf32>
    %425 = arith.addf %424, %247 : vector<8x128xf32>
    %426 = arith.mulf %421, %425 : vector<8x128xf32>
    %427 = arith.addf %423, %426 : vector<8x128xf32>
    %428 = math.tanh %427 : vector<8x128xf32>
    %429 = arith.subf %406, %428 : vector<8x128xf32>
    %430 = arith.mulf %422, %429 : vector<8x128xf32>
    %431 = arith.addf %428, %430 : vector<8x128xf32>
    %c7_i32_109 = arith.constant 7 : i32
    %c8_i32_110 = arith.constant 8 : i32
    %432 = arith.muli %c7_i32_109, %c8_i32_110 : i32
    %433 = tpu.assume_multiple %432, 8 : i32
    %434 = arith.index_cast %433 : i32 to index
    %c0_111 = arith.constant 0 : index
    %435 = vector.load %arg15[%434, %c0_111] : memref<64x384xf32, #tpu.memory_space<vmem>>, vector<8x384xf32>
    %436 = arith.truncf %431 : vector<8x128xf32> to vector<8x128xbf16>
    %cst_112 = arith.constant dense<0.000000e+00> : vector<8x384xf32>
    %437 = tpu.matmul %436, %244, %cst_112 {dimension_numbers = #tpu.dot_dimension_numbers<[1], [0], [0], [1], [0, 0, 1, 1], [], []>} : vector<8x128xbf16>, vector<128x384xbf16>, vector<8x384xf32> -> vector<8x384xf32>
    %438 = vector.extract_strided_slice %435 {offsets = [0, 0], sizes = [8, 256], strides = [1, 1]} : vector<8x384xf32> to vector<8x256xf32>
    %439 = vector.extract_strided_slice %437 {offsets = [0, 0], sizes = [8, 256], strides = [1, 1]} : vector<8x384xf32> to vector<8x256xf32>
    %440 = arith.addf %438, %439 : vector<8x256xf32>
    %441 = arith.negf %440 : vector<8x256xf32>
    %442 = math.exp %441 : vector<8x256xf32>
    %cst_113 = arith.constant 1.000000e+00 : f32
    %443 = vector.broadcast %cst_113 : f32 to vector<8x256xf32>
    %444 = arith.addf %443, %442 : vector<8x256xf32>
    %445 = arith.divf %443, %444 : vector<8x256xf32>
    %446 = vector.extract_strided_slice %445 {offsets = [0, 0], sizes = [8, 128], strides = [1, 1]} : vector<8x256xf32> to vector<8x128xf32>
    %447 = vector.extract_strided_slice %445 {offsets = [0, 128], sizes = [8, 128], strides = [1, 1]} : vector<8x256xf32> to vector<8x128xf32>
    %448 = vector.extract_strided_slice %435 {offsets = [0, 256], sizes = [8, 128], strides = [1, 1]} : vector<8x384xf32> to vector<8x128xf32>
    %449 = vector.extract_strided_slice %437 {offsets = [0, 256], sizes = [8, 128], strides = [1, 1]} : vector<8x384xf32> to vector<8x128xf32>
    %450 = arith.addf %449, %247 : vector<8x128xf32>
    %451 = arith.mulf %446, %450 : vector<8x128xf32>
    %452 = arith.addf %448, %451 : vector<8x128xf32>
    %453 = math.tanh %452 : vector<8x128xf32>
    %454 = arith.subf %431, %453 : vector<8x128xf32>
    %455 = arith.mulf %447, %454 : vector<8x128xf32>
    %456 = arith.addf %453, %455 : vector<8x128xf32>
    %c8_i32_114 = arith.constant 8 : i32
    %c1_115 = arith.constant 1 : index
    %c0_116 = arith.constant 0 : index
    %c0_117 = arith.constant 0 : index
    %457 = vector.load %arg13[%c1_115, %c0_116, %c0_117] : memref<2x8x128xf32, #tpu.memory_space<vmem>>, vector<1x8x128xf32>
    %458 = vector.shape_cast %457 : vector<1x8x128xf32> to vector<8x128xf32>
    %459 = vector.shape_cast %456 : vector<8x128xf32> to vector<1x8x128xf32>
    tpu.vector_store %arg13[%c1_115, %c0_116, %c0_117], %459 {strides = array<i32>} : memref<2x8x128xf32, #tpu.memory_space<vmem>>, vector<1x8x128xf32>,
    %c0_i32_118 = arith.constant 0 : i32
    %460 = arith.cmpi eq, %arg0, %c0_i32_118 : i32
    %461 = arith.extui %460 : i1 to i32
    %c0_i32_119 = arith.constant 0 : i32
    %462 = arith.cmpi ne, %461, %c0_i32_119 : i32
    scf.if %462 {
      %463 = arith.truncf %456 : vector<8x128xf32> to vector<8x128xbf16>
      %c0_120 = arith.constant 0 : index
      %c0_121 = arith.constant 0 : index
      %464 = vector.load %arg10[%c0_120, %c0_121] : memref<128x128xbf16, #tpu.memory_space<vmem>>, vector<128x128xbf16>
      %cst_122 = arith.constant dense<0.000000e+00> : vector<8x128xf32>
      %465 = tpu.matmul %463, %464, %cst_122 {dimension_numbers = #tpu.dot_dimension_numbers<[1], [0], [0], [1], [0, 0, 1, 1], [], []>} : vector<8x128xbf16>, vector<128x128xbf16>, vector<8x128xf32> -> vector<8x128xf32>
      %c0_123 = arith.constant 0 : index
      %c0_124 = arith.constant 0 : index
      %466 = vector.load %arg11[%c0_123, %c0_124] : memref<1x128xf32, #tpu.memory_space<vmem>>, vector<1x128xf32>
      %467 = vector.broadcast %466 : vector<1x128xf32> to vector<8x128xf32>
      %468 = arith.addf %465, %467 : vector<8x128xf32>
      %c0_125 = arith.constant 0 : index
      %c0_126 = arith.constant 0 : index
      %469 = vector.load %arg12[%c0_125, %c0_126] : memref<8x128xf32, #tpu.memory_space<vmem>>, vector<8x128xf32>
      tpu.vector_store %arg12[%c0_125, %c0_126], %468 {strides = array<i32>} : memref<8x128xf32, #tpu.memory_space<vmem>>, vector<8x128xf32>,
    } else {
    }
    return
  }
  func.func @transform_0(%arg0: i32) -> (i32, i32) {
    %c0_i32 = arith.constant 0 : i32
    %c0_i32_0 = arith.constant 0 : i32
    return %arg0, %c0_i32 : i32, i32
  }
  func.func @transform_1(%arg0: i32) -> (i32, i32) {
    %c0_i32 = arith.constant 0 : i32
    %c0_i32_0 = arith.constant 0 : i32
    %c0_i32_1 = arith.constant 0 : i32
    return %c0_i32, %c0_i32_0 : i32, i32
  }
  func.func @transform_2(%arg0: i32) -> (i32, i32) {
    %c0_i32 = arith.constant 0 : i32
    %c0_i32_0 = arith.constant 0 : i32
    %c0_i32_1 = arith.constant 0 : i32
    return %c0_i32, %c0_i32_0 : i32, i32
  }
  func.func @transform_3(%arg0: i32) -> (i32, i32) {
    %c0_i32 = arith.constant 0 : i32
    %c0_i32_0 = arith.constant 0 : i32
    %c0_i32_1 = arith.constant 0 : i32
    return %c0_i32, %c0_i32_0 : i32, i32
  }
  func.func @transform_4(%arg0: i32) -> (i32, i32) {
    %c0_i32 = arith.constant 0 : i32
    %c0_i32_0 = arith.constant 0 : i32
    %c0_i32_1 = arith.constant 0 : i32
    return %c0_i32, %c0_i32_0 : i32, i32
  }
  func.func @transform_5(%arg0: i32) -> (i32, i32) {
    %c0_i32 = arith.constant 0 : i32
    %c0_i32_0 = arith.constant 0 : i32
    %c0_i32_1 = arith.constant 0 : i32
    return %c0_i32, %c0_i32_0 : i32, i32
  }
  func.func @transform_6(%arg0: i32) -> (i32, i32) {
    %c0_i32 = arith.constant 0 : i32
    %c0_i32_0 = arith.constant 0 : i32
    %c0_i32_1 = arith.constant 0 : i32
    return %c0_i32, %c0_i32_0 : i32, i32
  }
  func.func @transform_7(%arg0: i32) -> (i32, i32) {
    %c0_i32 = arith.constant 0 : i32
    %c0_i32_0 = arith.constant 0 : i32
    %c0_i32_1 = arith.constant 0 : i32
    return %c0_i32, %c0_i32_0 : i32, i32
  }
  func.func @transform_8(%arg0: i32) -> (i32, i32) {
    %c0_i32 = arith.constant 0 : i32
    %c0_i32_0 = arith.constant 0 : i32
    %c0_i32_1 = arith.constant 0 : i32
    return %c0_i32, %c0_i32_0 : i32, i32
  }
  func.func @transform_9(%arg0: i32) -> (i32, i32) {
    %c0_i32 = arith.constant 0 : i32
    %c0_i32_0 = arith.constant 0 : i32
    %c0_i32_1 = arith.constant 0 : i32
    return %c0_i32, %c0_i32_0 : i32, i32
  }
  func.func @transform_10(%arg0: i32) -> (i32, i32) {
    %c0_i32 = arith.constant 0 : i32
    %c0_i32_0 = arith.constant 0 : i32
    %c0_i32_1 = arith.constant 0 : i32
    return %c0_i32, %c0_i32_0 : i32, i32
  }
  func.func @transform_11(%arg0: i32) -> (i32, i32) {
    %c0_i32 = arith.constant 0 : i32
    %c0_i32_0 = arith.constant 0 : i32
    %c0_i32_1 = arith.constant 0 : i32
    return %c0_i32, %c0_i32_0 : i32, i32
  }
}

</mosaic_0001>

<bundles_post_ra>
// kernel: gru_model_forward.1
= control target key start
LH: loop header
LB: loop body
LE: loop exit
PB: predicated region body
PF: predicated region fallthrough
CT: control target
= control target key end

     0   :  { %16 = vsyncpa [#allocation6], 0  ;;  %s4192_s0 = inlined_call_operand.vmem [shape: f32[64,16], index: 0, kind: input, shape index: {}]   ;;  %s4193_s1 = inlined_call_operand.vmem [shape: bf16[16,384], index: 1, kind: input, shape index: {}]   ;;  %s4194_s2 = inlined_call_operand.hbm [shape: bf16[128,384], index: 2, kind: input, shape index: {}]   ;;  %s4195_s3 = inlined_call_operand.vmem [shape: f32[1,384], index: 3, kind: input, shape index: {}]   ;;  %s4196_s4 = inlined_call_operand.vmem [shape: f32[1,128], index: 4, kind: input, shape index: {}]   ;;  %s4197_s5 = inlined_call_operand.hbm [shape: bf16[128,384], index: 5, kind: input, shape index: {}]   ;;  %s4198_s6 = inlined_call_operand.hbm [shape: bf16[128,384], index: 6, kind: input, shape index: {}]   ;;  %s4199_s7 = inlined_call_operand.vmem [shape: f32[1,384], index: 7, kind: input, shape index: {}]   ;;  %s4200_s8 = inlined_call_operand.vmem [shape: f32[1,128], index: 8, kind: input, shape index: {}]   ;;  %s4201_s9 = inlined_call_operand.vmem [shape: bf16[128,128], index: 9, kind: input, shape index: {}]   ;;  %s4202_s10 = inlined_call_operand.vmem [shape: f32[1,128], index: 10, kind: input, shape index: {}]   ;;  %s4203_s11 = inlined_call_operand.vmem [shape: f32[8,128], index: 11, kind: output, shape index: {}]  }
   0x1   :  { %17 = vsyncpa [#allocation8], 0  ;;  %s43_s19 = sshll.u32 %s4197_s5, 4  ;;  %s3206_s20 = smov [#allocation7]   ;;  %s44_s19 = int_to_ptr.hbm [resolvable:$true] %s43_s19 }
   0x2   :  { %s45_s21 = sshll.u32 %s3206_s20, 4  ;;  %s26_s24 = sshll.u32 %s4194_s2, 4  ;;  %s46_s21 = int_to_ptr.vmem [resolvable:$true] %s45_s21  ;;  %s27_s24 = int_to_ptr.hbm [resolvable:$true] %s26_s24 }
   0x3   :  { %s3207_s25 = smov 192   ;;  %s3208_s26 = smov 12  }
   0x4   :  { %51 = dma.hbm_to_vmem [thread:$0]  %s44_s19, 3072, %s46_s21, [#allocation8], %s3207_s25, %s3207_s25, %s3208_s26  }
   0x5   :  { %s3209_s27 = smov [#allocation5]   ;;  %s56_s12 = sshll.u32 %s4198_s6, 4  ;;  %s57_s12 = int_to_ptr.hbm [resolvable:$true] %s56_s12 }
   0x6   :  { %s28_s28 = sshll.u32 %s3209_s27, 4  ;;  %s3210_s5 = smov [#allocation9]   ;;  %s29_s28 = int_to_ptr.vmem [resolvable:$true] %s28_s28 }
   0x7   :  { %34 = dma.hbm_to_vmem [thread:$0]  %s27_s24, 3072, %s29_s28, [#allocation6], %s3207_s25, %s3207_s25, %s3208_s26  }
   0x8   :  { %s58_s13 = sshll.u32 %s3210_s5, 4  ;;  %s59_s13 = int_to_ptr.vmem [resolvable:$true] %s58_s13 }
   0x9   :  { %64 = dma.hbm_to_vmem [thread:$0]  %s57_s12, 3072, %s59_s13, [#allocation8], %s3207_s25, %s3207_s25, %s3208_s26  }
   0xa   :  { %3202 = dma.done.wait [#allocation6], 3072  }
   0xb   :  { %3203 = vsyncadd [#allocation6], 4294964224 }
   0xc   :  { %3204 = dma.done.wait [#allocation8], 6144  }
   0xd   :  { %3205 = vsyncadd [#allocation8], 4294961152  ;;  %v2589_v0 = vld [vmem:[#allocation5 + $0xa8] sm:$0xf]  ;;  %v2893_v1 = vld [vmem:[#allocation5 + $0xb0] sm:$0xf0] }
   0xe   :  { %v2577_v2 = vld [vmem:[#allocation5 + $0x90] sm:$0xf]  ;;  %v3281_v3 = vor.u32 %v2893_v1, %v2589_v0  ;;  %v2890_v4 = vld [vmem:[#allocation5 + $0x98] sm:$0xf0]  ;;  %v2481_v5 = vld [vmem:[%s4193_s1] sm:$0xf] }
   0xf   :  { %v3287_v6 = vor.u32 %v2890_v4, %v2577_v2  ;;  %v2565_v7 = vld [vmem:[#allocation5 + $0x78] sm:$0xf]  ;;  %v2896_v8 = vld [vmem:[%s4193_s1 + $0x8] sm:$0xf0]  ;;  %v2887_v9 = vld [vmem:[#allocation5 + $0x80] sm:$0xf0] }
  0x10   :  { %428 = vmatpush.bf16.msra.mxu3 %v3281_v3  ;;  %v2482_v10 = vor.u32 %v2896_v8, %v2481_v5  ;;  %v128_v11 = vld [vmem:[%s4192_s0] sm:$0xff]  ;;  %v129_v12 = vld [vmem:[%s4192_s0 + $0x8] sm:$0xff]  ;;  %vm168_vm0 = vcmask 130048   ;;  %v3301_v14 = vor.u32 %v2887_v9, %v2565_v7  ;;  %v2597_v17 = vld [vmem:[#allocation5 + $0xb0] sm:$0xf] }
  0x11   :  { %v3298_v13 = vpack.c.bf16 %v129_v12, %v128_v11  ;;  %v2553_v15 = vld [vmem:[#allocation5 + $0x60] sm:$0xf]  ;;  %v2884_v16 = vld [vmem:[#allocation5 + $0x68] sm:$0xf0]  ;;  %v2894_v18 = vld [vmem:[#allocation5 + $0xb8] sm:$0xf0] }
  0x12   :  { %188 = vmatpush.bf16.msra.mxu0 %v2482_v10  ;;  %2958 = vmatpush.bf16.msra.mxu1 %v2482_v10  ;;  %v3305_v19 = vor.u32 %v2894_v18, %v2597_v17  ;;  %v2585_v20 = vld [vmem:[#allocation5 + $0x98] sm:$0xf]  ;;  %v2891_v21 = vld [vmem:[#allocation5 + $0xa0] sm:$0xf0]  ;;  %v134_v22 = vld [vmem:[%s4192_s0 + $0x30] sm:$0xff]  ;;  %v3311_v23 = vor.u32 %v2884_v16, %v2553_v15  ;;  %v4204_v11 = vmov 0.0|0.0  }
  0x13   :  { %v135_v24 = vld [vmem:[%s4192_s0 + $0x38] sm:$0xff]  ;;  %v2541_v25 = vld [vmem:[#allocation5 + $0x48] sm:$0xf]  ;;  %v2881_v26 = vld [vmem:[#allocation5 + $0x50] sm:$0xf0]  ;;  %v3317_v27 = vor.u32 %v2891_v21, %v2585_v20 }
  0x14   :  { %429 = vmatpush.bf16.msra.mxu3 %v3287_v6  ;;  %v3319_v28 = vpack.c.bf16 %v135_v24, %v134_v22  ;;  %v2573_v29 = vld [vmem:[#allocation5 + $0x80] sm:$0xf]  ;;  %v2888_v30 = vld [vmem:[#allocation5 + $0x88] sm:$0xf0]  ;;  %v3324_v31 = vor.u32 %v2881_v26, %v2541_v25  ;;  %v2529_v32 = vld [vmem:[#allocation5 + $0x30] sm:$0xf] }
  0x15   :  { %2491 = vmatmul.msk.bf16.vlgmr.msra.gmra.mxu0 %vm168_vm0, %v3298_v13  ;;  %v2878_v33 = vld [vmem:[#allocation5 + $0x38] sm:$0xf0]  ;;  %v3327_v34 = vor.u32 %v2888_v30, %v2573_v29  ;;  %v2895_v35 = vld [vmem:[%s4193_s1 + $0x4] sm:$0xf]  ;;  %v2483_v36 = vld [vmem:[%s4193_s1 + $0xc] sm:$0xf0] }
  0x16   :  { %454 = vmatpush.bf16.msrb.mxu0 %v3305_v19  ;;  %2494 = vmatmul.msk.bf16.vlgmr.msra.gmra.mxu1 %vm168_vm0, %v3319_v28  ;;  %v2561_v37 = vld [vmem:[#allocation5 + $0x68] sm:$0xf]  ;;  %v2885_v38 = vld [vmem:[#allocation5 + $0x70] sm:$0xf0]  ;;  %v2486_v39 = vor.u32 %v2895_v35, %v2483_v36  ;;  %v131_v41 = vld [vmem:[%s4192_s0 + $0x18] sm:$0xff]  ;;  %v3342_v42 = vor.u32 %v2878_v33, %v2529_v32 }
  0x17   :  { %v130_v40 = vld [vmem:[%s4192_s0 + $0x10] sm:$0xff]  ;;  %v2517_v43 = vld [vmem:[#allocation5 + $0x18] sm:$0xf]  ;;  %v2875_v44 = vld [vmem:[#allocation5 + $0x20] sm:$0xf0]  ;;  %v3345_v45 = vor.u32 %v2885_v38, %v2561_v37 }
  0x18   :  { %430 = vmatpush.bf16.msra.mxu3 %v3301_v14  ;;  %217 = vmatpush.bf16.msrb.mxu1 %v2486_v39  ;;  %v3348_v46 = vpack.c.bf16 %v131_v41, %v130_v40  ;;  %v2549_v47 = vld [vmem:[#allocation5 + $0x50] sm:$0xf]  ;;  %v2882_v48 = vld [vmem:[#allocation5 + $0x58] sm:$0xf0]  ;;  %v3351_v49 = vor.u32 %v2875_v44, %v2517_v43  ;;  %v2505_v50 = vld [vmem:[#allocation5] sm:$0xf] }
  0x19   :  { %v2872_v51 = vld [vmem:[#allocation5 + $0x8] sm:$0xf0]  ;;  %v3354_v53 = vor.u32 %v2882_v48, %v2549_v47  ;;  %v2591_v54 = vld [vmem:[#allocation5 + $0xb4] sm:$0xf0]  ;;  %v2879_v56 = vld [vmem:[#allocation5 + $0x40] sm:$0xf0] }
  0x1a   :  { %455 = vmatpush.bf16.msrb.mxu0 %v3317_v27  ;;  %v2892_v52 = vld [vmem:[#allocation5 + $0xac] sm:$0xf]  ;;  %v2537_v55 = vld [vmem:[#allocation5 + $0x38] sm:$0xf]  ;;  %v2489_v57 = vld [vmem:[%s4193_s1 + $0x8] sm:$0xf]  ;;  %v3366_v59 = vor.u32 %v2872_v51, %v2505_v50 }
  0x1b   :  { %v2897_v58 = vld [vmem:[%s4193_s1 + $0x10] sm:$0xf0]  ;;  %v3368_v61 = vor.u32 %v2892_v52, %v2591_v54  ;;  %v3371_v63 = vor.u32 %v2879_v56, %v2537_v55  ;;  %v2579_v0 = vld [vmem:[#allocation5 + $0x9c] sm:$0xf0]  ;;  %v2876_v2 = vld [vmem:[#allocation5 + $0x28] sm:$0xf0] }
  0x1c   :  { %431 = vmatpush.bf16.msra.mxu3 %v3311_v23  ;;  %522 = vmatpush.bf16.msra.mxu1 %v3281_v3  ;;  %v2490_v60 = vor.u32 %v2897_v58, %v2489_v57  ;;  %v2889_v62 = vld [vmem:[#allocation5 + $0x94] sm:$0xf]  ;;  %v2525_v1 = vld [vmem:[#allocation5 + $0x20] sm:$0xf]  ;;  %v2886_v5 = vld [vmem:[#allocation5 + $0x7c] sm:$0xf] }
  0x1d   :  { %v3379_v4 = vor.u32 %v2889_v62, %v2579_v0  ;;  %v3382_v7 = vor.u32 %v2876_v2, %v2525_v1  ;;  %v2567_v8 = vld [vmem:[#allocation5 + $0x84] sm:$0xf0]  ;;  %v2873_v10 = vld [vmem:[#allocation5 + $0x10] sm:$0xf0]  ;;  %v132_v12 = vld [vmem:[%s4192_s0 + $0x20] sm:$0xff] }
  0x1e   :  { %456 = vmatpush.bf16.msrb.mxu0 %v3327_v34  ;;  %246 = vmatpush.bf16.msra.mxu2 %v2490_v60  ;;  %v2513_v9 = vld [vmem:[#allocation5 + $0x8] sm:$0xf]  ;;  %v2883_v17 = vld [vmem:[#allocation5 + $0x64] sm:$0xf]  ;;  %v2555_v18 = vld [vmem:[#allocation5 + $0x6c] sm:$0xf0] }
  0x1f   :  { %v133_v15 = vld [vmem:[%s4192_s0 + $0x28] sm:$0xff]  ;;  %v3399_v16 = vor.u32 %v2873_v10, %v2513_v9  ;;  %v3404_v21 = vor.u32 %v2883_v17, %v2555_v18  ;;  %v2543_v24 = vld [vmem:[#allocation5 + $0x54] sm:$0xf0]  ;;  %v2877_v26 = vld [vmem:[#allocation5 + $0x34] sm:$0xf] }
  0x20   :  { %432 = vmatpush.bf16.msra.mxu3 %v3324_v31  ;;  %523 = vmatpush.bf16.msra.mxu1 %v3287_v6  ;;  %v138_v20 = vpack.c.bf16 %v133_v15, %v132_v12  ;;  %v2880_v22 = vld [vmem:[#allocation5 + $0x4c] sm:$0xf]  ;;  %v2531_v29 = vld [vmem:[#allocation5 + $0x3c] sm:$0xf0]  ;;  %v2874_v32 = vld [vmem:[#allocation5 + $0x1c] sm:$0xf] }
  0x21   :  { %2499 = vmatmul.msk.bf16.vlgmr.msra.gmra.mxu2 %vm168_vm0, %v3298_v13  ;;  %v3412_v25 = vor.u32 %v2880_v22, %v2543_v24  ;;  %v3420_v30 = vor.u32 %v2877_v26, %v2531_v29  ;;  %v2519_v33 = vld [vmem:[#allocation5 + $0x24] sm:$0xf0]  ;;  %v2871_v36 = vld [vmem:[#allocation5 + $0x4] sm:$0xf]  ;;  %v2507_v37 = vld [vmem:[#allocation5 + $0xc] sm:$0xf0] }
  0x22   :  { %457 = vmatpush.bf16.msrb.mxu0 %v3345_v45  ;;  %535 = vmatpush.bf16.msrb.mxu2 %v3368_v61  ;;  %v3429_v35 = vor.u32 %v2874_v32, %v2519_v33  ;;  %v3435_v38 = vor.u32 %v2871_v36, %v2507_v37  ;;  %v144_v39 = vld [vmem:[%s4195_s3] sm:$0x7] }
  0x23   :  { %v3494_v41 = vperm.slane %v144_v39, 0  ;;  %v3518_v29 = vld [vmem:[%s4196_s4] ss:$0 sm:$0xff] }
  0x24   :  { %433 = vmatpush.bf16.msra.mxu3 %v3342_v42  ;;  %524 = vmatpush.bf16.msra.mxu1 %v3301_v14 }
  0x25   :  { %2492 = vmatmul.msk.bf16.gmra.mxu0 %vm168_vm0, %v3348_v46 }
  0x26   :  { %458 = vmatpush.bf16.msrb.mxu0 %v3354_v53  ;;  %2495 = vmatmul.msk.bf16.vlgmr.msrb.gmra.mxu1 %vm168_vm0, %v3298_v13  ;;  %v3396_v13 = vor.u32 %v2886_v5, %v2567_v8  ;;  %v3512_v8 = vperm.slane %v144_v39, 1 }
  0x27   :  { %536 = vmatpush.bf16.msrb.mxu2 %v3379_v4 }
  0x28   :  { %434 = vmatpush.bf16.msra.mxu3 %v3351_v49  ;;  %525 = vmatpush.bf16.msra.mxu1 %v3311_v23 }
  0x2a   :  { %459 = vmatpush.bf16.msrb.mxu0 %v3371_v63 }
  0x2b   :  { %537 = vmatpush.bf16.msrb.mxu2 %v3396_v13 }
  0x2c   :  { %435 = vmatpush.bf16.msra.mxu3 %v3366_v59  ;;  %526 = vmatpush.bf16.msra.mxu1 %v3324_v31 }
  0x2e   :  { %460 = vmatpush.bf16.msrb.mxu0 %v3382_v7 }
  0x2f   :  { %436 = vmatmul.bf16.vlgmr.msra.gmra.mxu3 %v4204_v11  ;;  %538 = vmatpush.bf16.msrb.mxu2 %v3404_v21 }
  0x30   :  { %441 = vmatpush.bf16.msrb.mxu3 %v3368_v61  ;;  %527 = vmatpush.bf16.msra.mxu1 %v3342_v42 }
  0x31   :  { %2500 = vmatmul.msk.bf16.gmra.mxu2 %vm168_vm0, %v3348_v46 }
  0x32   :  { %461 = vmatpush.bf16.msrb.mxu0 %v3399_v16 }
  0x33   :  { %539 = vmatpush.bf16.msrb.mxu2 %v3412_v25 }
  0x34   :  { %442 = vmatpush.bf16.msrb.mxu3 %v3379_v4  ;;  %528 = vmatpush.bf16.msra.mxu1 %v3351_v49 }
  0x35   :  { %2493 = vmatmul.msk.bf16.gmra.mxu0 %vm168_vm0, %v138_v20 }
  0x36   :  { %617 = vmatpush.bf16.msra.mxu0 %v3281_v3  ;;  %2496 = vmatmul.msk.bf16.gmra.mxu1 %vm168_vm0, %v3348_v46 }
  0x37   :  { %540 = vmatpush.bf16.msrb.mxu2 %v3420_v30 }
  0x38   :  { %443 = vmatpush.bf16.msrb.mxu3 %v3396_v13  ;;  %529 = vmatpush.bf16.msra.mxu1 %v3366_v59 }
  0x3a   :  { %618 = vmatpush.bf16.msra.mxu0 %v3287_v6 }
  0x3b   :  { %541 = vmatpush.bf16.msrb.mxu2 %v3429_v35 }
  0x3c   :  { %444 = vmatpush.bf16.msrb.mxu3 %v3404_v21  ;;  %630 = vmatpush.bf16.msrb.mxu1 %v3368_v61 }
  0x3e   :  { %619 = vmatpush.bf16.msra.mxu0 %v3301_v14 }
  0x3f   :  { %542 = vmatpush.bf16.msrb.mxu2 %v3435_v38 }
  0x40   :  { %445 = vmatpush.bf16.msrb.mxu3 %v3412_v25  ;;  %631 = vmatpush.bf16.msrb.mxu1 %v3379_v4 }
  0x41   :  { %2501 = vmatmul.msk.bf16.gmra.mxu2 %vm168_vm0, %v138_v20 }
  0x42   :  { %620 = vmatpush.bf16.msra.mxu0 %v3311_v23 }
  0x43   :  { %643 = vmatpush.bf16.msra.mxu2 %v3305_v19 }
  0x44   :  { %446 = vmatpush.bf16.msrb.mxu3 %v3420_v30  ;;  %632 = vmatpush.bf16.msrb.mxu1 %v3396_v13 }
  0x45   :  { %462 = vmatmul.bf16.vlgmr.msrb.gmra.mxu0 %v4204_v11 }
  0x46   :  { %621 = vmatpush.bf16.msra.mxu0 %v3324_v31  ;;  %2497 = vmatmul.msk.bf16.gmra.mxu1 %vm168_vm0, %v138_v20 }
  0x47   :  { %644 = vmatpush.bf16.msra.mxu2 %v3317_v27 }
  0x48   :  { %447 = vmatpush.bf16.msrb.mxu3 %v3429_v35  ;;  %633 = vmatpush.bf16.msrb.mxu1 %v3404_v21 }
  0x4a   :  { %622 = vmatpush.bf16.msra.mxu0 %v3342_v42 }
  0x4b   :  { %645 = vmatpush.bf16.msra.mxu2 %v3327_v34 }
  0x4c   :  { %448 = vmatpush.bf16.msrb.mxu3 %v3435_v38  ;;  %634 = vmatpush.bf16.msrb.mxu1 %v3412_v25 }
  0x4e   :  { %623 = vmatpush.bf16.msra.mxu0 %v3351_v49 }
  0x4f   :  { %449 = vmatmul.bf16.vlgmr.msrb.gmra.mxu3 %v4204_v11  ;;  %646 = vmatpush.bf16.msra.mxu2 %v3345_v45 }
  0x50   :  { %548 = vmatpush.bf16.msra.mxu3 %v3305_v19  ;;  %635 = vmatpush.bf16.msrb.mxu1 %v3420_v30 }
  0x51   :  { %2502 = vmatmul.msk.bf16.gmra.mxu2 %vm168_vm0, %v3319_v28 }
  0x52   :  { %624 = vmatpush.bf16.msra.mxu0 %v3366_v59 }
  0x53   :  { %647 = vmatpush.bf16.msra.mxu2 %v3354_v53 }
  0x54   :  { %549 = vmatpush.bf16.msra.mxu3 %v3317_v27  ;;  %636 = vmatpush.bf16.msrb.mxu1 %v3429_v35 }
  0x56   :  { %725 = vmatpush.bf16.msrb.mxu0 %v3368_v61  ;;  %2498 = vmatmul.msk.bf16.gmra.mxu1 %vm168_vm0, %v3319_v28 }
  0x57   :  { %648 = vmatpush.bf16.msra.mxu2 %v3371_v63 }
  0x58   :  { %550 = vmatpush.bf16.msra.mxu3 %v3327_v34  ;;  %637 = vmatpush.bf16.msrb.mxu1 %v3435_v38 }
  0x5a   :  { %726 = vmatpush.bf16.msrb.mxu0 %v3379_v4 }
  0x5b   :  { %649 = vmatpush.bf16.msra.mxu2 %v3382_v7 }
  0x5c   :  { %551 = vmatpush.bf16.msra.mxu3 %v3345_v45 }
  0x5e   :  { %727 = vmatpush.bf16.msrb.mxu0 %v3396_v13 }
  0x5f   :  { %650 = vmatpush.bf16.msra.mxu2 %v3399_v16 }
  0x60   :  { %552 = vmatpush.bf16.msra.mxu3 %v3354_v53 }
  0x62   :  { %728 = vmatpush.bf16.msrb.mxu0 %v3404_v21 }
  0x64   :  { %553 = vmatpush.bf16.msra.mxu3 %v3371_v63 }
  0x66   :  { %729 = vmatpush.bf16.msrb.mxu0 %v3412_v25 }
  0x68   :  { %554 = vmatpush.bf16.msra.mxu3 %v3382_v7 }
  0x6a   :  { %730 = vmatpush.bf16.msrb.mxu0 %v3420_v30 }
  0x6c   :  { %555 = vmatpush.bf16.msra.mxu3 %v3399_v16 }
  0x6e   :  { %731 = vmatpush.bf16.msrb.mxu0 %v3429_v35 }
  0x70   :  { %712 = vmatpush.bf16.msrb.mxu3 %v3281_v3 }
  0x72   :  { %732 = vmatpush.bf16.msrb.mxu0 %v3435_v38 }
  0x74   :  { %713 = vmatpush.bf16.msrb.mxu3 %v3287_v6 }
  0x78   :  { %714 = vmatpush.bf16.msrb.mxu3 %v3301_v14 }
  0x7c   :  { %715 = vmatpush.bf16.msrb.mxu3 %v3311_v23 }
  0x80   :  { %716 = vmatpush.bf16.msrb.mxu3 %v3324_v31 }
  0x84   :  { %717 = vmatpush.bf16.msrb.mxu3 %v3342_v42 }
  0x88   :  { %718 = vmatpush.bf16.msrb.mxu3 %v3351_v49 }
  0x8c   :  { %719 = vmatpush.bf16.msrb.mxu3 %v3366_v59 }
  0x92   :  { %v190_v28 = vpop.f32.mrf.mxu0 }
  0x93   :  { %v205_v43 = vpop.f32.mrf.mxu1  ;;  %v191_v50 = vadd.f32 %v190_v28, %v3494_v41  ;;  %v3521_v28 = vperm.slane %v144_v39, 2 }
  0x94   :  { %v3497_v44 = vadd.f32 %v205_v43, %v3494_v41 }
  0x96   :  { %4206 = vst [vmem:[#allocation12_spill] sm:$0xff] %v3497_v44 }
  0x9a   :  { %v3492_v40 = vpop.f32.mrf.mxu0 }
  0x9b   :  { %v3510_v0 = vpop.f32.mrf.mxu1 }
  0x9c   :  { %4207 = vst [vmem:[#allocation13_spill] sm:$0xff] %v3510_v0 }
  0xa2   :  { %v195_v46 = vpop.f32.mrf.mxu0 }
  0xa3   :  { %v3500_v47 = vadd.f32 %v195_v46, %v3494_v41  ;;  %v219_v10 = vpop.f32.mrf.mxu1 }
  0xa4   :  { %v220_v15 = vadd.f32 %v219_v10, %v3512_v8 }
  0xaa   :  { %v3502_v48 = vpop.f32.mrf.mxu0 }
  0xb2   :  { %v437_v51 = vpop.f32.mrf.mxu3  ;;  %v200_v54 = vpop.f32.mrf.mxu0 }
  0xb3   :  { %v467_v52 = vadd.f32 %v437_v51, %v191_v50  ;;  %v3506_v55 = vadd.f32 %v200_v54, %v3494_v41  ;;  %v248_v50 = vpop.f32.mrf.mxu2 }
  0xb5   :  { %v2599_v56 = vmul.f32 -1.442695, %v467_v52 }
  0xb7   :  { %2968 = vpow2.f32 %v2599_v56  ;;  %v249_v56 = vadd.f32 %v248_v50, %v3521_v28 }
  0xba   :  { %v439_v57 = vpop.f32.mrf.mxu3  ;;  %v3508_v58 = vpop.f32.mrf.mxu0 }
  0xbd   :  { %v2969_v60 = vpop.eup %2968 }
  0xbe   :  { %v475_v62 = vadd.f32 1.0, %v2969_v60 }
  0xc0   :  { %2970 = vrcp.f32 %v475_v62  ;;  %v488_v24 = vand.u32 2147483648, %v475_v62  ;;  %vm482_vm2 = vweird.f32 %v475_v62  ;;  %v486_v32 = vand.u32 2147483647, %v475_v62 }
  0xc2   :  { %v463_v1 = vpop.f32.mrf.mxu0  ;;  %v489_v36 = vor.u32 1.1754944e-38, %v488_v24  ;;  %vm487_vm4 = vcmp.eq.f32.partialorder %v486_v32, 8.507059e+37  ;;  %v250_v32 = vpop.f32.mrf.mxu2 }
  0xc3   :  { %v507_v37 = vadd.f32 %v3518_v29, %v463_v1 }
  0xc6   :  { %v2971_v2 = vpop.eup %2970 }
  0xc7   :  { %v478_v5 = vmul.f32 %v2971_v2, %v475_v62  ;;  %vm483_vm1 = vweird.f32 %v2971_v2 }
  0xc8   :  { %vm484_vm3 = vmor %vm482_vm2, %vm483_vm1 }
  0xc9   :  { %v479_v9 = vsub.f32 1.0, %v478_v5 }
  0xca   :  { %v465_v12 = vpop.f32.mrf.mxu0 }
  0xcb   :  { %v480_v17 = vmul.f32 %v2971_v2, %v479_v9 }
  0xcd   :  { %v481_v22 = vadd.f32 %v2971_v2, %v480_v17 }
  0xcf   :  { %v485_v33 = vsel %vm484_vm3, %v2971_v2, %v481_v22 }
  0xd0   :  { %v490_v46 = vsel %vm487_vm4, %v489_v36, %v485_v33  ;;  %v3554_v36 = vpop.f32.mrf.mxu2 }
  0xd1   :  { %v508_v52 = vmul.f32 %v507_v37, %v490_v46 }
  0xd2   :  { %v450_v18 = vpop.f32.mrf.mxu3 }
  0xd3   :  { %v468_v20 = vadd.f32 %v450_v18, %v220_v15  ;;  %v509_v57 = vadd.f32 %v508_v52, %v249_v56 }
  0xd5   :  { %v2600_v26 = vmul.f32 -1.442695, %v468_v20 }
  0xd7   :  { %2972 = vpow2.f32 %v2600_v26  ;;  %v221_v26 = vpop.f32.mrf.mxu1 }
  0xda   :  { %v452_v43 = vpop.f32.mrf.mxu3 }
  0xdb   :  { %v3558_v43 = vpop.f32.mrf.mxu2 }
  0xdd   :  { %v2973_v51 = vpop.eup %2972 }
  0xde   :  { %v476_v54 = vadd.f32 1.0, %v2973_v51 }
  0xdf   :  { %v3552_v33 = vpop.f32.mrf.mxu1 }
  0xe0   :  { %2974 = vrcp.f32 %v476_v54  ;;  %v503_v5 = vand.u32 2147483648, %v476_v54  ;;  %v501_v1 = vand.u32 2147483647, %v476_v54  ;;  %vm497_vm6 = vweird.f32 %v476_v54 }
  0xe1   :  { %2976 = vtanh.f32 %v509_v57 }
  0xe2   :  { %v504_v12 = vor.u32 1.1754944e-38, %v503_v5  ;;  %vm502_vm8 = vcmp.eq.f32.partialorder %v501_v1, 8.507059e+37  ;;  %v222_v1 = vadd.f32 %v221_v26, %v3512_v8 }
  0xe3   :  { %v3562_v50 = vpop.f32.mrf.mxu2 }
  0xe6   :  { %v2975_v60 = vpop.eup %2974 }
  0xe7   :  { %v493_v62 = vmul.f32 %v2975_v60, %v476_v54  ;;  %vm498_vm5 = vweird.f32 %v2975_v60  ;;  %v2977_v39 = vpop.eup %2976  ;;  %v3556_v37 = vpop.f32.mrf.mxu1 }
  0xe8   :  { %vm499_vm7 = vmor %vm497_vm6, %vm498_vm5  ;;  %v511_v15 = vsub.f32 0.0, %v2977_v39 }
  0xe9   :  { %v494_v2 = vsub.f32 1.0, %v493_v62  ;;  %v193_v62 = vadd.f32 %v3492_v40, %v3494_v41 }
  0xeb   :  { %v495_v9 = vmul.f32 %v2975_v60, %v494_v2  ;;  %v3566_v52 = vpop.f32.mrf.mxu2 }
  0xed   :  { %v496_v10 = vadd.f32 %v2975_v60, %v495_v9 }
  0xef   :  { %v500_v17 = vsel %vm499_vm7, %v2975_v60, %v496_v10  ;;  %v3560_v46 = vpop.f32.mrf.mxu1 }
  0xf0   :  { %v505_v18 = vsel %vm502_vm8, %v504_v12, %v500_v17 }
  0xf1   :  { %v512_v20 = vmul.f32 %v511_v15, %v505_v18 }
  0xf3   :  { %v3524_v22 = vadd.f32 %v2977_v39, %v512_v20  ;;  %v3570_v56 = vpop.f32.mrf.mxu2 }
  0xf4   :  { %4208 = vst [vmem:[#allocation14_spill] sm:$0xff] %v3570_v56 }
  0xf5   :  { %v514_v24 = vpack.c.bf16 %v3524_v22, %v3524_v22 }
  0xf7   :  { %515 = vst [vmem:[#allocation3] sm:$0xf] %v514_v24  ;;  %530 = vmatmul.bf16.vlgmr.msra.gmra.mxu1 %v514_v24  ;;  %543 = vmatmul.bf16.vlgmr.msrb.gmra.mxu2 %v514_v24  ;;  %v3564_v51 = vpop.f32.mrf.mxu1 }
  0xf8   :  { %556 = vmatmul.bf16.vlgmr.msra.gmra.mxu3 %v514_v24  ;;  %738 = vmatpush.bf16.msra.mxu1 %v3305_v19 }
  0xf9   :  { %807 = vmatpush.bf16.msrb.mxu2 %v3281_v3  ;;  %820 = vmatpush.bf16.msra.mxu3 %v3368_v61 }
  0xfb   :  { %v3574_v60 = vpop.f32.mrf.mxu2 }
  0xfc   :  { %739 = vmatpush.bf16.msra.mxu1 %v3317_v27  ;;  %4210 = vst [vmem:[#allocation16_spill] sm:$0xff] %v3574_v60 }
  0xfd   :  { %808 = vmatpush.bf16.msrb.mxu2 %v3287_v6  ;;  %821 = vmatpush.bf16.msra.mxu3 %v3379_v4 }
  0xff   :  { %v3568_v54 = vpop.f32.mrf.mxu1 }
 0x100   :  { %740 = vmatpush.bf16.msra.mxu1 %v3327_v34 }
 0x101   :  { %809 = vmatpush.bf16.msrb.mxu2 %v3301_v14  ;;  %822 = vmatpush.bf16.msra.mxu3 %v3396_v13 }
 0x104   :  { %741 = vmatpush.bf16.msra.mxu1 %v3345_v45 }
 0x105   :  { %810 = vmatpush.bf16.msrb.mxu2 %v3311_v23  ;;  %823 = vmatpush.bf16.msra.mxu3 %v3404_v21 }
 0x107   :  { %v3572_v57 = vpop.f32.mrf.mxu1 }
 0x108   :  { %742 = vmatpush.bf16.msra.mxu1 %v3354_v53  ;;  %4209 = vst [vmem:[#allocation15_spill] sm:$0xff] %v3572_v57 }
 0x109   :  { %811 = vmatpush.bf16.msrb.mxu2 %v3324_v31  ;;  %824 = vmatpush.bf16.msra.mxu3 %v3412_v25 }
 0x10c   :  { %743 = vmatpush.bf16.msra.mxu1 %v3371_v63 }
 0x10d   :  { %812 = vmatpush.bf16.msrb.mxu2 %v3342_v42  ;;  %825 = vmatpush.bf16.msra.mxu3 %v3420_v30 }
 0x110   :  { %744 = vmatpush.bf16.msra.mxu1 %v3382_v7 }
 0x111   :  { %813 = vmatpush.bf16.msrb.mxu2 %v3351_v49  ;;  %826 = vmatpush.bf16.msra.mxu3 %v3429_v35 }
 0x114   :  { %745 = vmatpush.bf16.msra.mxu1 %v3399_v16 }
 0x115   :  { %814 = vmatpush.bf16.msrb.mxu2 %v3366_v59  ;;  %827 = vmatpush.bf16.msra.mxu3 %v3435_v38 }
 0x174   :  { %v531_v2 = vpop.f32.mrf.mxu1 }
 0x175   :  { %v561_v5 = vadd.f32 %v531_v2, %v193_v62 }
 0x177   :  { %v2601_v9 = vmul.f32 -1.442695, %v561_v5 }
 0x179   :  { %2978 = vpow2.f32 %v2601_v9 }
 0x17a   :  { %v544_v39 = vpop.f32.mrf.mxu2 }
 0x17b   :  { %v562_v10 = vadd.f32 %v544_v39, %v222_v1  ;;  %v557_v12 = vpop.f32.mrf.mxu3 }
 0x17c   :  { %v533_v15 = vpop.f32.mrf.mxu1 }
 0x17d   :  { %v2602_v17 = vmul.f32 -1.442695, %v562_v10 }
 0x17f   :  { %v2979_v18 = vpop.eup %2978  ;;  %2980 = vpow2.f32 %v2602_v17 }
 0x180   :  { %v569_v20 = vadd.f32 1.0, %v2979_v18 }
 0x182   :  { %2982 = vrcp.f32 %v569_v20  ;;  %v546_v24 = vpop.f32.mrf.mxu2  ;;  %v582_v5 = vand.u32 2147483648, %v569_v20  ;;  %v580_v9 = vand.u32 2147483647, %v569_v20  ;;  %vm576_vm10 = vweird.f32 %v569_v20 }
 0x183   :  { %v559_v11 = vpop.f32.mrf.mxu3  ;;  %v251_v24 = vadd.f32 %v250_v32, %v3521_v28 }
 0x184   :  { %v583_v10 = vor.u32 1.1754944e-38, %v582_v5  ;;  %vm581_vm12 = vcmp.eq.f32.partialorder %v580_v9, 8.507059e+37  ;;  %v601_v11 = vadd.f32 %v3518_v29, %v557_v12 }
 0x185   :  { %v2981_v60 = vpop.eup %2980 }
 0x186   :  { %v570_v0 = vadd.f32 1.0, %v2981_v60 }
 0x188   :  { %v2983_v40 = vpop.eup %2982  ;;  %2984 = vrcp.f32 %v570_v0  ;;  %v597_v44 = vand.u32 2147483648, %v570_v0  ;;  %vm591_vm14 = vweird.f32 %v570_v0 }
 0x189   :  { %v572_v62 = vmul.f32 %v2983_v40, %v569_v20  ;;  %vm577_vm9 = vweird.f32 %v2983_v40 }
 0x18a   :  { %vm578_vm11 = vmor %vm576_vm10, %vm577_vm9 }
 0x18b   :  { %v573_v2 = vsub.f32 1.0, %v572_v62 }
 0x18d   :  { %v574_v26 = vmul.f32 %v2983_v40, %v573_v2 }
 0x18e   :  { %v2985_v1 = vpop.eup %2984 }
 0x18f   :  { %v587_v39 = vmul.f32 %v2985_v1, %v570_v0  ;;  %v575_v15 = vadd.f32 %v2983_v40, %v574_v26  ;;  %vm592_vm13 = vweird.f32 %v2985_v1  ;;  %v595_v26 = vand.u32 2147483647, %v570_v0 }
 0x190   :  { %vm593_vm15 = vmor %vm591_vm14, %vm592_vm13 }
 0x191   :  { %v588_v17 = vsub.f32 1.0, %v587_v39  ;;  %v579_v18 = vsel %vm578_vm11, %v2983_v40, %v575_v15  ;;  %v598_v39 = vor.u32 1.1754944e-38, %v597_v44  ;;  %vm596_vm0 = vcmp.eq.f32.partialorder %v595_v26, 8.507059e+37 }
 0x192   :  { %v584_v60 = vsel %vm581_vm12, %v583_v10, %v579_v18  ;;  %v225_v44 = vadd.f32 %v3552_v33, %v3512_v8 }
 0x193   :  { %v602_v57 = vmul.f32 %v601_v11, %v584_v60  ;;  %v589_v62 = vmul.f32 %v2985_v1, %v588_v17 }
 0x195   :  { %v603_v56 = vadd.f32 %v602_v57, %v251_v24  ;;  %v590_v2 = vadd.f32 %v2985_v1, %v589_v62 }
 0x197   :  { %2986 = vtanh.f32 %v603_v56  ;;  %v594_v20 = vsel %vm593_vm15, %v2985_v1, %v590_v2 }
 0x198   :  { %v599_v12 = vsel %vm596_vm0, %v598_v39, %v594_v20 }
 0x19d   :  { %v2987_v5 = vpop.eup %2986 }
 0x19e   :  { %v605_v40 = vsub.f32 %v3524_v22, %v2987_v5 }
 0x1a0   :  { %v606_v9 = vmul.f32 %v605_v40, %v599_v12 }
 0x1a2   :  { %v3582_v15 = vadd.f32 %v2987_v5, %v606_v9 }
 0x1a4   :  { %v608_v32 = vpack.c.bf16 %v3582_v15, %v3582_v15 }
 0x1a6   :  { %610 = vst [vmem:[#allocation3 + $0x4] sm:$0xf] %v608_v32  ;;  %625 = vmatmul.bf16.vlgmr.msra.gmra.mxu0 %v608_v32  ;;  %638 = vmatmul.bf16.vlgmr.msrb.gmra.mxu1 %v608_v32 }
 0x1a7   :  { %651 = vmatmul.bf16.vlgmr.msra.gmra.mxu2 %v608_v32  ;;  %833 = vmatpush.bf16.msra.mxu0 %v3305_v19 }
 0x1a8   :  { %902 = vmatpush.bf16.msrb.mxu1 %v3281_v3  ;;  %915 = vmatpush.bf16.msra.mxu2 %v3368_v61 }
 0x1ab   :  { %834 = vmatpush.bf16.msra.mxu0 %v3317_v27 }
 0x1ac   :  { %903 = vmatpush.bf16.msrb.mxu1 %v3287_v6  ;;  %916 = vmatpush.bf16.msra.mxu2 %v3379_v4 }
 0x1af   :  { %835 = vmatpush.bf16.msra.mxu0 %v3327_v34 }
 0x1b0   :  { %904 = vmatpush.bf16.msrb.mxu1 %v3301_v14  ;;  %917 = vmatpush.bf16.msra.mxu2 %v3396_v13 }
 0x1b3   :  { %836 = vmatpush.bf16.msra.mxu0 %v3345_v45 }
 0x1b4   :  { %905 = vmatpush.bf16.msrb.mxu1 %v3311_v23  ;;  %918 = vmatpush.bf16.msra.mxu2 %v3404_v21 }
 0x1b7   :  { %837 = vmatpush.bf16.msra.mxu0 %v3354_v53 }
 0x1b8   :  { %906 = vmatpush.bf16.msrb.mxu1 %v3324_v31  ;;  %919 = vmatpush.bf16.msra.mxu2 %v3412_v25 }
 0x1bb   :  { %838 = vmatpush.bf16.msra.mxu0 %v3371_v63 }
 0x1bc   :  { %907 = vmatpush.bf16.msrb.mxu1 %v3342_v42  ;;  %920 = vmatpush.bf16.msra.mxu2 %v3420_v30 }
 0x1bf   :  { %839 = vmatpush.bf16.msra.mxu0 %v3382_v7 }
 0x1c0   :  { %908 = vmatpush.bf16.msrb.mxu1 %v3351_v49  ;;  %921 = vmatpush.bf16.msra.mxu2 %v3429_v35 }
 0x1c3   :  { %840 = vmatpush.bf16.msra.mxu0 %v3399_v16 }
 0x1c4   :  { %909 = vmatpush.bf16.msrb.mxu1 %v3366_v59  ;;  %922 = vmatpush.bf16.msra.mxu2 %v3435_v38 }
 0x223   :  { %v626_v0 = vpop.f32.mrf.mxu0  ;;  %v639_v22 = vpop.f32.mrf.mxu1 }
 0x224   :  { %v656_v56 = vadd.f32 %v626_v0, %v3500_v47  ;;  %v657_v57 = vadd.f32 %v639_v22, %v225_v44 }
 0x226   :  { %v2603_v1 = vmul.f32 -1.442695, %v656_v56  ;;  %v2604_v10 = vmul.f32 -1.442695, %v657_v57 }
 0x228   :  { %2988 = vpow2.f32 %v2603_v1  ;;  %v254_v1 = vadd.f32 %v3554_v36, %v3521_v28 }
 0x229   :  { %2990 = vpow2.f32 %v2604_v10 }
 0x22a   :  { %v652_v17 = vpop.f32.mrf.mxu2 }
 0x22b   :  { %v628_v18 = vpop.f32.mrf.mxu0  ;;  %v641_v11 = vpop.f32.mrf.mxu1  ;;  %v696_v56 = vadd.f32 %v3518_v29, %v652_v17 }
 0x22e   :  { %v2989_v60 = vpop.eup %2988 }
 0x22f   :  { %v2991_v24 = vpop.eup %2990  ;;  %v664_v62 = vadd.f32 1.0, %v2989_v60 }
 0x230   :  { %v665_v2 = vadd.f32 1.0, %v2991_v24 }
 0x231   :  { %2992 = vrcp.f32 %v664_v62  ;;  %v677_v40 = vand.u32 2147483648, %v664_v62  ;;  %v675_v9 = vand.u32 2147483647, %v664_v62  ;;  %vm671_vm2 = vweird.f32 %v664_v62 }
 0x232   :  { %2994 = vrcp.f32 %v665_v2  ;;  %v654_v26 = vpop.f32.mrf.mxu2  ;;  %v692_v24 = vand.u32 2147483648, %v665_v2  ;;  %vm686_vm6 = vweird.f32 %v665_v2 }
 0x233   :  { %v678_v0 = vor.u32 1.1754944e-38, %v677_v40  ;;  %vm676_vm4 = vcmp.eq.f32.partialorder %v675_v9, 8.507059e+37 }
 0x237   :  { %v2993_v33 = vpop.eup %2992 }
 0x238   :  { %v2995_v20 = vpop.eup %2994  ;;  %v667_v5 = vmul.f32 %v2993_v33, %v664_v62  ;;  %vm672_vm1 = vweird.f32 %v2993_v33  ;;  %v690_v62 = vand.u32 2147483647, %v665_v2 }
 0x239   :  { %v682_v47 = vmul.f32 %v2995_v20, %v665_v2  ;;  %vm673_vm3 = vmor %vm671_vm2, %vm672_vm1  ;;  %vm687_vm5 = vweird.f32 %v2995_v20 }
 0x23a   :  { %v668_v39 = vsub.f32 1.0, %v667_v5  ;;  %vm688_vm7 = vmor %vm686_vm6, %vm687_vm5  ;;  %vm691_vm8 = vcmp.eq.f32.partialorder %v690_v62, 8.507059e+37 }
 0x23b   :  { %v683_v44 = vsub.f32 1.0, %v682_v47 }
 0x23c   :  { %v669_v12 = vmul.f32 %v2993_v33, %v668_v39 }
 0x23d   :  { %v684_v18 = vmul.f32 %v2995_v20, %v683_v44 }
 0x23e   :  { %v670_v32 = vadd.f32 %v2993_v33, %v669_v12 }
 0x23f   :  { %v685_v60 = vadd.f32 %v2995_v20, %v684_v18 }
 0x240   :  { %v674_v22 = vsel %vm673_vm3, %v2993_v33, %v670_v32  ;;  %v693_v33 = vor.u32 1.1754944e-38, %v692_v24  ;;  %v198_v32 = vadd.f32 %v3502_v48, %v3494_v41 }
 0x241   :  { %v679_v57 = vsel %vm676_vm4, %v678_v0, %v674_v22  ;;  %v689_v26 = vsel %vm688_vm7, %v2995_v20, %v685_v60 }
 0x242   :  { %v697_v10 = vmul.f32 %v696_v56, %v679_v57  ;;  %v694_v17 = vsel %vm691_vm8, %v693_v33, %v689_v26 }
 0x244   :  { %v698_v11 = vadd.f32 %v697_v10, %v254_v1 }
 0x246   :  { %2996 = vtanh.f32 %v698_v11 }
 0x24c   :  { %v2997_v5 = vpop.eup %2996 }
 0x24d   :  { %v700_v39 = vsub.f32 %v3582_v15, %v2997_v5  ;;  %v227_v15 = vadd.f32 %v3556_v37, %v3512_v8 }
 0x24f   :  { %v701_v47 = vmul.f32 %v700_v39, %v694_v17 }
 0x251   :  { %v3617_v40 = vadd.f32 %v2997_v5, %v701_v47 }
 0x253   :  { %v703_v36 = vpack.c.bf16 %v3617_v40, %v3617_v40 }
 0x255   :  { %705 = vst [vmem:[#allocation3 + $0x8] sm:$0xf] %v703_v36  ;;  %720 = vmatmul.bf16.vlgmr.msrb.gmra.mxu3 %v703_v36  ;;  %733 = vmatmul.bf16.vlgmr.msrb.gmra.mxu0 %v703_v36 }
 0x256   :  { %746 = vmatmul.bf16.vlgmr.msra.gmra.mxu1 %v703_v36  ;;  %928 = vmatpush.bf16.msrb.mxu3 %v3305_v19 }
 0x257   :  { %997 = vmatpush.bf16.msrb.mxu0 %v3281_v3  ;;  %1010 = vmatpush.bf16.msra.mxu1 %v3368_v61 }
 0x25a   :  { %929 = vmatpush.bf16.msrb.mxu3 %v3317_v27 }
 0x25b   :  { %998 = vmatpush.bf16.msrb.mxu0 %v3287_v6  ;;  %1011 = vmatpush.bf16.msra.mxu1 %v3379_v4 }
 0x25e   :  { %930 = vmatpush.bf16.msrb.mxu3 %v3327_v34 }
 0x25f   :  { %999 = vmatpush.bf16.msrb.mxu0 %v3301_v14  ;;  %1012 = vmatpush.bf16.msra.mxu1 %v3396_v13 }
 0x262   :  { %931 = vmatpush.bf16.msrb.mxu3 %v3345_v45 }
 0x263   :  { %1000 = vmatpush.bf16.msrb.mxu0 %v3311_v23  ;;  %1013 = vmatpush.bf16.msra.mxu1 %v3404_v21 }
 0x266   :  { %932 = vmatpush.bf16.msrb.mxu3 %v3354_v53 }
 0x267   :  { %1001 = vmatpush.bf16.msrb.mxu0 %v3324_v31  ;;  %1014 = vmatpush.bf16.msra.mxu1 %v3412_v25 }
 0x26a   :  { %933 = vmatpush.bf16.msrb.mxu3 %v3371_v63 }
 0x26b   :  { %1002 = vmatpush.bf16.msrb.mxu0 %v3342_v42  ;;  %1015 = vmatpush.bf16.msra.mxu1 %v3420_v30 }
 0x26e   :  { %934 = vmatpush.bf16.msrb.mxu3 %v3382_v7 }
 0x26f   :  { %1003 = vmatpush.bf16.msrb.mxu0 %v3351_v49  ;;  %1016 = vmatpush.bf16.msra.mxu1 %v3429_v35 }
 0x272   :  { %935 = vmatpush.bf16.msrb.mxu3 %v3399_v16 }
 0x273   :  { %1004 = vmatpush.bf16.msrb.mxu0 %v3366_v59  ;;  %1017 = vmatpush.bf16.msra.mxu1 %v3435_v38 }
 0x2d2   :  { %v734_v2 = vpop.f32.mrf.mxu0 }
 0x2d3   :  { %v752_v20 = vadd.f32 %v734_v2, %v227_v15  ;;  %v747_v12 = vpop.f32.mrf.mxu1 }
 0x2d4   :  { %v791_v15 = vadd.f32 %v3518_v29, %v747_v12 }
 0x2d5   :  { %v2606_v9 = vmul.f32 -1.442695, %v752_v20 }
 0x2d7   :  { %2998 = vpow2.f32 %v2606_v9  ;;  %v256_v9 = vadd.f32 %v3558_v43, %v3521_v28 }
 0x2d8   :  { %v721_v44 = vpop.f32.mrf.mxu3 }
 0x2d9   :  { %v751_v0 = vadd.f32 %v721_v44, %v198_v32 }
 0x2da   :  { %v736_v22 = vpop.f32.mrf.mxu0 }
 0x2db   :  { %v2605_v56 = vmul.f32 -1.442695, %v751_v0  ;;  %v749_v57 = vpop.f32.mrf.mxu1 }
 0x2dd   :  { %3000 = vpow2.f32 %v2605_v56  ;;  %v2999_v1 = vpop.eup %2998 }
 0x2de   :  { %v760_v11 = vadd.f32 1.0, %v2999_v1 }
 0x2e0   :  { %v723_v10 = vpop.f32.mrf.mxu3  ;;  %v787_v56 = vand.u32 2147483648, %v760_v11  ;;  %vm781_vm14 = vweird.f32 %v760_v11  ;;  %v785_v57 = vand.u32 2147483647, %v760_v11 }
 0x2e2   :  { %vm786_vm0 = vcmp.eq.f32.partialorder %v785_v57, 8.507059e+37 }
 0x2e3   :  { %v3001_v18 = vpop.eup %3000 }
 0x2e4   :  { %v759_v60 = vadd.f32 1.0, %v3001_v18  ;;  %v788_v18 = vor.u32 1.1754944e-38, %v787_v56 }
 0x2e6   :  { %3002 = vrcp.f32 %v759_v60  ;;  %v772_v48 = vand.u32 2147483648, %v759_v60  ;;  %v770_v39 = vand.u32 2147483647, %v759_v60  ;;  %vm766_vm10 = vweird.f32 %v759_v60 }
 0x2e7   :  { %3004 = vrcp.f32 %v760_v11 }
 0x2e8   :  { %v773_v36 = vor.u32 1.1754944e-38, %v772_v48  ;;  %vm771_vm12 = vcmp.eq.f32.partialorder %v770_v39, 8.507059e+37 }
 0x2ec   :  { %v3003_v37 = vpop.eup %3002 }
 0x2ed   :  { %v3005_v24 = vpop.eup %3004  ;;  %v762_v62 = vmul.f32 %v3003_v37, %v759_v60  ;;  %vm767_vm9 = vweird.f32 %v3003_v37 }
 0x2ee   :  { %v777_v5 = vmul.f32 %v3005_v24, %v760_v11  ;;  %vm768_vm11 = vmor %vm766_vm10, %vm767_vm9  ;;  %vm782_vm13 = vweird.f32 %v3005_v24 }
 0x2ef   :  { %v763_v26 = vsub.f32 1.0, %v762_v62  ;;  %vm783_vm15 = vmor %vm781_vm14, %vm782_vm13 }
 0x2f0   :  { %v778_v47 = vsub.f32 1.0, %v777_v5 }
 0x2f1   :  { %v764_v33 = vmul.f32 %v3003_v37, %v763_v26 }
 0x2f2   :  { %v779_v44 = vmul.f32 %v3005_v24, %v778_v47 }
 0x2f3   :  { %v765_v17 = vadd.f32 %v3003_v37, %v764_v33 }
 0x2f4   :  { %v780_v22 = vadd.f32 %v3005_v24, %v779_v44 }
 0x2f5   :  { %v769_v2 = vsel %vm768_vm11, %v3003_v37, %v765_v17 }
 0x2f6   :  { %v774_v20 = vsel %vm771_vm12, %v773_v36, %v769_v2  ;;  %v784_v1 = vsel %vm783_vm15, %v3005_v24, %v780_v22 }
 0x2f7   :  { %v792_v32 = vmul.f32 %v791_v15, %v774_v20  ;;  %v789_v60 = vsel %vm786_vm0, %v788_v18, %v784_v1  ;;  %v259_v15 = vadd.f32 %v3562_v50, %v3521_v28 }
 0x2f9   :  { %v793_v0 = vadd.f32 %v792_v32, %v256_v9 }
 0x2fb   :  { %3006 = vtanh.f32 %v793_v0 }
 0x301   :  { %v3007_v10 = vpop.eup %3006 }
 0x302   :  { %v795_v12 = vsub.f32 %v3617_v40, %v3007_v10 }
 0x304   :  { %v796_v37 = vmul.f32 %v795_v12, %v789_v60  ;;  %v203_v60 = vadd.f32 %v3508_v58, %v3494_v41 }
 0x306   :  { %v3653_v62 = vadd.f32 %v3007_v10, %v796_v37 }
 0x308   :  { %v798_v43 = vpack.c.bf16 %v3653_v62, %v3653_v62 }
 0x30a   :  { %800 = vst [vmem:[#allocation3 + $0xc] sm:$0xf] %v798_v43  ;;  %815 = vmatmul.bf16.vlgmr.msrb.gmra.mxu2 %v798_v43  ;;  %828 = vmatmul.bf16.vlgmr.msra.gmra.mxu3 %v798_v43 }
 0x30b   :  { %841 = vmatmul.bf16.vlgmr.msra.gmra.mxu0 %v798_v43  ;;  %1023 = vmatpush.bf16.msrb.mxu2 %v3305_v19  ;;  %v2948_v43 = vld [vmem:[#allocation7 + $0xb0] sm:$0xf0] }
 0x30c   :  { %1092 = vmatpush.bf16.msra.mxu3 %v3281_v3  ;;  %1105 = vmatpush.bf16.msra.mxu0 %v3368_v61 }
 0x30f   :  { %1024 = vmatpush.bf16.msrb.mxu2 %v3317_v27 }
 0x310   :  { %1093 = vmatpush.bf16.msra.mxu3 %v3287_v6  ;;  %1106 = vmatpush.bf16.msra.mxu0 %v3379_v4  ;;  %v230_v6 = vadd.f32 %v3560_v46, %v3512_v8 }
 0x313   :  { %1025 = vmatpush.bf16.msrb.mxu2 %v3327_v34 }
 0x314   :  { %1094 = vmatpush.bf16.msra.mxu3 %v3301_v14  ;;  %1107 = vmatpush.bf16.msra.mxu0 %v3396_v13 }
 0x317   :  { %1026 = vmatpush.bf16.msrb.mxu2 %v3345_v45 }
 0x318   :  { %1095 = vmatpush.bf16.msra.mxu3 %v3311_v23  ;;  %1108 = vmatpush.bf16.msra.mxu0 %v3404_v21 }
 0x31b   :  { %1027 = vmatpush.bf16.msrb.mxu2 %v3354_v53 }
 0x31c   :  { %1096 = vmatpush.bf16.msra.mxu3 %v3324_v31  ;;  %1109 = vmatpush.bf16.msra.mxu0 %v3412_v25 }
 0x31f   :  { %1028 = vmatpush.bf16.msrb.mxu2 %v3371_v63 }
 0x320   :  { %1097 = vmatpush.bf16.msra.mxu3 %v3342_v42  ;;  %1110 = vmatpush.bf16.msra.mxu0 %v3420_v30 }
 0x323   :  { %1029 = vmatpush.bf16.msrb.mxu2 %v3382_v7 }
 0x324   :  { %1098 = vmatpush.bf16.msra.mxu3 %v3351_v49  ;;  %1111 = vmatpush.bf16.msra.mxu0 %v3429_v35 }
 0x327   :  { %1030 = vmatpush.bf16.msrb.mxu2 %v3399_v16 }
 0x328   :  { %1099 = vmatpush.bf16.msra.mxu3 %v3366_v59  ;;  %1112 = vmatpush.bf16.msra.mxu0 %v3435_v38 }
 0x388   :  { %v842_v3 = vpop.f32.mrf.mxu0 }
 0x389   :  { %v886_v17 = vadd.f32 %v3518_v29, %v842_v3 }
 0x38d   :  { %v816_v14 = vpop.f32.mrf.mxu2  ;;  %v829_v23 = vpop.f32.mrf.mxu3 }
 0x38e   :  { %v846_v31 = vadd.f32 %v816_v14, %v3506_v55  ;;  %v847_v42 = vadd.f32 %v829_v23, %v230_v6  ;;  %v2693_v23 = vld [vmem:[#allocation7 + $0x78] sm:$0xf] }
 0x390   :  { %v2607_v61 = vmul.f32 -1.442695, %v846_v31  ;;  %v2608_v4 = vmul.f32 -1.442695, %v847_v42  ;;  %v844_v49 = vpop.f32.mrf.mxu0  ;;  %v2942_v31 = vld [vmem:[#allocation7 + $0x80] sm:$0xf0] }
 0x391   :  { %v2694_v42 = vor.u32 %v2942_v31, %v2693_v23  ;;  %v2917_v23 = vld [vmem:[#allocation9 + $0x98] sm:$0xf0] }
 0x392   :  { %3008 = vpow2.f32 %v2607_v61  ;;  %v2681_v61 = vld [vmem:[#allocation7 + $0x60] sm:$0xf] }
 0x393   :  { %3010 = vpow2.f32 %v2608_v4  ;;  %v2939_v4 = vld [vmem:[#allocation7 + $0x68] sm:$0xf0] }
 0x395   :  { %v818_v13 = vpop.f32.mrf.mxu2  ;;  %v831_v21 = vpop.f32.mrf.mxu3 }
 0x398   :  { %v3009_v25 = vpop.eup %3008 }
 0x399   :  { %v3011_v59 = vpop.eup %3010  ;;  %v854_v30 = vadd.f32 1.0, %v3009_v25 }
 0x39a   :  { %v855_v35 = vadd.f32 1.0, %v3011_v59 }
 0x39b   :  { %3012 = vrcp.f32 %v854_v30  ;;  %v867_v24 = vand.u32 2147483648, %v854_v30  ;;  %v865_v5 = vand.u32 2147483647, %v854_v30  ;;  %vm861_vm2 = vweird.f32 %v854_v30 }
 0x39c   :  { %3014 = vrcp.f32 %v855_v35  ;;  %v882_v44 = vand.u32 2147483648, %v855_v35  ;;  %vm876_vm6 = vweird.f32 %v855_v35  ;;  %v880_v0 = vand.u32 2147483647, %v855_v35 }
 0x39d   :  { %v868_v33 = vor.u32 1.1754944e-38, %v867_v24  ;;  %vm866_vm4 = vcmp.eq.f32.partialorder %v865_v5, 8.507059e+37  ;;  %v2645_v5 = vld [vmem:[#allocation7 + $0x18] sm:$0xf] }
 0x39e   :  { %v883_v57 = vor.u32 1.1754944e-38, %v882_v44  ;;  %vm881_vm8 = vcmp.eq.f32.partialorder %v880_v0, 8.507059e+37 }
 0x3a1   :  { %v3013_v38 = vpop.eup %3012 }
 0x3a2   :  { %v3015_v46 = vpop.eup %3014  ;;  %v857_v40 = vmul.f32 %v3013_v38, %v854_v30  ;;  %vm862_vm1 = vweird.f32 %v3013_v38  ;;  %v2669_v30 = vld [vmem:[#allocation7 + $0x48] sm:$0xf] }
 0x3a3   :  { %v872_v55 = vmul.f32 %v3015_v46, %v855_v35  ;;  %vm863_vm3 = vmor %vm861_vm2, %vm862_vm1  ;;  %vm877_vm5 = vweird.f32 %v3015_v46  ;;  %v2936_v35 = vld [vmem:[#allocation7 + $0x50] sm:$0xf0] }
 0x3a4   :  { %v858_v11 = vsub.f32 1.0, %v857_v40  ;;  %vm878_vm7 = vmor %vm876_vm6, %vm877_vm5  ;;  %v2657_v40 = vld [vmem:[#allocation7 + $0x30] sm:$0xf] }
 0x3a5   :  { %v873_v39 = vsub.f32 1.0, %v872_v55 }
 0x3a6   :  { %v859_v26 = vmul.f32 %v3013_v38, %v858_v11  ;;  %v2933_v11 = vld [vmem:[#allocation7 + $0x38] sm:$0xf0] }
 0x3a7   :  { %v874_v20 = vmul.f32 %v3015_v46, %v873_v39 }
 0x3a8   :  { %v860_v48 = vadd.f32 %v3013_v38, %v859_v26  ;;  %v2658_v26 = vor.u32 %v2933_v11, %v2657_v40  ;;  %v2719_v40 = vld [vmem:[#allocation7 + $0xb4] sm:$0xf0]  ;;  %v2725_v11 = vld [vmem:[#allocation7 + $0xb0] sm:$0xf] }
 0x3a9   :  { %v875_v32 = vadd.f32 %v3015_v46, %v874_v20 }
 0x3aa   :  { %v864_v47 = vsel %vm863_vm3, %v3013_v38, %v860_v48  ;;  %v2930_v48 = vld [vmem:[#allocation7 + $0x20] sm:$0xf0] }
 0x3ab   :  { %v869_v36 = vsel %vm866_vm4, %v868_v33, %v864_v47  ;;  %v879_v22 = vsel %vm878_vm7, %v3015_v46, %v875_v32  ;;  %v2670_v46 = vor.u32 %v2936_v35, %v2669_v30 }
 0x3ac   :  { %v887_v2 = vmul.f32 %v886_v17, %v869_v36  ;;  %v884_v10 = vsel %vm881_vm8, %v883_v57, %v879_v22  ;;  %v2646_v17 = vor.u32 %v2930_v48, %v2645_v5  ;;  %v2765_v48 = vld [vmem:[#allocation9 + $0x48] sm:$0xf] }
 0x3ae   :  { %v888_v9 = vadd.f32 %v887_v2, %v259_v15  ;;  %v2633_v15 = vld [vmem:[#allocation7] sm:$0xf]  ;;  %v2927_v2 = vld [vmem:[#allocation7 + $0x8] sm:$0xf0] }
 0x3af   :  { %v2634_v0 = vor.u32 %v2927_v2, %v2633_v15  ;;  %v2946_v2 = vld [vmem:[#allocation7 + $0xa0] sm:$0xf0] }
 0x3b0   :  { %3016 = vtanh.f32 %v888_v9 }
 0x3b6   :  { %v3017_v56 = vpop.eup %3016 }
 0x3b7   :  { %v890_v1 = vsub.f32 %v3653_v62, %v3017_v56 }
 0x3b9   :  { %v891_v18 = vmul.f32 %v890_v1, %v884_v10  ;;  %v261_v10 = vadd.f32 %v3566_v52, %v3521_v28 }
 0x3bb   :  { %v3688_v12 = vadd.f32 %v3017_v56, %v891_v18 }
 0x3bd   :  { %v893_v50 = vpack.c.bf16 %v3688_v12, %v3688_v12 }
 0x3bf   :  { %895 = vst [vmem:[#allocation3 + $0x10] sm:$0xf] %v893_v50  ;;  %910 = vmatmul.bf16.vlgmr.msrb.gmra.mxu1 %v893_v50  ;;  %923 = vmatmul.bf16.vlgmr.msra.gmra.mxu2 %v893_v50 }
 0x3c0   :  { %936 = vmatmul.bf16.vlgmr.msrb.gmra.mxu3 %v893_v50  ;;  %1118 = vmatpush.bf16.msrb.mxu1 %v3305_v19  ;;  %v2717_v19 = vld [vmem:[#allocation7 + $0xa8] sm:$0xf] }
 0x3c4   :  { %1119 = vmatpush.bf16.msrb.mxu1 %v3317_v27  ;;  %v2718_v27 = vor.u32 %v2948_v43, %v2717_v19 }
 0x3c6   :  { %1418 = vmatpush.bf16.msra.mxu2 %v2718_v27 }
 0x3c8   :  { %1120 = vmatpush.bf16.msrb.mxu1 %v3327_v34  ;;  %v232_v34 = vadd.f32 %v3564_v51, %v3512_v8  ;;  %v2682_v51 = vor.u32 %v2939_v4, %v2681_v61  ;;  %v2914_v61 = vld [vmem:[#allocation9 + $0x80] sm:$0xf0] }
 0x3cc   :  { %1121 = vmatpush.bf16.msrb.mxu1 %v3345_v45  ;;  %v2705_v45 = vld [vmem:[#allocation7 + $0x90] sm:$0xf] }
 0x3d0   :  { %1122 = vmatpush.bf16.msrb.mxu1 %v3354_v53  ;;  %v2945_v53 = vld [vmem:[#allocation7 + $0x98] sm:$0xf0] }
 0x3d4   :  { %1123 = vmatpush.bf16.msrb.mxu1 %v3371_v63 }
 0x3d8   :  { %1124 = vmatpush.bf16.msrb.mxu1 %v3382_v7  ;;  %v2706_v7 = vor.u32 %v2945_v53, %v2705_v45 }
 0x3da   :  { %1419 = vmatpush.bf16.msra.mxu2 %v2706_v7  ;;  %v3715_v7 = vld [vmem:[#allocation3 + $0x8] sm:$0xff] }
 0x3dc   :  { %1125 = vmatpush.bf16.msrb.mxu1 %v3399_v16 }
 0x3de   :  { %1420 = vmatpush.bf16.msra.mxu2 %v2694_v42  ;;  %v2789_v42 = vld [vmem:[#allocation9 + $0x78] sm:$0xf] }
 0x3df   :  { %v3727_v4 = vor.u32 %v2914_v61, %v2789_v42  ;;  %v2729_v42 = vld [vmem:[#allocation9] sm:$0xf]  ;;  %v2899_v61 = vld [vmem:[#allocation9 + $0x8] sm:$0xf0] }
 0x3e2   :  { %1421 = vmatpush.bf16.msra.mxu2 %v2682_v51 }
 0x3e6   :  { %1422 = vmatpush.bf16.msra.mxu2 %v2670_v46  ;;  %v2947_v46 = vld [vmem:[#allocation7 + $0xac] sm:$0xf] }
 0x3ea   :  { %1423 = vmatpush.bf16.msra.mxu2 %v2658_v26 }
 0x3ee   :  { %1424 = vmatpush.bf16.msra.mxu2 %v2646_v17  ;;  %v2944_v17 = vld [vmem:[#allocation7 + $0x94] sm:$0xf] }
 0x3f2   :  { %1425 = vmatpush.bf16.msra.mxu2 %v2634_v0  ;;  %v2753_v0 = vld [vmem:[#allocation9 + $0x30] sm:$0xf] }
 0x43c   :  { %v911_v37 = vpop.f32.mrf.mxu1 }
 0x43d   :  { %v941_v62 = vadd.f32 %v911_v37, %v203_v60 }
 0x43f   :  { %v2609_v3 = vmul.f32 -1.442695, %v941_v62 }
 0x441   :  { %3018 = vpow2.f32 %v2609_v3 }
 0x442   :  { %v924_v63 = vpop.f32.mrf.mxu2 }
 0x443   :  { %v942_v6 = vadd.f32 %v924_v63, %v232_v34  ;;  %v937_v16 = vpop.f32.mrf.mxu3  ;;  %v3712_v63 = vld [vmem:[#allocation3] sm:$0xff] }
 0x444   :  { %v913_v14 = vpop.f32.mrf.mxu1  ;;  %v981_v57 = vadd.f32 %v3518_v29, %v937_v16  ;;  %v2920_v16 = vld [vmem:[#allocation9 + $0xb0] sm:$0xf0] }
 0x445   :  { %v2610_v58 = vmul.f32 -1.442695, %v942_v6  ;;  %v2813_v6 = vld [vmem:[#allocation9 + $0xa8] sm:$0xf] }
 0x446   :  { %v3721_v14 = vor.u32 %v2920_v16, %v2813_v6 }
 0x447   :  { %v3019_v49 = vpop.eup %3018  ;;  %3020 = vpow2.f32 %v2610_v58  ;;  %v2801_v58 = vld [vmem:[#allocation9 + $0x90] sm:$0xf] }
 0x448   :  { %v949_v13 = vadd.f32 1.0, %v3019_v49  ;;  %v3724_v31 = vor.u32 %v2917_v23, %v2801_v58  ;;  %v235_v49 = vadd.f32 %v3568_v54, %v3512_v8  ;;  %v2940_v58 = vld [vmem:[#allocation7 + $0x70] sm:$0xf0] }
 0x44a   :  { %3022 = vrcp.f32 %v949_v13  ;;  %v926_v21 = vpop.f32.mrf.mxu2  ;;  %v962_v39 = vand.u32 2147483648, %v949_v13  ;;  %v960_v36 = vand.u32 2147483647, %v949_v13  ;;  %vm956_vm10 = vweird.f32 %v949_v13 }
 0x44b   :  { %v939_v25 = vpop.f32.mrf.mxu3  ;;  %v2777_v21 = vld [vmem:[#allocation9 + $0x60] sm:$0xf] }
 0x44c   :  { %v963_v44 = vor.u32 1.1754944e-38, %v962_v39  ;;  %vm961_vm12 = vcmp.eq.f32.partialorder %v960_v36, 8.507059e+37  ;;  %v2911_v25 = vld [vmem:[#allocation9 + $0x68] sm:$0xf0]  ;;  %v2713_v36 = vld [vmem:[#allocation7 + $0x98] sm:$0xf] }
 0x44d   :  { %v3021_v59 = vpop.eup %3020 }
 0x44e   :  { %v950_v38 = vadd.f32 1.0, %v3021_v59  ;;  %v4211_v59 = vld [vmem:[#allocation12_spill] sm:$0xff] }
 0x450   :  { %v3023_v24 = vpop.eup %3022  ;;  %3024 = vrcp.f32 %v950_v38  ;;  %v977_v62 = vand.u32 2147483648, %v950_v38  ;;  %vm971_vm14 = vweird.f32 %v950_v38  ;;  %v975_v19 = vand.u32 2147483647, %v950_v38 }
 0x451   :  { %v952_v55 = vmul.f32 %v3023_v24, %v949_v13  ;;  %vm957_vm9 = vweird.f32 %v3023_v24 }
 0x452   :  { %vm958_vm11 = vmor %vm956_vm10, %vm957_vm9  ;;  %v978_v3 = vor.u32 1.1754944e-38, %v977_v62  ;;  %vm976_vm0 = vcmp.eq.f32.partialorder %v975_v19, 8.507059e+37 }
 0x453   :  { %v953_v33 = vsub.f32 1.0, %v952_v55  ;;  %v2949_v55 = vld [vmem:[#allocation7 + $0xb8] sm:$0xf0] }
 0x454   :  { %v2726_v54 = vor.u32 %v2949_v55, %v2725_v11  ;;  %v2932_v11 = vld [vmem:[#allocation7 + $0x34] sm:$0xf] }
 0x455   :  { %v954_v47 = vmul.f32 %v3023_v24, %v953_v33  ;;  %v2908_v33 = vld [vmem:[#allocation9 + $0x50] sm:$0xf0] }
 0x456   :  { %v3025_v20 = vpop.eup %3024  ;;  %v3736_v39 = vor.u32 %v2908_v33, %v2765_v48 }
 0x457   :  { %v967_v9 = vmul.f32 %v3025_v20, %v950_v38  ;;  %v955_v32 = vadd.f32 %v3023_v24, %v954_v47  ;;  %vm972_vm13 = vweird.f32 %v3025_v20  ;;  %v3733_v38 = vor.u32 %v2911_v25, %v2777_v21  ;;  %v2707_v47 = vld [vmem:[#allocation7 + $0x9c] sm:$0xf0]  ;;  %v2677_v25 = vld [vmem:[#allocation7 + $0x50] sm:$0xf] }
 0x458   :  { %vm973_vm15 = vmor %vm971_vm14, %vm972_vm13  ;;  %v2710_v15 = vor.u32 %v2944_v17, %v2707_v47 }
 0x459   :  { %v968_v22 = vsub.f32 1.0, %v967_v9  ;;  %v959_v56 = vsel %vm958_vm11, %v3023_v24, %v955_v32  ;;  %v2722_v24 = vor.u32 %v2947_v46, %v2719_v40  ;;  %v2714_v9 = vor.u32 %v2946_v2, %v2713_v36  ;;  %v2647_v2 = vld [vmem:[#allocation7 + $0x24] sm:$0xf0] }
 0x45a   :  { %v964_v1 = vsel %vm961_vm12, %v963_v44, %v959_v56 }
 0x45b   :  { %v982_v18 = vmul.f32 %v981_v57, %v964_v1  ;;  %v969_v50 = vmul.f32 %v3025_v20, %v968_v22  ;;  %1447 = vmatpush.bf16.msrb.mxu3 %v2722_v24  ;;  %v2905_v22 = vld [vmem:[#allocation9 + $0x38] sm:$0xf0]  ;;  %v2695_v1 = vld [vmem:[#allocation7 + $0x84] sm:$0xf0]  ;;  %v2659_v24 = vld [vmem:[#allocation7 + $0x3c] sm:$0xf0] }
 0x45c   :  { %v3741_v56 = vor.u32 %v2905_v22, %v2753_v0  ;;  %v2941_v57 = vld [vmem:[#allocation7 + $0x7c] sm:$0xf] }
 0x45d   :  { %v983_v60 = vadd.f32 %v982_v18, %v261_v10  ;;  %v970_v37 = vadd.f32 %v3025_v20, %v969_v50  ;;  %v2701_v10 = vld [vmem:[#allocation7 + $0x80] sm:$0xf]  ;;  %v2698_v18 = vor.u32 %v2941_v57, %v2695_v1  ;;  %v2943_v50 = vld [vmem:[#allocation7 + $0x88] sm:$0xf0] }
 0x45f   :  { %3026 = vtanh.f32 %v983_v60  ;;  %v974_v43 = vsel %vm973_vm15, %v3025_v20, %v970_v37  ;;  %1448 = vmatpush.bf16.msrb.mxu3 %v2710_v15  ;;  %v2702_v37 = vor.u32 %v2943_v50, %v2701_v10  ;;  %v2929_v15 = vld [vmem:[#allocation7 + $0x1c] sm:$0xf] }
 0x460   :  { %v979_v34 = vsel %vm976_vm0, %v978_v3, %v974_v43  ;;  %v2741_v43 = vld [vmem:[#allocation9 + $0x18] sm:$0xf] }
 0x463   :  { %1449 = vmatpush.bf16.msrb.mxu3 %v2698_v18  ;;  %v3757_v18 = vld [vmem:[%s4196_s4] ss:$0 sm:$0xff] }
 0x465   :  { %v3027_v27 = vpop.eup %3026 }
 0x466   :  { %v985_v29 = vsub.f32 %v3688_v12, %v3027_v27 }
 0x468   :  { %v986_v45 = vmul.f32 %v985_v29, %v979_v34  ;;  %v2938_v34 = vld [vmem:[#allocation7 + $0x64] sm:$0xf] }
 0x46a   :  { %v3708_v52 = vadd.f32 %v3027_v27, %v986_v45  ;;  %v2902_v27 = vld [vmem:[#allocation9 + $0x20] sm:$0xf0]  ;;  %v2683_v45 = vld [vmem:[#allocation7 + $0x6c] sm:$0xf0] }
 0x46b   :  { %v3746_v29 = vor.u32 %v2902_v27, %v2741_v43  ;;  %v2686_v16 = vor.u32 %v2938_v34, %v2683_v45  ;;  %v4212_v43 = vld [vmem:[#allocation14_spill] sm:$0xff] }
 0x46c   :  { %v988_v53 = vpack.c.bf16 %v3708_v52, %v3708_v52  ;;  %v264_v27 = vadd.f32 %v4212_v43, %v3521_v28 }
 0x46d   :  { %1450 = vmatpush.bf16.msrb.mxu3 %v2686_v16 }
 0x46e   :  { %990 = vst [vmem:[#allocation3 + $0x14] sm:$0xf] %v988_v53  ;;  %1005 = vmatmul.bf16.vlgmr.msrb.gmra.mxu0 %v988_v53  ;;  %1018 = vmatmul.bf16.vlgmr.msra.gmra.mxu1 %v988_v53 }
 0x46f   :  { %1031 = vmatmul.bf16.vlgmr.msrb.gmra.mxu2 %v988_v53  ;;  %1663 = vmatpush.bf16.msra.mxu1 %v3721_v14  ;;  %v2689_v53 = vld [vmem:[#allocation7 + $0x68] sm:$0xf] }
 0x470   :  { %1476 = vmatpush.bf16.msrb.mxu0 %v2726_v54  ;;  %v2690_v23 = vor.u32 %v2940_v58, %v2689_v53  ;;  %v2934_v54 = vld [vmem:[#allocation7 + $0x40] sm:$0xf0]  ;;  %v2928_v53 = vld [vmem:[#allocation7 + $0x10] sm:$0xf0] }
 0x473   :  { %1664 = vmatpush.bf16.msra.mxu1 %v3724_v31 }
 0x474   :  { %1477 = vmatpush.bf16.msrb.mxu0 %v2714_v9  ;;  %v2653_v9 = vld [vmem:[#allocation7 + $0x20] sm:$0xf] }
 0x475   :  { %v3718_v12 = vld [vmem:[#allocation3 + $0x10] sm:$0xff] }
 0x477   :  { %1665 = vmatpush.bf16.msra.mxu1 %v3727_v4 }
 0x478   :  { %1478 = vmatpush.bf16.msrb.mxu0 %v2702_v37  ;;  %v2926_v37 = vld [vmem:[#allocation7 + $0x4] sm:$0xf] }
 0x47b   :  { %1666 = vmatpush.bf16.msra.mxu1 %v3733_v38 }
 0x47c   :  { %1479 = vmatpush.bf16.msrb.mxu0 %v2690_v23 }
 0x47f   :  { %1426 = vmatmul.bf16.vlgmr.msra.gmra.mxu2 %v3712_v63  ;;  %1667 = vmatpush.bf16.msra.mxu1 %v3736_v39 }
 0x483   :  { %1668 = vmatpush.bf16.msra.mxu1 %v3741_v56 }
 0x487   :  { %1669 = vmatpush.bf16.msra.mxu1 %v3746_v29 }
 0x48f   :  { %1431 = vmatmul.bf16.gmra.mxu2 %v3715_v7 }
 0x49f   :  { %1436 = vmatmul.bf16.gmra.mxu2 %v3718_v12 }
 0x4eb   :  { %v1006_v13 = vpop.f32.mrf.mxu0  ;;  %v1019_v51 = vpop.f32.mrf.mxu1 }
 0x4ec   :  { %v1036_v30 = vadd.f32 %v1006_v13, %v4211_v59  ;;  %v1037_v35 = vadd.f32 %v1019_v51, %v235_v49  ;;  %v3750_v49 = vor.u32 %v2899_v61, %v2729_v42  ;;  %v2935_v13 = vld [vmem:[#allocation7 + $0x4c] sm:$0xf]  ;;  %v2671_v51 = vld [vmem:[#allocation7 + $0x54] sm:$0xf0]  ;;  %v2937_v59 = vld [vmem:[#allocation7 + $0x58] sm:$0xf0] }
 0x4ed   :  { %v2674_v21 = vor.u32 %v2935_v13, %v2671_v51 }
 0x4ee   :  { %v2611_v26 = vmul.f32 -1.442695, %v1036_v30  ;;  %v2612_v5 = vmul.f32 -1.442695, %v1037_v35  ;;  %1670 = vmatpush.bf16.msra.mxu1 %v3750_v49  ;;  %v2678_v35 = vor.u32 %v2937_v59, %v2677_v25 }
 0x4ef   :  { %1451 = vmatpush.bf16.msrb.mxu3 %v2674_v21 }
 0x4f0   :  { %3028 = vpow2.f32 %v2611_v26  ;;  %1480 = vmatpush.bf16.msrb.mxu0 %v2678_v35  ;;  %v2662_v26 = vor.u32 %v2932_v11, %v2659_v24  ;;  %v2815_v35 = vld [vmem:[#allocation9 + $0xb4] sm:$0xf0] }
 0x4f1   :  { %3030 = vpow2.f32 %v2612_v5  ;;  %v2665_v5 = vld [vmem:[#allocation7 + $0x38] sm:$0xf] }
 0x4f2   :  { %v3738_v20 = vpop.f32.mrf.mxu2  ;;  %v2666_v47 = vor.u32 %v2934_v54, %v2665_v5  ;;  %v2910_v54 = vld [vmem:[#allocation9 + $0x64] sm:$0xf] }
 0x4f3   :  { %v1008_v32 = vpop.f32.mrf.mxu0  ;;  %v1021_v44 = vpop.f32.mrf.mxu1  ;;  %1452 = vmatpush.bf16.msrb.mxu3 %v2662_v26  ;;  %v1076_v50 = vadd.f32 %v3757_v18, %v3738_v20  ;;  %v2791_v26 = vld [vmem:[#allocation9 + $0x84] sm:$0xf0] }
 0x4f4   :  { %1481 = vmatpush.bf16.msrb.mxu0 %v2666_v47  ;;  %v2650_v32 = vor.u32 %v2929_v15, %v2647_v2  ;;  %v2931_v44 = vld [vmem:[#allocation7 + $0x28] sm:$0xf0]  ;;  %v2767_v47 = vld [vmem:[#allocation9 + $0x54] sm:$0xf0]  ;;  %v2904_v15 = vld [vmem:[#allocation9 + $0x34] sm:$0xf] }
 0x4f5   :  { %v2654_v22 = vor.u32 %v2931_v44, %v2653_v9  ;;  %v2755_v2 = vld [vmem:[#allocation9 + $0x3c] sm:$0xf0]  ;;  %v4213_v9 = vmov 0.0|0.0   ;;  %v2901_v44 = vld [vmem:[#allocation9 + $0x1c] sm:$0xf] }
 0x4f6   :  { %v3029_v60 = vpop.eup %3028 }
 0x4f7   :  { %v3031_v62 = vpop.eup %3030  ;;  %v1044_v19 = vadd.f32 1.0, %v3029_v60  ;;  %1453 = vmatpush.bf16.msrb.mxu3 %v2650_v32  ;;  %v3798_v32 = vor.u32 %v2904_v15, %v2755_v2 }
 0x4f8   :  { %v3744_v3 = vadd.f32 1.0, %v3031_v62  ;;  %1482 = vmatpush.bf16.msrb.mxu0 %v2654_v22  ;;  %v2635_v62 = vld [vmem:[#allocation7 + $0xc] sm:$0xf0] }
 0x4f9   :  { %3032 = vrcp.f32 %v1044_v19  ;;  %v1055_v33 = vand.u32 2147483647, %v1044_v19  ;;  %v1057_v17 = vand.u32 2147483648, %v1044_v19  ;;  %vm1051_vm2 = vweird.f32 %v1044_v19 }
 0x4fa   :  { %3034 = vrcp.f32 %v3744_v3  ;;  %v1034_v6 = vpop.f32.mrf.mxu2  ;;  %v2638_v45 = vor.u32 %v2926_v37, %v2635_v62  ;;  %v1072_v23 = vand.u32 2147483648, %v3744_v3  ;;  %vm1066_vm6 = vweird.f32 %v3744_v3 }
 0x4fb   :  { %v1058_v1 = vor.u32 1.1754944e-38, %v1057_v17  ;;  %vm1056_vm4 = vcmp.eq.f32.partialorder %v1055_v33, 8.507059e+37  ;;  %v1070_v42 = vand.u32 2147483647, %v3744_v3  ;;  %v2907_v17 = vld [vmem:[#allocation9 + $0x4c] sm:$0xf] }
 0x4fc   :  { %1454 = vmatpush.bf16.msrb.mxu3 %v2638_v45  ;;  %v1073_v51 = vor.u32 1.1754944e-38, %v1072_v23  ;;  %v2821_v23 = vld [vmem:[#allocation9 + $0xb0] sm:$0xf] }
 0x4fd   :  { %vm1071_vm8 = vcmp.eq.f32.partialorder %v1070_v42, 8.507059e+37  ;;  %v2921_v42 = vld [vmem:[#allocation9 + $0xb8] sm:$0xf0] }
 0x4ff   :  { %v3033_v30 = vpop.eup %3032 }
 0x500   :  { %v3035_v46 = vpop.eup %3034  ;;  %v1047_v40 = vmul.f32 %v3033_v30, %v1044_v19  ;;  %vm1052_vm1 = vweird.f32 %v3033_v30  ;;  %v2641_v19 = vld [vmem:[#allocation7 + $0x8] sm:$0xf] }
 0x501   :  { %v1062_v48 = vmul.f32 %v3035_v46, %v3744_v3  ;;  %vm1053_vm3 = vmor %vm1051_vm2, %vm1052_vm1  ;;  %v2642_v16 = vor.u32 %v2928_v53, %v2641_v19  ;;  %vm1067_vm5 = vweird.f32 %v3035_v46  ;;  %v2803_v3 = vld [vmem:[#allocation9 + $0x9c] sm:$0xf0]  ;;  %v4215_v19 = vld [vmem:[#allocation13_spill] sm:$0xff] }
 0x502   :  { %v1048_v55 = vsub.f32 1.0, %v1047_v40  ;;  %vm1068_vm7 = vmor %vm1066_vm6, %vm1067_vm5  ;;  %v208_v43 = vadd.f32 %v4215_v19, %v3494_v41  ;;  %v2809_v41 = vld [vmem:[#allocation9 + $0x98] sm:$0xf] }
 0x503   :  { %v1063_v57 = vsub.f32 1.0, %v1062_v48  ;;  %1483 = vmatpush.bf16.msrb.mxu0 %v2642_v16  ;;  %v2779_v48 = vld [vmem:[#allocation9 + $0x6c] sm:$0xf0] }
 0x504   :  { %v1049_v36 = vmul.f32 %v3033_v30, %v1048_v55  ;;  %v2916_v55 = vld [vmem:[#allocation9 + $0x94] sm:$0xf]  ;;  %v3785_v33 = vor.u32 %v2910_v54, %v2779_v48 }
 0x505   :  { %v1064_v6 = vmul.f32 %v3035_v46, %v1063_v57  ;;  %v2731_v57 = vld [vmem:[#allocation9 + $0xc] sm:$0xf0] }
 0x506   :  { %v1050_v0 = vadd.f32 %v3033_v30, %v1049_v36  ;;  %v3790_v36 = vor.u32 %v2907_v17, %v2767_v47  ;;  %v2773_v17 = vld [vmem:[#allocation9 + $0x50] sm:$0xf]  ;;  %v2909_v47 = vld [vmem:[#allocation9 + $0x58] sm:$0xf0] }
 0x507   :  { %v1065_v20 = vadd.f32 %v3035_v46, %v1064_v6 }
 0x508   :  { %v1054_v10 = vsel %vm1053_vm3, %v3033_v30, %v1050_v0  ;;  %v2919_v30 = vld [vmem:[#allocation9 + $0xac] sm:$0xf]  ;;  %v2743_v0 = vld [vmem:[#allocation9 + $0x24] sm:$0xf0] }
 0x509   :  { %v1059_v60 = vsel %vm1056_vm4, %v1058_v1, %v1054_v10  ;;  %v1069_v61 = vsel %vm1068_vm7, %v3035_v46, %v1065_v20  ;;  %v3771_v24 = vor.u32 %v2919_v30, %v2815_v35  ;;  %v2913_v46 = vld [vmem:[#allocation9 + $0x7c] sm:$0xf]  ;;  %v3803_v22 = vor.u32 %v2901_v44, %v2743_v0  ;;  %v2915_v30 = vld [vmem:[#allocation9 + $0x88] sm:$0xf0] }
 0x50a   :  { %v1077_v34 = vmul.f32 %v1076_v50, %v1059_v60  ;;  %v1074_v25 = vsel %vm1071_vm8, %v1073_v51, %v1069_v61  ;;  %v3780_v5 = vor.u32 %v2913_v46, %v2791_v26  ;;  %v2918_v51 = vld [vmem:[#allocation9 + $0xa0] sm:$0xf0] }
 0x50c   :  { %v1078_v58 = vadd.f32 %v1077_v34, %v264_v27 }
 0x50e   :  { %3036 = vtanh.f32 %v1078_v58 }
 0x514   :  { %v3037_v13 = vpop.eup %3036 }
 0x515   :  { %v1080_v21 = vsub.f32 %v3708_v52, %v3037_v13  ;;  %v3775_v52 = vor.u32 %v2916_v55, %v2803_v3  ;;  %v2785_v55 = vld [vmem:[#allocation9 + $0x68] sm:$0xf]  ;;  %v2912_v3 = vld [vmem:[#allocation9 + $0x70] sm:$0xf0] }
 0x516   :  { %v3853_v54 = vor.u32 %v2912_v3, %v2785_v55 }
 0x517   :  { %v1081_v59 = vmul.f32 %v1080_v21, %v1074_v25  ;;  %v3843_v21 = vor.u32 %v2918_v51, %v2809_v41 }
 0x519   :  { %v3767_v40 = vadd.f32 %v3037_v13, %v1081_v59  ;;  %v3837_v13 = vor.u32 %v2921_v42, %v2821_v23  ;;  %v2797_v59 = vld [vmem:[#allocation9 + $0x80] sm:$0xf]  ;;  %v2737_v23 = vld [vmem:[#allocation9 + $0x8] sm:$0xf]  ;;  %v2900_v42 = vld [vmem:[#allocation9 + $0x10] sm:$0xf0] }
 0x51b   :  { %v1083_v11 = vpack.c.bf16 %v3767_v40, %v3767_v40  ;;  %1689 = vmatpush.bf16.msrb.mxu2 %v3837_v13 }
 0x51d   :  { %1085 = vst [vmem:[#allocation3 + $0x18] sm:$0xf] %v1083_v11  ;;  %1100 = vmatmul.bf16.vlgmr.msra.gmra.mxu3 %v1083_v11  ;;  %1113 = vmatmul.bf16.vlgmr.msra.gmra.mxu0 %v1083_v11 }
 0x51e   :  { %1126 = vmatmul.bf16.vlgmr.msrb.gmra.mxu1 %v1083_v11  ;;  %1753 = vmatpush.bf16.msra.mxu3 %v3721_v14  ;;  %v3848_v11 = vor.u32 %v2915_v30, %v2797_v59 }
 0x51f   :  { %1676 = vmatpush.bf16.msrb.mxu1 %v3771_v24  ;;  %1766 = vmatpush.bf16.msra.mxu0 %v3771_v24 }
 0x520   :  { %1690 = vmatpush.bf16.msrb.mxu2 %v3843_v21 }
 0x522   :  { %1754 = vmatpush.bf16.msra.mxu3 %v3724_v31 }
 0x523   :  { %1677 = vmatpush.bf16.msrb.mxu1 %v3775_v52  ;;  %1767 = vmatpush.bf16.msra.mxu0 %v3775_v52 }
 0x524   :  { %1691 = vmatpush.bf16.msrb.mxu2 %v3848_v11 }
 0x526   :  { %1755 = vmatpush.bf16.msra.mxu3 %v3727_v4 }
 0x527   :  { %1678 = vmatpush.bf16.msrb.mxu1 %v3780_v5  ;;  %1768 = vmatpush.bf16.msra.mxu0 %v3780_v5 }
 0x528   :  { %1692 = vmatpush.bf16.msrb.mxu2 %v3853_v54 }
 0x52a   :  { %1756 = vmatpush.bf16.msra.mxu3 %v3733_v38 }
 0x52b   :  { %1679 = vmatpush.bf16.msrb.mxu1 %v3785_v33  ;;  %1769 = vmatpush.bf16.msra.mxu0 %v3785_v33 }
 0x52d   :  { %1455 = vmatmul.bf16.vlgmr.msrb.gmra.mxu3 %v3712_v63  ;;  %1484 = vmatmul.bf16.vlgmr.msrb.gmra.mxu0 %v3712_v63  ;;  %v2898_v63 = vld [vmem:[#allocation9 + $0x4] sm:$0xf] }
 0x52e   :  { %1671 = vmatmul.bf16.vlgmr.msra.gmra.mxu1 %v4213_v9  ;;  %1757 = vmatpush.bf16.msra.mxu3 %v3736_v39  ;;  %v3808_v1 = vor.u32 %v2898_v63, %v2731_v57  ;;  %v3860_v63 = vor.u32 %v2909_v47, %v2773_v17 }
 0x52f   :  { %1680 = vmatpush.bf16.msrb.mxu1 %v3790_v36  ;;  %1770 = vmatpush.bf16.msra.mxu0 %v3790_v36 }
 0x530   :  { %1693 = vmatpush.bf16.msrb.mxu2 %v3860_v63 }
 0x532   :  { %1758 = vmatpush.bf16.msra.mxu3 %v3741_v56 }
 0x533   :  { %1681 = vmatpush.bf16.msrb.mxu1 %v3798_v32  ;;  %1771 = vmatpush.bf16.msra.mxu0 %v3798_v32 }
 0x536   :  { %1759 = vmatpush.bf16.msra.mxu3 %v3746_v29 }
 0x537   :  { %1682 = vmatpush.bf16.msrb.mxu1 %v3803_v22  ;;  %1772 = vmatpush.bf16.msra.mxu0 %v3803_v22 }
 0x53a   :  { %1760 = vmatpush.bf16.msra.mxu3 %v3750_v49 }
 0x53b   :  { %1683 = vmatpush.bf16.msrb.mxu1 %v3808_v1  ;;  %1773 = vmatpush.bf16.msra.mxu0 %v3808_v1 }
 0x53d   :  { %1460 = vmatmul.bf16.gmra.mxu3 %v3715_v7  ;;  %1489 = vmatmul.bf16.gmra.mxu0 %v3715_v7  ;;  %v4214_v7 = vld [vmem:[#allocation15_spill] sm:$0xff] }
 0x53e   :  { %1856 = vmatpush.bf16.msrb.mxu3 %v3771_v24  ;;  %1684 = vmatmul.bf16.vlgmr.msrb.gmra.mxu1 %v4213_v9  ;;  %v237_v10 = vadd.f32 %v4214_v7, %v3512_v8 }
 0x53f   :  { %1779 = vmatpush.bf16.msra.mxu1 %v3837_v13  ;;  %1869 = vmatpush.bf16.msrb.mxu0 %v3837_v13 }
 0x542   :  { %1857 = vmatpush.bf16.msrb.mxu3 %v3775_v52 }
 0x543   :  { %1780 = vmatpush.bf16.msra.mxu1 %v3843_v21  ;;  %1870 = vmatpush.bf16.msrb.mxu0 %v3843_v21 }
 0x546   :  { %1858 = vmatpush.bf16.msrb.mxu3 %v3780_v5 }
 0x547   :  { %1781 = vmatpush.bf16.msra.mxu1 %v3848_v11  ;;  %1871 = vmatpush.bf16.msrb.mxu0 %v3848_v11 }
 0x54a   :  { %1859 = vmatpush.bf16.msrb.mxu3 %v3785_v33 }
 0x54b   :  { %1782 = vmatpush.bf16.msra.mxu1 %v3853_v54  ;;  %1872 = vmatpush.bf16.msrb.mxu0 %v3853_v54 }
 0x54d   :  { %1465 = vmatmul.bf16.gmra.mxu3 %v3718_v12  ;;  %1494 = vmatmul.bf16.gmra.mxu0 %v3718_v12 }
 0x54e   :  { %1860 = vmatpush.bf16.msrb.mxu3 %v3790_v36 }
 0x54f   :  { %1783 = vmatpush.bf16.msra.mxu1 %v3860_v63  ;;  %1873 = vmatpush.bf16.msrb.mxu0 %v3860_v63 }
 0x552   :  { %1861 = vmatpush.bf16.msrb.mxu3 %v3798_v32 }
 0x556   :  { %1862 = vmatpush.bf16.msrb.mxu3 %v3803_v22 }
 0x55a   :  { %1863 = vmatpush.bf16.msrb.mxu3 %v3808_v1 }
 0x59a   :  { %v1114_v50 = vpop.f32.mrf.mxu0 }
 0x59b   :  { %v1132_v60 = vadd.f32 %v1114_v50, %v237_v10  ;;  %v3829_v37 = vpop.f32.mrf.mxu1  ;;  %v2761_v10 = vld [vmem:[#allocation9 + $0x38] sm:$0xf]  ;;  %v2906_v50 = vld [vmem:[#allocation9 + $0x40] sm:$0xf0] }
 0x59c   :  { %v1171_v19 = vadd.f32 %v3757_v18, %v3829_v37 }
 0x59d   :  { %v2614_v62 = vmul.f32 -1.442695, %v1132_v60 }
 0x59f   :  { %3038 = vpow2.f32 %v2614_v62 }
 0x5a0   :  { %v1101_v27 = vpop.f32.mrf.mxu3 }
 0x5a1   :  { %v1131_v34 = vadd.f32 %v1101_v27, %v208_v43 }
 0x5a2   :  { %v1116_v12 = vpop.f32.mrf.mxu0 }
 0x5a3   :  { %v2613_v45 = vmul.f32 -1.442695, %v1131_v34  ;;  %v1129_v53 = vpop.f32.mrf.mxu1  ;;  %v3869_v34 = vor.u32 %v2906_v50, %v2761_v10  ;;  %v4216_v12 = vld [vmem:[#allocation16_spill] sm:$0xff] }
 0x5a5   :  { %3040 = vpow2.f32 %v2613_v45  ;;  %v3039_v6 = vpop.eup %3038  ;;  %v266_v45 = vadd.f32 %v4216_v12, %v3521_v28  ;;  %1694 = vmatpush.bf16.msrb.mxu2 %v3869_v34  ;;  %1784 = vmatpush.bf16.msra.mxu1 %v3869_v34 }
 0x5a6   :  { %v3833_v20 = vadd.f32 1.0, %v3039_v6  ;;  %v2749_v6 = vld [vmem:[#allocation9 + $0x20] sm:$0xf]  ;;  %1874 = vmatpush.bf16.msrb.mxu0 %v3869_v34 }
 0x5a8   :  { %v1103_v16 = vpop.f32.mrf.mxu3  ;;  %v1167_v41 = vand.u32 2147483648, %v3833_v20  ;;  %vm1161_vm14 = vweird.f32 %v3833_v20  ;;  %v1165_v51 = vand.u32 2147483647, %v3833_v20 }
 0x5a9   :  { %v2903_v16 = vld [vmem:[#allocation9 + $0x28] sm:$0xf0] }
 0x5aa   :  { %v3877_v37 = vor.u32 %v2903_v16, %v2749_v6  ;;  %vm1166_vm0 = vcmp.eq.f32.partialorder %v1165_v51, 8.507059e+37  ;;  %v3949_v51 = vld [vmem:[%s4200_s8] ss:$0 sm:$0xff] }
 0x5ab   :  { %v3041_v58 = vpop.eup %3040  ;;  %v3835_v8 = vpop.f32.mrf.mxu1 }
 0x5ac   :  { %v1139_v61 = vadd.f32 1.0, %v3041_v58  ;;  %1695 = vmatpush.bf16.msrb.mxu2 %v3877_v37  ;;  %1785 = vmatpush.bf16.msra.mxu1 %v3877_v37 }
 0x5ad   :  { %1875 = vmatpush.bf16.msrb.mxu0 %v3877_v37 }
 0x5ae   :  { %3042 = vrcp.f32 %v1139_v61  ;;  %v1152_v2 = vand.u32 2147483648, %v1139_v61  ;;  %v1150_v0 = vand.u32 2147483647, %v1139_v61  ;;  %vm1146_vm10 = vweird.f32 %v1139_v61 }
 0x5af   :  { %3044 = vrcp.f32 %v3833_v20 }
 0x5b0   :  { %v1153_v62 = vor.u32 1.1754944e-38, %v1152_v2  ;;  %vm1151_vm12 = vcmp.eq.f32.partialorder %v1150_v0, 8.507059e+37  ;;  %v1456_v50 = vpop.f32.mrf.mxu3 }
 0x5b3   :  { %v1674_v25 = vpop.f32.mrf.mxu1 }
 0x5b4   :  { %v3043_v35 = vpop.eup %3042  ;;  %v3887_v25 = vor.u32 %v2900_v42, %v2737_v23 }
 0x5b5   :  { %v3850_v46 = vpop.eup %3044  ;;  %v1142_v26 = vmul.f32 %v3043_v35, %v1139_v61  ;;  %vm1147_vm9 = vweird.f32 %v3043_v35 }
 0x5b6   :  { %v1157_v15 = vmul.f32 %v3850_v46, %v3833_v20  ;;  %vm1148_vm11 = vmor %vm1146_vm10, %vm1147_vm9  ;;  %vm1162_vm13 = vweird.f32 %v3850_v46  ;;  %1696 = vmatpush.bf16.msrb.mxu2 %v3887_v25  ;;  %1786 = vmatpush.bf16.msra.mxu1 %v3887_v25 }
 0x5b7   :  { %v1143_v48 = vsub.f32 1.0, %v1142_v26  ;;  %vm1163_vm15 = vmor %vm1161_vm14, %vm1162_vm13  ;;  %1876 = vmatpush.bf16.msrb.mxu0 %v3887_v25 }
 0x5b8   :  { %v1158_v60 = vsub.f32 1.0, %v1157_v15 }
 0x5b9   :  { %v1144_v44 = vmul.f32 %v3043_v35, %v1143_v48  ;;  %v1427_v48 = vpop.f32.mrf.mxu2 }
 0x5ba   :  { %v1159_v58 = vmul.f32 %v3850_v46, %v1158_v60  ;;  %1843 = vmatpush.bf16.msra.mxu2 %v3721_v14  ;;  %1933 = vmatpush.bf16.msrb.mxu1 %v3721_v14 }
 0x5bb   :  { %v1145_v57 = vadd.f32 %v3043_v35, %v1144_v44  ;;  %v3863_v7 = vpop.f32.mrf.mxu1 }
 0x5bc   :  { %v1160_v28 = vadd.f32 %v3850_v46, %v1159_v58 }
 0x5bd   :  { %v1149_v43 = vsel %vm1148_vm11, %v3043_v35, %v1145_v57  ;;  %v1168_v35 = vor.u32 1.1754944e-38, %v1167_v41 }
 0x5be   :  { %v1154_v27 = vsel %vm1151_vm12, %v1153_v62, %v1149_v43  ;;  %v1164_v59 = vsel %vm1163_vm15, %v3850_v46, %v1160_v28  ;;  %1844 = vmatpush.bf16.msra.mxu2 %v3724_v31  ;;  %1934 = vmatpush.bf16.msrb.mxu1 %v3724_v31 }
 0x5bf   :  { %v1172_v53 = vmul.f32 %v1171_v19, %v1154_v27  ;;  %v1169_v20 = vsel %vm1166_vm0, %v1168_v35, %v1164_v59 }
 0x5c1   :  { %v1173_v18 = vadd.f32 %v1172_v53, %v266_v45  ;;  %v3921_v17 = vpop.f32.mrf.mxu2 }
 0x5c2   :  { %1845 = vmatpush.bf16.msra.mxu2 %v3727_v4  ;;  %1935 = vmatpush.bf16.msrb.mxu1 %v3727_v4 }
 0x5c3   :  { %3046 = vtanh.f32 %v1173_v18  ;;  %v1687_v61 = vpop.f32.mrf.mxu1 }
 0x5c6   :  { %1846 = vmatpush.bf16.msra.mxu2 %v3733_v38  ;;  %1936 = vmatpush.bf16.msrb.mxu1 %v3733_v38 }
 0x5c9   :  { %v3047_v30 = vpop.eup %3046  ;;  %v3928_v15 = vpop.f32.mrf.mxu2 }
 0x5ca   :  { %v1175_v55 = vsub.f32 %v3767_v40, %v3047_v30  ;;  %1847 = vmatpush.bf16.msra.mxu2 %v3736_v39  ;;  %1937 = vmatpush.bf16.msrb.mxu1 %v3736_v39 }
 0x5cc   :  { %v1176_v3 = vmul.f32 %v1175_v55, %v1169_v20  ;;  %v1485_v55 = vpop.f32.mrf.mxu0 }
 0x5ce   :  { %v1177_v26 = vadd.f32 %v3047_v30, %v1176_v3  ;;  %1848 = vmatpush.bf16.msra.mxu2 %v3741_v56  ;;  %1938 = vmatpush.bf16.msrb.mxu1 %v3741_v56 }
 0x5d0   :  { %v1178_v46 = vpack.c.bf16 %v1177_v26, %v1177_v26 }
 0x5d1   :  { %v3932_v0 = vpop.f32.mrf.mxu2 }
 0x5d2   :  { %1180 = vst [vmem:[#allocation3 + $0x1c] sm:$0xf] %v1178_v46  ;;  %1849 = vmatpush.bf16.msra.mxu2 %v3746_v29  ;;  %1939 = vmatpush.bf16.msrb.mxu1 %v3746_v29 }
 0x5d6   :  { %1850 = vmatpush.bf16.msra.mxu2 %v3750_v49  ;;  %1940 = vmatpush.bf16.msrb.mxu1 %v3750_v49 }
 0x5d9   :  { %v2925_v40 = vld [vmem:[#allocation3 + $0x18] sm:$0xff]  ;;  %v3937_v19 = vpop.f32.mrf.mxu2 }
 0x5da   :  { %1441 = vmatmul.bf16.gmra.mxu2 %v2925_v40  ;;  %1470 = vmatmul.bf16.gmra.mxu3 %v2925_v40 }
 0x5db   :  { %1499 = vmatmul.bf16.gmra.mxu0 %v2925_v40 }
 0x5e1   :  { %v3940_v45 = vpop.f32.mrf.mxu2 }
 0x5ea   :  { %1697 = vmatmul.bf16.vlgmr.msrb.gmra.mxu2 %v4213_v9  ;;  %v1258_v9 = vld [vmem:[%s4199_s7] sm:$0x7] }
 0x5eb   :  { %1946 = vmatpush.bf16.msrb.mxu2 %v3771_v24  ;;  %v3926_v47 = vperm.slane %v1258_v9, 0  ;;  %v3934_v10 = vperm.slane %v1258_v9, 1  ;;  %v3951_v30 = vperm.slane %v1258_v9, 2 }
 0x5ed   :  { %v1428_v2 = vadd.f32 %v1427_v48, %v3926_v47  ;;  %v1457_v60 = vadd.f32 %v1456_v50, %v3934_v10  ;;  %v1486_v48 = vadd.f32 %v1485_v55, %v3951_v30 }
 0x5ef   :  { %1947 = vmatpush.bf16.msrb.mxu2 %v3775_v52  ;;  %v1702_v44 = vadd.f32 %v3835_v8, %v1428_v2  ;;  %v1703_v43 = vadd.f32 %v3863_v7, %v1457_v60 }
 0x5f1   :  { %v2823_v57 = vmul.f32 -1.442695, %v1702_v44  ;;  %v2824_v12 = vmul.f32 -1.442695, %v1703_v43 }
 0x5f3   :  { %1948 = vmatpush.bf16.msrb.mxu2 %v3780_v5  ;;  %3048 = vpow2.f32 %v2823_v57 }
 0x5f7   :  { %1949 = vmatpush.bf16.msrb.mxu2 %v3785_v33 }
 0x5f9   :  { %v3049_v62 = vpop.eup %3048 }
 0x5fa   :  { %v1710_v27 = vadd.f32 1.0, %v3049_v62 }
 0x5fb   :  { %1950 = vmatpush.bf16.msrb.mxu2 %v3790_v36 }
 0x5fc   :  { %3050 = vrcp.f32 %v1710_v27  ;;  %v1723_v41 = vand.u32 2147483648, %v1710_v27  ;;  %vm1717_vm2 = vweird.f32 %v1710_v27  ;;  %v1721_v59 = vand.u32 2147483647, %v1710_v27 }
 0x5fd   :  { %3052 = vpow2.f32 %v2824_v12 }
 0x5fe   :  { %v1724_v26 = vor.u32 1.1754944e-38, %v1723_v41  ;;  %vm1722_vm4 = vcmp.eq.f32.partialorder %v1721_v59, 8.507059e+37 }
 0x5ff   :  { %1951 = vmatpush.bf16.msrb.mxu2 %v3798_v32 }
 0x602   :  { %v3051_v8 = vpop.eup %3050 }
 0x603   :  { %1952 = vmatpush.bf16.msrb.mxu2 %v3803_v22  ;;  %v3053_v53 = vpop.eup %3052  ;;  %v1713_v16 = vmul.f32 %v3051_v8, %v1710_v27  ;;  %vm1718_vm1 = vweird.f32 %v3051_v8 }
 0x604   :  { %v1711_v6 = vadd.f32 1.0, %v3053_v53  ;;  %vm1719_vm3 = vmor %vm1717_vm2, %vm1718_vm1 }
 0x605   :  { %v1714_v18 = vsub.f32 1.0, %v1713_v16 }
 0x606   :  { %3054 = vrcp.f32 %v1711_v6  ;;  %v1738_v9 = vand.u32 2147483648, %v1711_v6  ;;  %vm1732_vm6 = vweird.f32 %v1711_v6  ;;  %v1736_v62 = vand.u32 2147483647, %v1711_v6 }
 0x607   :  { %1953 = vmatpush.bf16.msrb.mxu2 %v3808_v1  ;;  %v1715_v23 = vmul.f32 %v3051_v8, %v1714_v18 }
 0x608   :  { %v1739_v12 = vor.u32 1.1754944e-38, %v1738_v9  ;;  %vm1737_vm8 = vcmp.eq.f32.partialorder %v1736_v62, 8.507059e+37  ;;  %v1430_v9 = vadd.f32 %v3921_v17, %v3926_v47 }
 0x609   :  { %v1716_v28 = vadd.f32 %v3051_v8, %v1715_v23 }
 0x60b   :  { %v1720_v35 = vsel %vm1719_vm3, %v3051_v8, %v1716_v28 }
 0x60c   :  { %v3055_v61 = vpop.eup %3054  ;;  %v1725_v40 = vsel %vm1722_vm4, %v1724_v26, %v1720_v35 }
 0x60d   :  { %v1728_v7 = vmul.f32 %v3055_v61, %v1711_v6  ;;  %vm1733_vm5 = vweird.f32 %v3055_v61  ;;  %v1487_v6 = vpop.f32.mrf.mxu0 }
 0x60e   :  { %vm1734_vm7 = vmor %vm1732_vm6, %vm1733_vm5 }
 0x60f   :  { %v1729_v20 = vsub.f32 1.0, %v1728_v7 }
 0x611   :  { %v1730_v44 = vmul.f32 %v3055_v61, %v1729_v20 }
 0x613   :  { %v1731_v60 = vadd.f32 %v3055_v61, %v1730_v44 }
 0x615   :  { %v1735_v43 = vsel %vm1734_vm7, %v3055_v61, %v1731_v60  ;;  %v1458_v61 = vpop.f32.mrf.mxu3  ;;  %v3983_v28 = vpop.f32.mrf.mxu0 }
 0x616   :  { %v1740_v53 = vsel %vm1737_vm8, %v1739_v12, %v1735_v43 }
 0x61d   :  { %v3985_v7 = vpop.f32.mrf.mxu3  ;;  %v3987_v41 = vpop.f32.mrf.mxu0 }
 0x625   :  { %v3989_v59 = vpop.f32.mrf.mxu3  ;;  %v3991_v35 = vpop.f32.mrf.mxu0 }
 0x62d   :  { %v3993_v55 = vpop.f32.mrf.mxu3  ;;  %v3995_v20 = vpop.f32.mrf.mxu0 }
 0x658   :  { %v3999_v26 = vpop.f32.mrf.mxu0 }
 0x659   :  { %4218 = vst [vmem:[#allocation14_spill] sm:$0xff] %v3999_v26 }
 0x65d   :  { %v3942_v58 = vpop.f32.mrf.mxu2 }
 0x665   :  { %v3944_v42 = vpop.f32.mrf.mxu2 }
 0x666   :  { %4217 = vst [vmem:[#allocation12_spill] sm:$0xff] %v3944_v42 }
 0x66d   :  { %v1698_v3 = vpop.f32.mrf.mxu2 }
 0x66e   :  { %v1742_v46 = vadd.f32 %v3949_v51, %v1698_v3  ;;  %v3997_v3 = vpop.f32.mrf.mxu3 }
 0x670   :  { %v1743_v2 = vmul.f32 %v1742_v46, %v1725_v40  ;;  %v4003_v40 = vpop.f32.mrf.mxu0 }
 0x671   :  { %4220 = vst [vmem:[#allocation13_spill] sm:$0xff] %v4003_v40 }
 0x672   :  { %v1744_v57 = vadd.f32 %v1743_v2, %v1486_v48  ;;  %v1459_v2 = vadd.f32 %v1458_v61, %v3934_v10 }
 0x674   :  { %3056 = vtanh.f32 %v1744_v57 }
 0x675   :  { %v1700_v50 = vpop.f32.mrf.mxu2 }
 0x676   :  { %v4001_v46 = vpop.f32.mrf.mxu3 }
 0x677   :  { %4219 = vst [vmem:[#allocation15_spill] sm:$0xff] %v4001_v46 }
 0x67a   :  { %v3057_v27 = vpop.eup %3056 }
 0x67b   :  { %v1746_v8 = vsub.f32 0.0, %v3057_v27 }
 0x67d   :  { %v1747_v16 = vmul.f32 %v1746_v8, %v1740_v53 }
 0x67e   :  { %v4005_v48 = vpop.f32.mrf.mxu3 }
 0x67f   :  { %v3955_v18 = vadd.f32 %v3057_v27, %v1747_v16  ;;  %4221 = vst [vmem:[#allocation16_spill] sm:$0xff] %v4005_v48 }
 0x681   :  { %v1752_v23 = vpack.c.bf16 %v3955_v18, %v3955_v18 }
 0x683   :  { %1761 = vmatmul.bf16.vlgmr.msra.gmra.mxu3 %v1752_v23  ;;  %1774 = vmatmul.bf16.vlgmr.msra.gmra.mxu0 %v1752_v23 }
 0x684   :  { %1787 = vmatmul.bf16.vlgmr.msra.gmra.mxu1 %v1752_v23  ;;  %1959 = vmatpush.bf16.msra.mxu3 %v3837_v13 }
 0x685   :  { %2023 = vmatpush.bf16.msra.mxu0 %v3721_v14  ;;  %2036 = vmatpush.bf16.msra.mxu1 %v3771_v24 }
 0x688   :  { %1960 = vmatpush.bf16.msra.mxu3 %v3843_v21 }
 0x689   :  { %2024 = vmatpush.bf16.msra.mxu0 %v3724_v31  ;;  %2037 = vmatpush.bf16.msra.mxu1 %v3775_v52 }
 0x68c   :  { %1961 = vmatpush.bf16.msra.mxu3 %v3848_v11 }
 0x68d   :  { %2025 = vmatpush.bf16.msra.mxu0 %v3727_v4  ;;  %2038 = vmatpush.bf16.msra.mxu1 %v3780_v5 }
 0x690   :  { %1962 = vmatpush.bf16.msra.mxu3 %v3853_v54 }
 0x691   :  { %2026 = vmatpush.bf16.msra.mxu0 %v3733_v38  ;;  %2039 = vmatpush.bf16.msra.mxu1 %v3785_v33 }
 0x694   :  { %1963 = vmatpush.bf16.msra.mxu3 %v3860_v63 }
 0x695   :  { %2027 = vmatpush.bf16.msra.mxu0 %v3736_v39  ;;  %2040 = vmatpush.bf16.msra.mxu1 %v3790_v36 }
 0x698   :  { %1964 = vmatpush.bf16.msra.mxu3 %v3869_v34 }
 0x699   :  { %2028 = vmatpush.bf16.msra.mxu0 %v3741_v56  ;;  %2041 = vmatpush.bf16.msra.mxu1 %v3798_v32 }
 0x69c   :  { %1965 = vmatpush.bf16.msra.mxu3 %v3877_v37 }
 0x69d   :  { %2029 = vmatpush.bf16.msra.mxu0 %v3746_v29  ;;  %2042 = vmatpush.bf16.msra.mxu1 %v3803_v22 }
 0x6a0   :  { %1966 = vmatpush.bf16.msra.mxu3 %v3887_v25 }
 0x6a1   :  { %2030 = vmatpush.bf16.msra.mxu0 %v3750_v49  ;;  %2043 = vmatpush.bf16.msra.mxu1 %v3808_v1 }
 0x700   :  { %v1775_v44 = vpop.f32.mrf.mxu0 }
 0x701   :  { %v1793_v57 = vadd.f32 %v1775_v44, %v1459_v2  ;;  %v1788_v50 = vpop.f32.mrf.mxu1 }
 0x703   :  { %v2826_v60 = vmul.f32 -1.442695, %v1793_v57 }
 0x705   :  { %3058 = vpow2.f32 %v2826_v60 }
 0x706   :  { %v1762_v62 = vpop.f32.mrf.mxu3 }
 0x707   :  { %v1792_v43 = vadd.f32 %v1762_v62, %v1430_v9 }
 0x708   :  { %v1777_v27 = vpop.f32.mrf.mxu0 }
 0x709   :  { %v2825_v12 = vmul.f32 -1.442695, %v1792_v43  ;;  %v1790_v8 = vpop.f32.mrf.mxu1  ;;  %v1832_v27 = vadd.f32 %v3949_v51, %v1788_v50 }
 0x70b   :  { %3060 = vpow2.f32 %v2825_v12  ;;  %v3059_v53 = vpop.eup %3058 }
 0x70c   :  { %v1801_v40 = vadd.f32 1.0, %v3059_v53  ;;  %v1488_v53 = vadd.f32 %v1487_v6, %v3951_v30 }
 0x70e   :  { %v1764_v16 = vpop.f32.mrf.mxu3  ;;  %vm1822_vm14 = vweird.f32 %v1801_v40 }
 0x711   :  { %v3061_v23 = vpop.eup %3060 }
 0x712   :  { %v1800_v48 = vadd.f32 1.0, %v3061_v23 }
 0x714   :  { %3062 = vrcp.f32 %v1800_v48  ;;  %v1813_v17 = vand.u32 2147483648, %v1800_v48  ;;  %v1811_v60 = vand.u32 2147483647, %v1800_v48  ;;  %vm1807_vm10 = vweird.f32 %v1800_v48 }
 0x715   :  { %3064 = vrcp.f32 %v1801_v40 }
 0x716   :  { %v1814_v43 = vor.u32 1.1754944e-38, %v1813_v17  ;;  %vm1812_vm12 = vcmp.eq.f32.partialorder %v1811_v60, 8.507059e+37 }
 0x71a   :  { %v3063_v61 = vpop.eup %3062 }
 0x71b   :  { %v3065_v2 = vpop.eup %3064  ;;  %v1803_v44 = vmul.f32 %v3063_v61, %v1800_v48  ;;  %vm1808_vm9 = vweird.f32 %v3063_v61 }
 0x71c   :  { %v1818_v42 = vmul.f32 %v3065_v2, %v1801_v40  ;;  %vm1809_vm11 = vmor %vm1807_vm10, %vm1808_vm9  ;;  %vm1823_vm13 = vweird.f32 %v3065_v2 }
 0x71d   :  { %v1804_v57 = vsub.f32 1.0, %v1803_v44  ;;  %vm1824_vm15 = vmor %vm1822_vm14, %vm1823_vm13 }
 0x71e   :  { %v1819_v62 = vsub.f32 1.0, %v1818_v42 }
 0x71f   :  { %v1805_v26 = vmul.f32 %v3063_v61, %v1804_v57  ;;  %v1828_v57 = vand.u32 2147483648, %v1801_v40 }
 0x720   :  { %v1820_v23 = vmul.f32 %v3065_v2, %v1819_v62 }
 0x721   :  { %v1806_v9 = vadd.f32 %v3063_v61, %v1805_v26  ;;  %v1826_v26 = vand.u32 2147483647, %v1801_v40  ;;  %v1829_v17 = vor.u32 1.1754944e-38, %v1828_v57  ;;  %v1462_v40 = vadd.f32 %v3985_v7, %v3934_v10 }
 0x722   :  { %v1821_v46 = vadd.f32 %v3065_v2, %v1820_v23 }
 0x723   :  { %v1810_v12 = vsel %vm1809_vm11, %v3063_v61, %v1806_v9  ;;  %vm1827_vm0 = vcmp.eq.f32.partialorder %v1826_v26, 8.507059e+37 }
 0x724   :  { %v1815_v8 = vsel %vm1812_vm12, %v1814_v43, %v1810_v12  ;;  %v1825_v42 = vsel %vm1824_vm15, %v3065_v2, %v1821_v46  ;;  %v1433_v46 = vadd.f32 %v3928_v15, %v3926_v47 }
 0x725   :  { %v1833_v16 = vmul.f32 %v1832_v27, %v1815_v8  ;;  %v1830_v61 = vsel %vm1827_vm0, %v1829_v17, %v1825_v42 }
 0x727   :  { %v1834_v44 = vadd.f32 %v1833_v16, %v1488_v53 }
 0x729   :  { %3066 = vtanh.f32 %v1834_v44 }
 0x72f   :  { %v3067_v48 = vpop.eup %3066 }
 0x730   :  { %v1836_v50 = vsub.f32 %v3955_v18, %v3067_v48 }
 0x732   :  { %v1837_v60 = vmul.f32 %v1836_v50, %v1830_v61 }
 0x734   :  { %v4013_v9 = vadd.f32 %v3067_v48, %v1837_v60 }
 0x736   :  { %v1842_v6 = vpack.c.bf16 %v4013_v9, %v4013_v9 }
 0x738   :  { %1851 = vmatmul.bf16.vlgmr.msra.gmra.mxu2 %v1842_v6  ;;  %1864 = vmatmul.bf16.vlgmr.msrb.gmra.mxu3 %v1842_v6 }
 0x739   :  { %1877 = vmatmul.bf16.vlgmr.msrb.gmra.mxu0 %v1842_v6  ;;  %2049 = vmatpush.bf16.msra.mxu2 %v3837_v13 }
 0x73a   :  { %2113 = vmatpush.bf16.msrb.mxu3 %v3721_v14  ;;  %2126 = vmatpush.bf16.msrb.mxu0 %v3771_v24 }
 0x73d   :  { %2050 = vmatpush.bf16.msra.mxu2 %v3843_v21 }
 0x73e   :  { %2114 = vmatpush.bf16.msrb.mxu3 %v3724_v31  ;;  %2127 = vmatpush.bf16.msrb.mxu0 %v3775_v52 }
 0x741   :  { %2051 = vmatpush.bf16.msra.mxu2 %v3848_v11 }
 0x742   :  { %2115 = vmatpush.bf16.msrb.mxu3 %v3727_v4  ;;  %2128 = vmatpush.bf16.msrb.mxu0 %v3780_v5 }
 0x745   :  { %2052 = vmatpush.bf16.msra.mxu2 %v3853_v54 }
 0x746   :  { %2116 = vmatpush.bf16.msrb.mxu3 %v3733_v38  ;;  %2129 = vmatpush.bf16.msrb.mxu0 %v3785_v33 }
 0x749   :  { %2053 = vmatpush.bf16.msra.mxu2 %v3860_v63 }
 0x74a   :  { %2117 = vmatpush.bf16.msrb.mxu3 %v3736_v39  ;;  %2130 = vmatpush.bf16.msrb.mxu0 %v3790_v36 }
 0x74d   :  { %2054 = vmatpush.bf16.msra.mxu2 %v3869_v34 }
 0x74e   :  { %2118 = vmatpush.bf16.msrb.mxu3 %v3741_v56  ;;  %2131 = vmatpush.bf16.msrb.mxu0 %v3798_v32 }
 0x751   :  { %2055 = vmatpush.bf16.msra.mxu2 %v3877_v37 }
 0x752   :  { %2119 = vmatpush.bf16.msrb.mxu3 %v3746_v29  ;;  %2132 = vmatpush.bf16.msrb.mxu0 %v3803_v22 }
 0x755   :  { %2056 = vmatpush.bf16.msra.mxu2 %v3887_v25 }
 0x756   :  { %2120 = vmatpush.bf16.msrb.mxu3 %v3750_v49  ;;  %2133 = vmatpush.bf16.msrb.mxu0 %v3808_v1 }
 0x7b6   :  { %v1878_v18 = vpop.f32.mrf.mxu0 }
 0x7bb   :  { %v1852_v2 = vpop.f32.mrf.mxu2  ;;  %v1865_v62 = vpop.f32.mrf.mxu3 }
 0x7bc   :  { %v1882_v43 = vadd.f32 %v1852_v2, %v1433_v46  ;;  %v1883_v27 = vadd.f32 %v1865_v62, %v1462_v40  ;;  %v1922_v62 = vadd.f32 %v3949_v51, %v1878_v18 }
 0x7be   :  { %v2827_v12 = vmul.f32 -1.442695, %v1882_v43  ;;  %v2828_v8 = vmul.f32 -1.442695, %v1883_v27  ;;  %v1880_v53 = vpop.f32.mrf.mxu0 }
 0x7c0   :  { %3068 = vpow2.f32 %v2827_v12  ;;  %v1491_v12 = vadd.f32 %v3983_v28, %v3951_v30 }
 0x7c1   :  { %3070 = vpow2.f32 %v2828_v8 }
 0x7c3   :  { %v1854_v16 = vpop.f32.mrf.mxu2  ;;  %v1867_v23 = vpop.f32.mrf.mxu3 }
 0x7c6   :  { %v3069_v44 = vpop.eup %3068 }
 0x7c7   :  { %v3071_v57 = vpop.eup %3070  ;;  %v1890_v26 = vadd.f32 1.0, %v3069_v44 }
 0x7c8   :  { %v1891_v42 = vadd.f32 1.0, %v3071_v57 }
 0x7c9   :  { %3072 = vrcp.f32 %v1890_v26  ;;  %v1903_v50 = vand.u32 2147483648, %v1890_v26  ;;  %v1901_v6 = vand.u32 2147483647, %v1890_v26  ;;  %vm1897_vm2 = vweird.f32 %v1890_v26 }
 0x7ca   :  { %3074 = vrcp.f32 %v1891_v42  ;;  %v1918_v44 = vand.u32 2147483648, %v1891_v42  ;;  %vm1912_vm6 = vweird.f32 %v1891_v42  ;;  %v1916_v57 = vand.u32 2147483647, %v1891_v42 }
 0x7cb   :  { %v1904_v40 = vor.u32 1.1754944e-38, %v1903_v50  ;;  %vm1902_vm4 = vcmp.eq.f32.partialorder %v1901_v6, 8.507059e+37  ;;  %v1464_v6 = vadd.f32 %v3989_v59, %v3934_v10 }
 0x7cc   :  { %vm1917_vm8 = vcmp.eq.f32.partialorder %v1916_v57, 8.507059e+37 }
 0x7cf   :  { %v3073_v15 = vpop.eup %3072 }
 0x7d0   :  { %v3075_v48 = vpop.eup %3074  ;;  %v1893_v7 = vmul.f32 %v3073_v15, %v1890_v26  ;;  %vm1898_vm1 = vweird.f32 %v3073_v15 }
 0x7d1   :  { %v1908_v61 = vmul.f32 %v3075_v48, %v1891_v42  ;;  %vm1899_vm3 = vmor %vm1897_vm2, %vm1898_vm1  ;;  %vm1913_vm5 = vweird.f32 %v3075_v48 }
 0x7d2   :  { %v1894_v17 = vsub.f32 1.0, %v1893_v7  ;;  %vm1914_vm7 = vmor %vm1912_vm6, %vm1913_vm5 }
 0x7d3   :  { %v1909_v2 = vsub.f32 1.0, %v1908_v61 }
 0x7d4   :  { %v1895_v60 = vmul.f32 %v3073_v15, %v1894_v17  ;;  %v1919_v17 = vor.u32 1.1754944e-38, %v1918_v44 }
 0x7d5   :  { %v1910_v53 = vmul.f32 %v3075_v48, %v1909_v2 }
 0x7d6   :  { %v1896_v46 = vadd.f32 %v3073_v15, %v1895_v60 }
 0x7d7   :  { %v1911_v23 = vadd.f32 %v3075_v48, %v1910_v53 }
 0x7d8   :  { %v1900_v43 = vsel %vm1899_vm3, %v3073_v15, %v1896_v46 }
 0x7d9   :  { %v1905_v27 = vsel %vm1902_vm4, %v1904_v40, %v1900_v43  ;;  %v1915_v26 = vsel %vm1914_vm7, %v3075_v48, %v1911_v23 }
 0x7da   :  { %v1923_v8 = vmul.f32 %v1922_v62, %v1905_v27  ;;  %v1920_v15 = vsel %vm1917_vm8, %v1919_v17, %v1915_v26 }
 0x7dc   :  { %v1924_v16 = vadd.f32 %v1923_v8, %v1491_v12 }
 0x7de   :  { %3076 = vtanh.f32 %v1924_v16 }
 0x7e4   :  { %v3077_v7 = vpop.eup %3076 }
 0x7e5   :  { %v1926_v18 = vsub.f32 %v4013_v9, %v3077_v7  ;;  %v1435_v9 = vadd.f32 %v3932_v0, %v3926_v47 }
 0x7e7   :  { %v1927_v50 = vmul.f32 %v1926_v18, %v1920_v15 }
 0x7e9   :  { %v4049_v61 = vadd.f32 %v3077_v7, %v1927_v50 }
 0x7eb   :  { %v1932_v28 = vpack.c.bf16 %v4049_v61, %v4049_v61 }
 0x7ed   :  { %1941 = vmatmul.bf16.vlgmr.msrb.gmra.mxu1 %v1932_v28  ;;  %1954 = vmatmul.bf16.vlgmr.msrb.gmra.mxu2 %v1932_v28 }
 0x7ee   :  { %1967 = vmatmul.bf16.vlgmr.msra.gmra.mxu3 %v1932_v28  ;;  %2139 = vmatpush.bf16.msrb.mxu1 %v3837_v13 }
 0x7ef   :  { %2203 = vmatpush.bf16.msrb.mxu2 %v3721_v14  ;;  %2216 = vmatpush.bf16.msra.mxu3 %v3771_v24 }
 0x7f2   :  { %2140 = vmatpush.bf16.msrb.mxu1 %v3843_v21 }
 0x7f3   :  { %2204 = vmatpush.bf16.msrb.mxu2 %v3724_v31  ;;  %2217 = vmatpush.bf16.msra.mxu3 %v3775_v52 }
 0x7f6   :  { %2141 = vmatpush.bf16.msrb.mxu1 %v3848_v11 }
 0x7f7   :  { %2205 = vmatpush.bf16.msrb.mxu2 %v3727_v4  ;;  %2218 = vmatpush.bf16.msra.mxu3 %v3780_v5 }
 0x7fa   :  { %2142 = vmatpush.bf16.msrb.mxu1 %v3853_v54 }
 0x7fb   :  { %2206 = vmatpush.bf16.msrb.mxu2 %v3733_v38  ;;  %2219 = vmatpush.bf16.msra.mxu3 %v3785_v33 }
 0x7fe   :  { %2143 = vmatpush.bf16.msrb.mxu1 %v3860_v63 }
 0x7ff   :  { %2207 = vmatpush.bf16.msrb.mxu2 %v3736_v39  ;;  %2220 = vmatpush.bf16.msra.mxu3 %v3790_v36 }
 0x802   :  { %2144 = vmatpush.bf16.msrb.mxu1 %v3869_v34 }
 0x803   :  { %2208 = vmatpush.bf16.msrb.mxu2 %v3741_v56  ;;  %2221 = vmatpush.bf16.msra.mxu3 %v3798_v32 }
 0x806   :  { %2145 = vmatpush.bf16.msrb.mxu1 %v3877_v37 }
 0x807   :  { %2209 = vmatpush.bf16.msrb.mxu2 %v3746_v29  ;;  %2222 = vmatpush.bf16.msra.mxu3 %v3803_v22 }
 0x80a   :  { %2146 = vmatpush.bf16.msrb.mxu1 %v3887_v25 }
 0x80b   :  { %2210 = vmatpush.bf16.msrb.mxu2 %v3750_v49  ;;  %2223 = vmatpush.bf16.msra.mxu3 %v3808_v1 }
 0x86a   :  { %v1942_v42 = vpop.f32.mrf.mxu1 }
 0x86b   :  { %v1972_v48 = vadd.f32 %v1942_v42, %v1435_v9 }
 0x86d   :  { %v2829_v60 = vmul.f32 -1.442695, %v1972_v48 }
 0x86f   :  { %3078 = vpow2.f32 %v2829_v60  ;;  %v1493_v60 = vadd.f32 %v3987_v41, %v3951_v30 }
 0x870   :  { %v1955_v46 = vpop.f32.mrf.mxu2 }
 0x871   :  { %v1973_v40 = vadd.f32 %v1955_v46, %v1464_v6  ;;  %v1968_v2 = vpop.f32.mrf.mxu3 }
 0x872   :  { %v1944_v62 = vpop.f32.mrf.mxu1  ;;  %v2012_v42 = vadd.f32 %v3949_v51, %v1968_v2 }
 0x873   :  { %v2830_v43 = vmul.f32 -1.442695, %v1973_v40 }
 0x875   :  { %v3079_v27 = vpop.eup %3078  ;;  %3080 = vpow2.f32 %v2830_v43 }
 0x876   :  { %v1980_v12 = vadd.f32 1.0, %v3079_v27 }
 0x878   :  { %3082 = vrcp.f32 %v1980_v12  ;;  %v1957_v8 = vpop.f32.mrf.mxu2  ;;  %v1993_v26 = vand.u32 2147483648, %v1980_v12  ;;  %v1991_v7 = vand.u32 2147483647, %v1980_v12  ;;  %vm1987_vm10 = vweird.f32 %v1980_v12 }
 0x879   :  { %v1970_v53 = vpop.f32.mrf.mxu3 }
 0x87a   :  { %v1994_v50 = vor.u32 1.1754944e-38, %v1993_v26  ;;  %vm1992_vm12 = vcmp.eq.f32.partialorder %v1991_v7, 8.507059e+37 }
 0x87b   :  { %v3081_v16 = vpop.eup %3080 }
 0x87c   :  { %v1981_v0 = vadd.f32 1.0, %v3081_v16 }
 0x87e   :  { %v3083_v23 = vpop.eup %3082  ;;  %3084 = vrcp.f32 %v1981_v0  ;;  %v2008_v43 = vand.u32 2147483648, %v1981_v0  ;;  %vm2002_vm14 = vweird.f32 %v1981_v0  ;;  %v2006_v27 = vand.u32 2147483647, %v1981_v0 }
 0x87f   :  { %v1983_v44 = vmul.f32 %v3083_v23, %v1980_v12  ;;  %vm1988_vm9 = vweird.f32 %v3083_v23 }
 0x880   :  { %vm1989_vm11 = vmor %vm1987_vm10, %vm1988_vm9  ;;  %v2009_v53 = vor.u32 1.1754944e-38, %v2008_v43  ;;  %vm2007_vm0 = vcmp.eq.f32.partialorder %v2006_v27, 8.507059e+37 }
 0x881   :  { %v1984_v57 = vsub.f32 1.0, %v1983_v44 }
 0x883   :  { %v1985_v59 = vmul.f32 %v3083_v23, %v1984_v57 }
 0x884   :  { %v3085_v17 = vpop.eup %3084 }
 0x885   :  { %v1998_v18 = vmul.f32 %v3085_v17, %v1981_v0  ;;  %v1986_v15 = vadd.f32 %v3083_v23, %v1985_v59  ;;  %vm2003_vm13 = vweird.f32 %v3085_v17 }
 0x886   :  { %vm2004_vm15 = vmor %vm2002_vm14, %vm2003_vm13 }
 0x887   :  { %v1999_v28 = vsub.f32 1.0, %v1998_v18  ;;  %v1990_v9 = vsel %vm1989_vm11, %v3083_v23, %v1986_v15 }
 0x888   :  { %v1995_v48 = vsel %vm1992_vm12, %v1994_v50, %v1990_v9 }
 0x889   :  { %v2013_v6 = vmul.f32 %v2012_v42, %v1995_v48  ;;  %v2000_v46 = vmul.f32 %v3085_v17, %v1999_v28  ;;  %v1496_v42 = vadd.f32 %v3991_v35, %v3951_v30 }
 0x88b   :  { %v2014_v40 = vadd.f32 %v2013_v6, %v1493_v60  ;;  %v2001_v62 = vadd.f32 %v3085_v17, %v2000_v46 }
 0x88d   :  { %3086 = vtanh.f32 %v2014_v40  ;;  %v2005_v12 = vsel %vm2004_vm15, %v3085_v17, %v2001_v62 }
 0x88e   :  { %v2010_v16 = vsel %vm2007_vm0, %v2009_v53, %v2005_v12 }
 0x893   :  { %v3087_v8 = vpop.eup %3086 }
 0x894   :  { %v2016_v2 = vsub.f32 %v4049_v61, %v3087_v8 }
 0x896   :  { %v2017_v23 = vmul.f32 %v2016_v2, %v2010_v16 }
 0x898   :  { %v4085_v44 = vadd.f32 %v3087_v8, %v2017_v23  ;;  %v1469_v23 = vadd.f32 %v3997_v3, %v3934_v10 }
 0x89a   :  { %v2022_v41 = vpack.c.bf16 %v4085_v44, %v4085_v44 }
 0x89c   :  { %2031 = vmatmul.bf16.vlgmr.msra.gmra.mxu0 %v2022_v41  ;;  %2044 = vmatmul.bf16.vlgmr.msra.gmra.mxu1 %v2022_v41 }
 0x89d   :  { %2057 = vmatmul.bf16.vlgmr.msra.gmra.mxu2 %v2022_v41  ;;  %2229 = vmatpush.bf16.msra.mxu0 %v3837_v13 }
 0x89e   :  { %2293 = vmatpush.bf16.msra.mxu1 %v3721_v14  ;;  %2306 = vmatpush.bf16.msra.mxu2 %v3771_v24  ;;  %v1438_v14 = vadd.f32 %v3937_v19, %v3926_v47 }
 0x8a1   :  { %2230 = vmatpush.bf16.msra.mxu0 %v3843_v21 }
 0x8a2   :  { %2294 = vmatpush.bf16.msra.mxu1 %v3724_v31  ;;  %2307 = vmatpush.bf16.msra.mxu2 %v3775_v52  ;;  %v1467_v31 = vadd.f32 %v3993_v55, %v3934_v10 }
 0x8a5   :  { %2231 = vmatpush.bf16.msra.mxu0 %v3848_v11 }
 0x8a6   :  { %2295 = vmatpush.bf16.msra.mxu1 %v3727_v4  ;;  %2308 = vmatpush.bf16.msra.mxu2 %v3780_v5 }
 0x8a9   :  { %2232 = vmatpush.bf16.msra.mxu0 %v3853_v54 }
 0x8aa   :  { %2296 = vmatpush.bf16.msra.mxu1 %v3733_v38  ;;  %2309 = vmatpush.bf16.msra.mxu2 %v3785_v33 }
 0x8ad   :  { %2233 = vmatpush.bf16.msra.mxu0 %v3860_v63 }
 0x8ae   :  { %2297 = vmatpush.bf16.msra.mxu1 %v3736_v39  ;;  %2310 = vmatpush.bf16.msra.mxu2 %v3790_v36 }
 0x8b1   :  { %2234 = vmatpush.bf16.msra.mxu0 %v3869_v34 }
 0x8b2   :  { %2298 = vmatpush.bf16.msra.mxu1 %v3741_v56  ;;  %2311 = vmatpush.bf16.msra.mxu2 %v3798_v32 }
 0x8b5   :  { %2235 = vmatpush.bf16.msra.mxu0 %v3877_v37 }
 0x8b6   :  { %2299 = vmatpush.bf16.msra.mxu1 %v3746_v29  ;;  %2312 = vmatpush.bf16.msra.mxu2 %v3803_v22 }
 0x8b9   :  { %2236 = vmatpush.bf16.msra.mxu0 %v3887_v25 }
 0x8ba   :  { %2300 = vmatpush.bf16.msra.mxu1 %v3750_v49  ;;  %2313 = vmatpush.bf16.msra.mxu2 %v3808_v1 }
 0x919   :  { %v2032_v4 = vpop.f32.mrf.mxu0  ;;  %v2045_v38 = vpop.f32.mrf.mxu1 }
 0x91a   :  { %v2062_v39 = vadd.f32 %v2032_v4, %v1438_v14  ;;  %v2063_v56 = vadd.f32 %v2045_v38, %v1467_v31 }
 0x91c   :  { %v2831_v24 = vmul.f32 -1.442695, %v2062_v39  ;;  %v2832_v29 = vmul.f32 -1.442695, %v2063_v56 }
 0x91e   :  { %3088 = vpow2.f32 %v2831_v24 }
 0x91f   :  { %3090 = vpow2.f32 %v2832_v29 }
 0x920   :  { %v2058_v52 = vpop.f32.mrf.mxu2 }
 0x921   :  { %v2034_v5 = vpop.f32.mrf.mxu0  ;;  %v2047_v33 = vpop.f32.mrf.mxu1  ;;  %v2102_v28 = vadd.f32 %v3949_v51, %v2058_v52 }
 0x924   :  { %v3089_v49 = vpop.eup %3088 }
 0x925   :  { %v3091_v36 = vpop.eup %3090  ;;  %v2070_v32 = vadd.f32 1.0, %v3089_v49 }
 0x926   :  { %v2071_v22 = vadd.f32 1.0, %v3091_v36 }
 0x927   :  { %3092 = vrcp.f32 %v2070_v32  ;;  %v2083_v26 = vand.u32 2147483648, %v2070_v32  ;;  %v2081_v7 = vand.u32 2147483647, %v2070_v32  ;;  %vm2077_vm2 = vweird.f32 %v2070_v32 }
 0x928   :  { %3094 = vrcp.f32 %v2071_v22  ;;  %v2060_v1 = vpop.f32.mrf.mxu2  ;;  %v2098_v40 = vand.u32 2147483648, %v2071_v22  ;;  %vm2092_vm6 = vweird.f32 %v2071_v22  ;;  %v2096_v62 = vand.u32 2147483647, %v2071_v22 }
 0x929   :  { %v2084_v15 = vor.u32 1.1754944e-38, %v2083_v26  ;;  %vm2082_vm4 = vcmp.eq.f32.partialorder %v2081_v7, 8.507059e+37 }
 0x92a   :  { %v2099_v12 = vor.u32 1.1754944e-38, %v2098_v40  ;;  %vm2097_vm8 = vcmp.eq.f32.partialorder %v2096_v62, 8.507059e+37 }
 0x92d   :  { %v3093_v19 = vpop.eup %3092 }
 0x92e   :  { %v3095_v55 = vpop.eup %3094  ;;  %v2073_v61 = vmul.f32 %v3093_v19, %v2070_v32  ;;  %vm2078_vm1 = vweird.f32 %v3093_v19 }
 0x92f   :  { %v2088_v57 = vmul.f32 %v3095_v55, %v2071_v22  ;;  %vm2079_vm3 = vmor %vm2077_vm2, %vm2078_vm1  ;;  %vm2093_vm5 = vweird.f32 %v3095_v55 }
 0x930   :  { %v2074_v0 = vsub.f32 1.0, %v2073_v61  ;;  %vm2094_vm7 = vmor %vm2092_vm6, %vm2093_vm5 }
 0x931   :  { %v2089_v18 = vsub.f32 1.0, %v2088_v57 }
 0x932   :  { %v2075_v59 = vmul.f32 %v3093_v19, %v2074_v0 }
 0x933   :  { %v2090_v60 = vmul.f32 %v3095_v55, %v2089_v18 }
 0x934   :  { %v2076_v17 = vadd.f32 %v3093_v19, %v2075_v59 }
 0x935   :  { %v2091_v46 = vadd.f32 %v3095_v55, %v2090_v60  ;;  %v1443_v60 = vadd.f32 %v3942_v58, %v3926_v47 }
 0x936   :  { %v2080_v50 = vsel %vm2079_vm3, %v3093_v19, %v2076_v17 }
 0x937   :  { %v2085_v9 = vsel %vm2082_vm4, %v2084_v15, %v2080_v50  ;;  %v2095_v43 = vsel %vm2094_vm7, %v3095_v55, %v2091_v46  ;;  %v1498_v55 = vadd.f32 %v3995_v20, %v3951_v30 }
 0x938   :  { %v2103_v48 = vmul.f32 %v2102_v28, %v2085_v9  ;;  %v2100_v53 = vsel %vm2097_vm8, %v2099_v12, %v2095_v43 }
 0x93a   :  { %v2104_v6 = vadd.f32 %v2103_v48, %v1496_v42 }
 0x93c   :  { %3096 = vtanh.f32 %v2104_v6  ;;  %v4222_v6 = vld [vmem:[#allocation15_spill] sm:$0xff] }
 0x93d   :  { %v1472_v46 = vadd.f32 %v4222_v6, %v3934_v10 }
 0x942   :  { %v3097_v27 = vpop.eup %3096 }
 0x943   :  { %v2106_v8 = vsub.f32 %v4085_v44, %v3097_v27 }
 0x945   :  { %v2107_v2 = vmul.f32 %v2106_v8, %v2100_v53 }
 0x947   :  { %v4121_v16 = vadd.f32 %v3097_v27, %v2107_v2 }
 0x949   :  { %v2112_v35 = vpack.c.bf16 %v4121_v16, %v4121_v16 }
 0x94b   :  { %2121 = vmatmul.bf16.vlgmr.msrb.gmra.mxu3 %v2112_v35  ;;  %2134 = vmatmul.bf16.vlgmr.msrb.gmra.mxu0 %v2112_v35 }
 0x94c   :  { %2147 = vmatmul.bf16.vlgmr.msrb.gmra.mxu1 %v2112_v35  ;;  %2319 = vmatpush.bf16.msrb.mxu3 %v3837_v13 }
 0x950   :  { %2320 = vmatpush.bf16.msrb.mxu3 %v3843_v21  ;;  %v1440_v21 = vadd.f32 %v3940_v45, %v3926_v47 }
 0x954   :  { %2321 = vmatpush.bf16.msrb.mxu3 %v3848_v11 }
 0x958   :  { %2322 = vmatpush.bf16.msrb.mxu3 %v3853_v54 }
 0x95c   :  { %2323 = vmatpush.bf16.msrb.mxu3 %v3860_v63 }
 0x960   :  { %2324 = vmatpush.bf16.msrb.mxu3 %v3869_v34 }
 0x964   :  { %2325 = vmatpush.bf16.msrb.mxu3 %v3877_v37 }
 0x968   :  { %2326 = vmatpush.bf16.msrb.mxu3 %v3887_v25 }
 0x9c8   :  { %v2135_v44 = vpop.f32.mrf.mxu0 }
 0x9c9   :  { %v2153_v41 = vadd.f32 %v2135_v44, %v1469_v23  ;;  %v2148_v13 = vpop.f32.mrf.mxu1 }
 0x9ca   :  { %v2192_v22 = vadd.f32 %v3949_v51, %v2148_v13 }
 0x9cb   :  { %v2834_v14 = vmul.f32 -1.442695, %v2153_v41 }
 0x9cd   :  { %3098 = vpow2.f32 %v2834_v14 }
 0x9ce   :  { %v2122_v11 = vpop.f32.mrf.mxu3 }
 0x9cf   :  { %v2152_v54 = vadd.f32 %v2122_v11, %v1440_v21 }
 0x9d0   :  { %v2137_v63 = vpop.f32.mrf.mxu0 }
 0x9d1   :  { %v2833_v31 = vmul.f32 -1.442695, %v2152_v54  ;;  %v2150_v34 = vpop.f32.mrf.mxu1 }
 0x9d3   :  { %3100 = vpow2.f32 %v2833_v31  ;;  %v3099_v37 = vpop.eup %3098 }
 0x9d4   :  { %v2161_v38 = vadd.f32 1.0, %v3099_v37 }
 0x9d6   :  { %v2124_v4 = vpop.f32.mrf.mxu3  ;;  %v2188_v59 = vand.u32 2147483648, %v2161_v38  ;;  %vm2182_vm14 = vweird.f32 %v2161_v38  ;;  %v2186_v7 = vand.u32 2147483647, %v2161_v38 }
 0x9d8   :  { %v2189_v15 = vor.u32 1.1754944e-38, %v2188_v59  ;;  %vm2187_vm0 = vcmp.eq.f32.partialorder %v2186_v7, 8.507059e+37 }
 0x9d9   :  { %v3101_v25 = vpop.eup %3100 }
 0x9da   :  { %v2160_v39 = vadd.f32 1.0, %v3101_v25 }
 0x9dc   :  { %3102 = vrcp.f32 %v2160_v39  ;;  %v2173_v45 = vand.u32 2147483648, %v2160_v39  ;;  %v2171_v33 = vand.u32 2147483647, %v2160_v39  ;;  %vm2167_vm10 = vweird.f32 %v2160_v39 }
 0x9dd   :  { %3104 = vrcp.f32 %v2161_v38 }
 0x9de   :  { %v2174_v32 = vor.u32 1.1754944e-38, %v2173_v45  ;;  %vm2172_vm12 = vcmp.eq.f32.partialorder %v2171_v33, 8.507059e+37 }
 0x9e2   :  { %v3103_v3 = vpop.eup %3102 }
 0x9e3   :  { %v3105_v56 = vpop.eup %3104  ;;  %v2163_v24 = vmul.f32 %v3103_v3, %v2160_v39  ;;  %vm2168_vm9 = vweird.f32 %v3103_v3 }
 0x9e4   :  { %v2178_v52 = vmul.f32 %v3105_v56, %v2161_v38  ;;  %vm2169_vm11 = vmor %vm2167_vm10, %vm2168_vm9  ;;  %vm2183_vm13 = vweird.f32 %v3105_v56 }
 0x9e5   :  { %v2164_v29 = vsub.f32 1.0, %v2163_v24  ;;  %vm2184_vm15 = vmor %vm2182_vm14, %vm2183_vm13 }
 0x9e6   :  { %v2179_v36 = vsub.f32 1.0, %v2178_v52 }
 0x9e7   :  { %v2165_v5 = vmul.f32 %v3103_v3, %v2164_v29 }
 0x9e8   :  { %v2180_v0 = vmul.f32 %v3105_v56, %v2179_v36 }
 0x9e9   :  { %v2166_v49 = vadd.f32 %v3103_v3, %v2165_v5 }
 0x9ea   :  { %v2181_v26 = vadd.f32 %v3105_v56, %v2180_v0  ;;  %v2956_v0 = vld [vmem:[%s4201_s9 + $0x30] sm:$0xff] }
 0x9eb   :  { %v2170_v1 = vsel %vm2169_vm11, %v3103_v3, %v2166_v49  ;;  %v4223_v3 = vld [vmem:[#allocation14_spill] sm:$0xff] }
 0x9ec   :  { %v2175_v19 = vsel %vm2172_vm12, %v2174_v32, %v2170_v1  ;;  %v2185_v17 = vsel %vm2184_vm15, %v3105_v56, %v2181_v26  ;;  %v1501_v56 = vadd.f32 %v4223_v3, %v3951_v30  ;;  %v4224_v26 = vld [vmem:[#allocation12_spill] sm:$0xff] }
 0x9ed   :  { %v2193_v61 = vmul.f32 %v2192_v22, %v2175_v19  ;;  %v2190_v28 = vsel %vm2187_vm0, %v2189_v15, %v2185_v17  ;;  %v1445_v59 = vadd.f32 %v4224_v26, %v3926_v47  ;;  %v2954_v17 = vld [vmem:[%s4201_s9 + $0x20] sm:$0xff] }
 0x9ef   :  { %v2194_v57 = vadd.f32 %v2193_v61, %v1498_v55  ;;  %v2957_v61 = vld [vmem:[%s4201_s9 + $0x38] sm:$0xff] }
 0x9f0   :  { %2452 = vmatpush.bf16.msrb.mxu0 %v2957_v61 }
 0x9f1   :  { %3106 = vtanh.f32 %v2194_v57  ;;  %v2955_v57 = vld [vmem:[%s4201_s9 + $0x28] sm:$0xff] }
 0x9f4   :  { %2453 = vmatpush.bf16.msrb.mxu0 %v2956_v0 }
 0x9f7   :  { %v3107_v18 = vpop.eup %3106 }
 0x9f8   :  { %v2196_v50 = vsub.f32 %v4121_v16, %v3107_v18  ;;  %2454 = vmatpush.bf16.msrb.mxu0 %v2955_v57 }
 0x9fa   :  { %v2197_v9 = vmul.f32 %v2196_v50, %v2190_v28  ;;  %v2953_v50 = vld [vmem:[%s4201_s9 + $0x18] sm:$0xff]  ;;  %v4225_v28 = vld [vmem:[#allocation16_spill] sm:$0xff] }
 0x9fc   :  { %v2198_v42 = vadd.f32 %v3107_v18, %v2197_v9  ;;  %2455 = vmatpush.bf16.msrb.mxu0 %v2954_v17  ;;  %v1474_v9 = vadd.f32 %v4225_v28, %v3934_v10 }
 0x9fe   :  { %v2202_v20 = vpack.c.bf16 %v2198_v42, %v2198_v42 }
 0xa00   :  { %2211 = vmatmul.bf16.vlgmr.msrb.gmra.mxu2 %v2202_v20  ;;  %2224 = vmatmul.bf16.vlgmr.msra.gmra.mxu3 %v2202_v20 }
 0xa01   :  { %2237 = vmatmul.bf16.vlgmr.msra.gmra.mxu0 %v2202_v20 }
 0xa02   :  { %2456 = vmatpush.bf16.msrb.mxu0 %v2953_v50 }
 0xa7e   :  { %v2238_v48 = vpop.f32.mrf.mxu0 }
 0xa7f   :  { %v2282_v25 = vadd.f32 %v3949_v51, %v2238_v48 }
 0xa83   :  { %v2212_v40 = vpop.f32.mrf.mxu2  ;;  %v2225_v62 = vpop.f32.mrf.mxu3 }
 0xa84   :  { %v2242_v43 = vadd.f32 %v2212_v40, %v1443_v60  ;;  %v2243_v27 = vadd.f32 %v2225_v62, %v1472_v46  ;;  %v2952_v60 = vld [vmem:[%s4201_s9 + $0x10] sm:$0xff]  ;;  %v2951_v62 = vld [vmem:[%s4201_s9 + $0x8] sm:$0xff] }
 0xa85   :  { %2457 = vmatpush.bf16.msrb.mxu0 %v2952_v60 }
 0xa86   :  { %v2835_v12 = vmul.f32 -1.442695, %v2242_v43  ;;  %v2836_v8 = vmul.f32 -1.442695, %v2243_v27  ;;  %v2240_v53 = vpop.f32.mrf.mxu0  ;;  %v2950_v43 = vld [vmem:[%s4201_s9] sm:$0xff] }
 0xa88   :  { %3108 = vpow2.f32 %v2835_v12 }
 0xa89   :  { %3110 = vpow2.f32 %v2836_v8  ;;  %2458 = vmatpush.bf16.msrb.mxu0 %v2951_v62 }
 0xa8b   :  { %v2214_v2 = vpop.f32.mrf.mxu2  ;;  %v2227_v16 = vpop.f32.mrf.mxu3 }
 0xa8d   :  { %2459 = vmatpush.bf16.msrb.mxu0 %v2950_v43 }
 0xa8e   :  { %v3109_v35 = vpop.eup %3108 }
 0xa8f   :  { %v3111_v23 = vpop.eup %3110  ;;  %v2250_v44 = vadd.f32 1.0, %v3109_v35 }
 0xa90   :  { %v2251_v41 = vadd.f32 1.0, %v3111_v23 }
 0xa91   :  { %3112 = vrcp.f32 %v2250_v44  ;;  %v2263_v11 = vand.u32 2147483648, %v2250_v44  ;;  %v2261_v31 = vand.u32 2147483647, %v2250_v44  ;;  %vm2257_vm2 = vweird.f32 %v2250_v44 }
 0xa92   :  { %3114 = vrcp.f32 %v2251_v41  ;;  %v2278_v5 = vand.u32 2147483648, %v2251_v41  ;;  %vm2272_vm6 = vweird.f32 %v2251_v41  ;;  %v2276_v33 = vand.u32 2147483647, %v2251_v41 }
 0xa93   :  { %v2264_v37 = vor.u32 1.1754944e-38, %v2263_v11  ;;  %vm2262_vm4 = vcmp.eq.f32.partialorder %v2261_v31, 8.507059e+37 }
 0xa94   :  { %v2279_v32 = vor.u32 1.1754944e-38, %v2278_v5  ;;  %vm2277_vm8 = vcmp.eq.f32.partialorder %v2276_v33, 8.507059e+37 }
 0xa97   :  { %v3113_v58 = vpop.eup %3112 }
 0xa98   :  { %v3115_v13 = vpop.eup %3114  ;;  %v2253_v14 = vmul.f32 %v3113_v58, %v2250_v44  ;;  %vm2258_vm1 = vweird.f32 %v3113_v58 }
 0xa99   :  { %v2268_v54 = vmul.f32 %v3115_v13, %v2251_v41  ;;  %vm2259_vm3 = vmor %vm2257_vm2, %vm2258_vm1  ;;  %vm2273_vm5 = vweird.f32 %v3115_v13 }
 0xa9a   :  { %v2254_v21 = vsub.f32 1.0, %v2253_v14  ;;  %vm2274_vm7 = vmor %vm2272_vm6, %vm2273_vm5 }
 0xa9b   :  { %v2269_v4 = vsub.f32 1.0, %v2268_v54  ;;  %v3129_v54 = vld [vmem:[%s4200_s8] ss:$0 sm:$0xff] }
 0xa9c   :  { %v2255_v63 = vmul.f32 %v3113_v58, %v2254_v21 }
 0xa9d   :  { %v2270_v29 = vmul.f32 %v3115_v13, %v2269_v4 }
 0xa9e   :  { %v2256_v34 = vadd.f32 %v3113_v58, %v2255_v63 }
 0xa9f   :  { %v2271_v45 = vadd.f32 %v3115_v13, %v2270_v29 }
 0xaa0   :  { %v2260_v38 = vsel %vm2259_vm3, %v3113_v58, %v2256_v34  ;;  %v4226_v34 = vld [vmem:[#allocation13_spill] sm:$0xff] }
 0xaa1   :  { %v2265_v39 = vsel %vm2262_vm4, %v2264_v37, %v2260_v38  ;;  %v2275_v49 = vsel %vm2274_vm7, %v3115_v13, %v2271_v45  ;;  %v1503_v37 = vadd.f32 %v4226_v34, %v3951_v30 }
 0xaa2   :  { %v2283_v24 = vmul.f32 %v2282_v25, %v2265_v39  ;;  %v2280_v22 = vsel %vm2277_vm8, %v2279_v32, %v2275_v49 }
 0xaa4   :  { %v2284_v52 = vadd.f32 %v2283_v24, %v1501_v56 }
 0xaa6   :  { %3116 = vtanh.f32 %v2284_v52 }
 0xaac   :  { %v3117_v36 = vpop.eup %3116 }
 0xaad   :  { %v2286_v51 = vsub.f32 %v2198_v42, %v3117_v36 }
 0xaaf   :  { %v2287_v1 = vmul.f32 %v2286_v51, %v2280_v22 }
 0xab1   :  { %v4148_v19 = vadd.f32 %v3117_v36, %v2287_v1  ;;  %v2967_v36 = vld [vmem:[%s4202_s10] ss:$0 sm:$0xff] }
 0xab3   :  { %v2292_v55 = vpack.c.bf16 %v4148_v19, %v4148_v19 }
 0xab5   :  { %2301 = vmatmul.bf16.vlgmr.msra.gmra.mxu1 %v2292_v55  ;;  %2314 = vmatmul.bf16.vlgmr.msra.gmra.mxu2 %v2292_v55 }
 0xab6   :  { %2327 = vmatmul.bf16.vlgmr.msrb.gmra.mxu3 %v2292_v55 }
 0xb32   :  { %v2302_v7 = vpop.f32.mrf.mxu1 }
 0xb33   :  { %v2332_v18 = vadd.f32 %v2302_v7, %v1445_v59 }
 0xb35   :  { %v2837_v15 = vmul.f32 -1.442695, %v2332_v18 }
 0xb37   :  { %3118 = vpow2.f32 %v2837_v15 }
 0xb38   :  { %v2315_v42 = vpop.f32.mrf.mxu2 }
 0xb39   :  { %v2333_v20 = vadd.f32 %v2315_v42, %v1474_v9  ;;  %v2328_v47 = vpop.f32.mrf.mxu3 }
 0xb3a   :  { %v2304_v48 = vpop.f32.mrf.mxu1  ;;  %v2372_v63 = vadd.f32 %v3129_v54, %v2328_v47 }
 0xb3b   :  { %v2838_v6 = vmul.f32 -1.442695, %v2333_v20 }
 0xb3d   :  { %v3119_v46 = vpop.eup %3118  ;;  %3120 = vpow2.f32 %v2838_v6 }
 0xb3e   :  { %v2340_v40 = vadd.f32 1.0, %v3119_v46 }
 0xb40   :  { %3122 = vrcp.f32 %v2340_v40  ;;  %v2317_v10 = vpop.f32.mrf.mxu2  ;;  %v2353_v35 = vand.u32 2147483648, %v2340_v40  ;;  %v2351_v44 = vand.u32 2147483647, %v2340_v40  ;;  %vm2347_vm10 = vweird.f32 %v2340_v40 }
 0xb41   :  { %v2330_v27 = vpop.f32.mrf.mxu3 }
 0xb42   :  { %v2354_v14 = vor.u32 1.1754944e-38, %v2353_v35  ;;  %vm2352_vm12 = vcmp.eq.f32.partialorder %v2351_v44, 8.507059e+37 }
 0xb43   :  { %v3121_v12 = vpop.eup %3120 }
 0xb44   :  { %v2341_v8 = vadd.f32 1.0, %v3121_v12 }
 0xb46   :  { %v3123_v53 = vpop.eup %3122  ;;  %3124 = vrcp.f32 %v2341_v8  ;;  %v2368_v3 = vand.u32 2147483648, %v2341_v8  ;;  %vm2362_vm14 = vweird.f32 %v2341_v8  ;;  %v2366_v56 = vand.u32 2147483647, %v2341_v8 }
 0xb47   :  { %v2343_v2 = vmul.f32 %v3123_v53, %v2340_v40  ;;  %vm2348_vm9 = vweird.f32 %v3123_v53 }
 0xb48   :  { %vm2349_vm11 = vmor %vm2347_vm10, %vm2348_vm9  ;;  %v2369_v52 = vor.u32 1.1754944e-38, %v2368_v3  ;;  %vm2367_vm0 = vcmp.eq.f32.partialorder %v2366_v56, 8.507059e+37 }
 0xb49   :  { %v2344_v16 = vsub.f32 1.0, %v2343_v2 }
 0xb4b   :  { %v2345_v23 = vmul.f32 %v3123_v53, %v2344_v16 }
 0xb4c   :  { %v3125_v41 = vpop.eup %3124 }
 0xb4d   :  { %v2358_v58 = vmul.f32 %v3125_v41, %v2341_v8  ;;  %v2346_v13 = vadd.f32 %v3123_v53, %v2345_v23  ;;  %vm2363_vm13 = vweird.f32 %v3125_v41 }
 0xb4e   :  { %vm2364_vm15 = vmor %vm2362_vm14, %vm2363_vm13 }
 0xb4f   :  { %v2359_v21 = vsub.f32 1.0, %v2358_v58  ;;  %v2350_v11 = vsel %vm2349_vm11, %v3123_v53, %v2346_v13 }
 0xb50   :  { %v2355_v31 = vsel %vm2352_vm12, %v2354_v14, %v2350_v11 }
 0xb51   :  { %v2373_v4 = vmul.f32 %v2372_v63, %v2355_v31  ;;  %v2360_v25 = vmul.f32 %v3125_v41, %v2359_v21 }
 0xb53   :  { %v2374_v38 = vadd.f32 %v2373_v4, %v1503_v37  ;;  %v2361_v39 = vadd.f32 %v3125_v41, %v2360_v25 }
 0xb55   :  { %3126 = vtanh.f32 %v2374_v38  ;;  %v2365_v24 = vsel %vm2364_vm15, %v3125_v41, %v2361_v39 }
 0xb56   :  { %v2370_v5 = vsel %vm2367_vm0, %v2369_v52, %v2365_v24 }
 0xb5b   :  { %v3127_v29 = vpop.eup %3126 }
 0xb5c   :  { %v2376_v45 = vsub.f32 %v4148_v19, %v3127_v29 }
 0xb5e   :  { %v2377_v33 = vmul.f32 %v2376_v45, %v2370_v5 }
 0xb60   :  { %v2378_v49 = vadd.f32 %v3127_v29, %v2377_v33 }
 0xb62   :  { %v2383_v30 = vpack.c.bf16 %v2378_v49, %v2378_v49 }
 0xb64   :  { %2460 = vmatmul.bf16.vlgmr.msrb.gmra.mxu0 %v2383_v30 }
 0xbe1   :  { %v2461_v32 = vpop.f32.mrf.mxu0 }
 0xbe2   :  { %v2462_v51 = vadd.f32 %v2967_v36, %v2461_v32 }
 0xbe4   :  { %2465 = vst [vmem:[%s4203_s11] sm:$0xff] %v2462_v51 }
 0xbe9   :  { %v2463_v22 = vpop.f32.mrf.mxu0 }
 0xbea   :  { %2470 = vsyncpa [#allocation6], 1 }
 0xbeb   :  { %2471 = vsyncpa [#allocation8], 1 }

</bundles_post_ra>
